<compile_context>
chip_gen: v6e
topology: v6e:2x2x1
jax: 0.10.0
libtpu: 0.0.40
codegen_flags: <defaults>
</compile_context>

<pallas_src>
import jax
import jax.numpy as jnp
from jax.experimental import pallas as pl
from jax.experimental.pallas import tpu as pltpu


def mlp_kernel(x_ref, w1_ref, b1_ref, w2_ref, b2_ref, w3_ref, b3_ref, o_ref):
    """Fused 3-layer MLP on one batch tile: relu(relu(x@W1+b1)@W2+b2)@W3+b3.

    Matmul dtype follows the weights (bf16 MXU fast path or f32). The activation cast
    happens here (cheap VPU work hidden under the matmuls) so x is read from HBM exactly
    once; accumulation, bias adds and ReLUs are always f32.
    """
    mm_dtype = w1_ref.dtype
    prec = (jax.lax.Precision.HIGHEST if mm_dtype == jnp.float32
            else jax.lax.Precision.DEFAULT)

    x = x_ref[...].astype(mm_dtype)                                    # in-kernel cast
    h1 = jnp.dot(x, w1_ref[...], preferred_element_type=jnp.float32, precision=prec)
    h1 = jnp.maximum(h1 + b1_ref[...], 0.0)                            # f32 bias + ReLU

    h2 = jnp.dot(h1.astype(mm_dtype), w2_ref[...],
                 preferred_element_type=jnp.float32, precision=prec)
    h2 = jnp.maximum(h2 + b2_ref[...], 0.0)

    y = jnp.dot(h2.astype(mm_dtype), w3_ref[...],
                preferred_element_type=jnp.float32, precision=prec)
    o_ref[...] = (y + b3_ref[...]).astype(o_ref.dtype)                 # unpadded store


def simple_nn_forward(x, w1, b1, w2, b2, w3, b3, *, tile_b=None, use_bf16=True,
                      vmem_limit_bytes=32 * 1024 * 1024):
    """x: (B, nb_in); w1: (nb_in, H); w2: (H, H); w3: (H, nb_out); biases (1, dim).

    Weights are stored as (in_features, out_features), i.e. already transposed so the
    kernel computes x @ W + b (== torch's x @ W.T + b).
    """
    B, nb_in = x.shape
    H = w1.shape[1]
    nb_out = w3.shape[1]
    out_dtype = x.dtype

    # Weights: bf16 MXU fast path (cast once here; reusable across calls). Activations
    # stay f32 in HBM and are cast in-kernel. Biases are f32 (VPU add path).
    w_dtype = jnp.bfloat16 if use_bf16 else jnp.float32
    w1 = w1.astype(w_dtype)
    w2 = w2.astype(w_dtype)
    w3 = w3.astype(w_dtype)
    b1 = b1.astype(jnp.float32)
    b2 = b2.astype(jnp.float32)
    b3 = b3.astype(jnp.float32)

    # Batch tiling: large tiles to amortize per-grid-step overhead, but >=2 steps when the
    # batch allows it so the "parallel" axis can shard across v7x's two TensorCores.
    # No padding of x; a ragged last tile is handled by Pallas masking.
    if tile_b is None:
        tile_b = min(2048, max(256, B // 2))
    if B >= 8:
        tile_b = max(8, (min(tile_b, B) // 8) * 8)   # sublane-aligned, never above B
    else:
        tile_b = B                                   # tiny batch: single full block
    grid = (pl.cdiv(B, tile_b),)

    # Advisory cost estimate so XLA schedules/overlaps the call sensibly.
    flops = 2 * B * (nb_in * H + H * H + H * nb_out) + B * (2 * H + nb_out)
    bytes_accessed = (
        x.size * x.dtype.itemsize
        + (w1.size + w2.size + w3.size) * jnp.dtype(w_dtype).itemsize
        + (b1.size + b2.size + b3.size) * 4
        + B * nb_out * jnp.dtype(out_dtype).itemsize
    )

    return pl.pallas_call(
        mlp_kernel,
        out_shape=jax.ShapeDtypeStruct((B, nb_out), out_dtype),
        grid_spec=pltpu.PrefetchScalarGridSpec(
            num_scalar_prefetch=0,
            grid=grid,
            in_specs=[
                pl.BlockSpec((tile_b, nb_in), lambda i: (i, 0)),  # x: batch-tiled
                pl.BlockSpec((nb_in, H), lambda i: (0, 0)),       # W1 (VMEM-resident)
                pl.BlockSpec((1, H), lambda i: (0, 0)),           # b1
                pl.BlockSpec((H, H), lambda i: (0, 0)),           # W2 (VMEM-resident)
                pl.BlockSpec((1, H), lambda i: (0, 0)),           # b2
                pl.BlockSpec((H, nb_out), lambda i: (0, 0)),      # W3 (VMEM-resident)
                pl.BlockSpec((1, nb_out), lambda i: (0, 0)),      # b3
            ],
            out_specs=pl.BlockSpec((tile_b, nb_out), lambda i: (i, 0)),
        ),
        compiler_params=pltpu.CompilerParams(
            dimension_semantics=("parallel",),       # batch tiles shard across v7x cores
            vmem_limit_bytes=vmem_limit_bytes,       # one code path for v5e/v6e/v7x
        ),
        cost_estimate=pl.CostEstimate(
            flops=int(flops), transcendentals=0, bytes_accessed=int(bytes_accessed)),
    )(x, w1, b1, w2, b2, w3, b3)


def reference_forward(x, w1, b1, w2, b2, w3, b3):
    prec = jax.lax.Precision.HIGHEST
    h1 = jnp.maximum(jnp.dot(x, w1, precision=prec) + b1, 0.0)
    h2 = jnp.maximum(jnp.dot(h1, w2, precision=prec) + b2, 0.0)
    return jnp.dot(h2, w3, precision=prec) + b3


if __name__ == "__main__":
    # Shapes consistent with SimpleNN(nb_in=32, nb_out=16, hidden_dim=128) at batch=512:
    # the default tile_b picks two 256-row tiles, so the parallel grid axis has 2 steps.
    batch, nb_in, hidden, nb_out = 512, 32, 128, 16

    key = jax.random.PRNGKey(0)
    kx, k1, kb1, k2, kb2, k3, kb3 = jax.random.split(key, 7)

    x = jax.random.normal(kx, (batch, nb_in), dtype=jnp.float32)

    # torch-Linear-like uniform init, stored as (in_features, out_features).
    def init_w(k, fan_in, fan_out):
        bound = 1.0 / (fan_in ** 0.5)
        return jax.random.uniform(k, (fan_in, fan_out), jnp.float32, -bound, bound)

    def init_b(k, fan_in, fan_out):
        bound = 1.0 / (fan_in ** 0.5)
        return jax.random.uniform(k, (1, fan_out), jnp.float32, -bound, bound)

    w1, b1 = init_w(k1, nb_in, hidden), init_b(kb1, nb_in, hidden)
    w2, b2 = init_w(k2, hidden, hidden), init_b(kb2, hidden, hidden)
    w3, b3 = init_w(k3, hidden, nb_out), init_b(kb3, hidden, nb_out)

    ref = reference_forward(x, w1, b1, w2, b2, w3, b3)

    # f32 matmul path (precision=HIGHEST inside the kernel): tight correctness check.
    out_f32 = jax.block_until_ready(
        simple_nn_forward(x, w1, b1, w2, b2, w3, b3, use_bf16=False))
    assert out_f32.shape == (batch, nb_out)
    assert jnp.allclose(out_f32, ref, atol=1e-5, rtol=1e-5), "f32 kernel mismatch vs reference"

    # bf16-matmul / f32-accumulate fast path: loose check.
    out_bf16 = jax.block_until_ready(
        simple_nn_forward(x, w1, b1, w2, b2, w3, b3, use_bf16=True))
    assert out_bf16.shape == (batch, nb_out)
    assert jnp.allclose(out_bf16, ref, atol=5e-2, rtol=5e-2), "bf16 kernel mismatch vs reference"

    print("KERNEL_OK")
</pallas_src>

<mosaic_0001>
module attributes {stable_mosaic.version = 11 : i64} {
  func.func @mlp_kernel(%arg0: i32, %arg1: memref<256x32xf32, #tpu.memory_space<vmem>>, %arg2: memref<32x128xf32, #tpu.memory_space<vmem>>, %arg3: memref<1x128xf32, #tpu.memory_space<vmem>>, %arg4: memref<128x128xf32, #tpu.memory_space<vmem>>, %arg5: memref<1x128xf32, #tpu.memory_space<vmem>>, %arg6: memref<128x16xf32, #tpu.memory_space<vmem>>, %arg7: memref<1x16xf32, #tpu.memory_space<vmem>>, %arg8: memref<256x16xf32, #tpu.memory_space<vmem>>) attributes {dimension_semantics = [#tpu.dimension_semantics<parallel>], iteration_bounds = array<i64: 2>, scalar_prefetch = 0 : i64, scratch_operands = 0 : i64, tpu.core_type = #tpu.core_type<tc>, window_params = [{transform_indices = @transform_0, window_bounds = array<i64: 256, 32>}, {pipeline_mode = #tpu.pipeline_mode<synchronous>, transform_indices = @transform_1, window_bounds = array<i64: 32, 128>}, {pipeline_mode = #tpu.pipeline_mode<synchronous>, transform_indices = @transform_2, window_bounds = array<i64: 1, 128>}, {pipeline_mode = #tpu.pipeline_mode<synchronous>, transform_indices = @transform_3, window_bounds = array<i64: 128, 128>}, {pipeline_mode = #tpu.pipeline_mode<synchronous>, transform_indices = @transform_4, window_bounds = array<i64: 1, 128>}, {pipeline_mode = #tpu.pipeline_mode<synchronous>, transform_indices = @transform_5, window_bounds = array<i64: 128, 16>}, {pipeline_mode = #tpu.pipeline_mode<synchronous>, transform_indices = @transform_6, window_bounds = array<i64: 1, 16>}, {transform_indices = @transform_7, window_bounds = array<i64: 256, 16>}]} {
    %c0 = arith.constant 0 : index
    %c0_0 = arith.constant 0 : index
    %0 = vector.load %arg1[%c0, %c0_0] : memref<256x32xf32, #tpu.memory_space<vmem>>, vector<256x32xf32>
    %c0_1 = arith.constant 0 : index
    %c0_2 = arith.constant 0 : index
    %1 = vector.load %arg2[%c0_1, %c0_2] : memref<32x128xf32, #tpu.memory_space<vmem>>, vector<32x128xf32>
    %cst = arith.constant dense<0.000000e+00> : vector<256x128xf32>
    %2 = tpu.matmul %0, %1, %cst {dimension_numbers = #tpu.dot_dimension_numbers<[1], [0], [0], [1], [0, 0, 1, 1], [], []>, precision = #tpu.contract_precision<fp32>} : vector<256x32xf32>, vector<32x128xf32>, vector<256x128xf32> -> vector<256x128xf32>
    %c0_3 = arith.constant 0 : index
    %c0_4 = arith.constant 0 : index
    %3 = vector.load %arg3[%c0_3, %c0_4] : memref<1x128xf32, #tpu.memory_space<vmem>>, vector<1x128xf32>
    %4 = vector.broadcast %3 : vector<1x128xf32> to vector<256x128xf32>
    %5 = arith.addf %2, %4 : vector<256x128xf32>
    %cst_5 = arith.constant 0.000000e+00 : f32
    %6 = vector.broadcast %cst_5 : f32 to vector<256x128xf32>
    %7 = arith.maximumf %5, %6 : vector<256x128xf32>
    %c0_6 = arith.constant 0 : index
    %c0_7 = arith.constant 0 : index
    %8 = vector.load %arg4[%c0_6, %c0_7] : memref<128x128xf32, #tpu.memory_space<vmem>>, vector<128x128xf32>
    %cst_8 = arith.constant dense<0.000000e+00> : vector<256x128xf32>
    %9 = tpu.matmul %7, %8, %cst_8 {dimension_numbers = #tpu.dot_dimension_numbers<[1], [0], [0], [1], [0, 0, 1, 1], [], []>, precision = #tpu.contract_precision<fp32>} : vector<256x128xf32>, vector<128x128xf32>, vector<256x128xf32> -> vector<256x128xf32>
    %c0_9 = arith.constant 0 : index
    %c0_10 = arith.constant 0 : index
    %10 = vector.load %arg5[%c0_9, %c0_10] : memref<1x128xf32, #tpu.memory_space<vmem>>, vector<1x128xf32>
    %11 = vector.broadcast %10 : vector<1x128xf32> to vector<256x128xf32>
    %12 = arith.addf %9, %11 : vector<256x128xf32>
    %cst_11 = arith.constant 0.000000e+00 : f32
    %13 = vector.broadcast %cst_11 : f32 to vector<256x128xf32>
    %14 = arith.maximumf %12, %13 : vector<256x128xf32>
    %c0_12 = arith.constant 0 : index
    %c0_13 = arith.constant 0 : index
    %15 = vector.load %arg6[%c0_12, %c0_13] : memref<128x16xf32, #tpu.memory_space<vmem>>, vector<128x16xf32>
    %cst_14 = arith.constant dense<0.000000e+00> : vector<256x16xf32>
    %16 = tpu.matmul %14, %15, %cst_14 {dimension_numbers = #tpu.dot_dimension_numbers<[1], [0], [0], [1], [0, 0, 1, 1], [], []>, precision = #tpu.contract_precision<fp32>} : vector<256x128xf32>, vector<128x16xf32>, vector<256x16xf32> -> vector<256x16xf32>
    %c0_15 = arith.constant 0 : index
    %c0_16 = arith.constant 0 : index
    %17 = vector.load %arg7[%c0_15, %c0_16] : memref<1x16xf32, #tpu.memory_space<vmem>>, vector<1x16xf32>
    %18 = vector.broadcast %17 : vector<1x16xf32> to vector<256x16xf32>
    %19 = arith.addf %16, %18 : vector<256x16xf32>
    %c0_17 = arith.constant 0 : index
    %c0_18 = arith.constant 0 : index
    %20 = vector.load %arg8[%c0_17, %c0_18] : memref<256x16xf32, #tpu.memory_space<vmem>>, vector<256x16xf32>
    tpu.vector_store %arg8[%c0_17, %c0_18], %19 {strides = array<i32>} : memref<256x16xf32, #tpu.memory_space<vmem>>, vector<256x16xf32>,
    return
  }
  func.func @transform_0(%arg0: i32) -> (i32, i32) {
    %c0_i32 = arith.constant 0 : i32
    %c0_i32_0 = arith.constant 0 : i32
    return %arg0, %c0_i32 : i32, i32
  }
  func.func @transform_1(%arg0: i32) -> (i32, i32) {
    %c0_i32 = arith.constant 0 : i32
    %c0_i32_0 = arith.constant 0 : i32
    %c0_i32_1 = arith.constant 0 : i32
    return %c0_i32, %c0_i32_0 : i32, i32
  }
  func.func @transform_2(%arg0: i32) -> (i32, i32) {
    %c0_i32 = arith.constant 0 : i32
    %c0_i32_0 = arith.constant 0 : i32
    %c0_i32_1 = arith.constant 0 : i32
    return %c0_i32, %c0_i32_0 : i32, i32
  }
  func.func @transform_3(%arg0: i32) -> (i32, i32) {
    %c0_i32 = arith.constant 0 : i32
    %c0_i32_0 = arith.constant 0 : i32
    %c0_i32_1 = arith.constant 0 : i32
    return %c0_i32, %c0_i32_0 : i32, i32
  }
  func.func @transform_4(%arg0: i32) -> (i32, i32) {
    %c0_i32 = arith.constant 0 : i32
    %c0_i32_0 = arith.constant 0 : i32
    %c0_i32_1 = arith.constant 0 : i32
    return %c0_i32, %c0_i32_0 : i32, i32
  }
  func.func @transform_5(%arg0: i32) -> (i32, i32) {
    %c0_i32 = arith.constant 0 : i32
    %c0_i32_0 = arith.constant 0 : i32
    %c0_i32_1 = arith.constant 0 : i32
    return %c0_i32, %c0_i32_0 : i32, i32
  }
  func.func @transform_6(%arg0: i32) -> (i32, i32) {
    %c0_i32 = arith.constant 0 : i32
    %c0_i32_0 = arith.constant 0 : i32
    %c0_i32_1 = arith.constant 0 : i32
    return %c0_i32, %c0_i32_0 : i32, i32
  }
  func.func @transform_7(%arg0: i32) -> (i32, i32) {
    %c0_i32 = arith.constant 0 : i32
    %c0_i32_0 = arith.constant 0 : i32
    return %arg0, %c0_i32 : i32, i32
  }
}

</mosaic_0001>

<bundles_post_ra>
// kernel: tpu_custom_call.1
= control target key start
LH: loop header
LB: loop body
LE: loop exit
PB: predicated region body
PF: predicated region fallthrough
CT: control target
= control target key end

     0   :  { %s8545_s24 = smov 0   ;;  %s12085_s0 = inlined_call_operand.vmem [shape: f32[512,32], index: 0, kind: input, shape index: {}]   ;;  %s12086_s1 = inlined_call_operand.vmem [shape: f32[32,128], index: 1, kind: input, shape index: {}]   ;;  %s12087_s2 = inlined_call_operand.vmem [shape: f32[1,128], index: 2, kind: input, shape index: {}]   ;;  %s12088_s3 = inlined_call_operand.vmem [shape: f32[128,128], index: 3, kind: input, shape index: {}]   ;;  %s12089_s4 = inlined_call_operand.vmem [shape: f32[1,128], index: 4, kind: input, shape index: {}]   ;;  %s12090_s5 = inlined_call_operand.vmem [shape: f32[128,16], index: 5, kind: input, shape index: {}]   ;;  %s12091_s6 = inlined_call_operand.vmem [shape: f32[1,16], index: 6, kind: input, shape index: {}]   ;;  %s12092_s7 = inlined_call_operand.vmem [shape: f32[512,16], index: 7, kind: output, shape index: {}]  }
   0x1 LB: > { %s6387_s25 = sadd.s32 4294967295, %s8503_s24   ;;  %p6391_p0 = scmp.ge.s32.totalorder %s8503_s24, 1  ;;  %s8503_s24 = sphi %s8545_s24, %s17_s24  }
   0x2   : > { %p238_p1 = scmp.lt.s32.totalorder %s8503_s24, 3 }
   0x4   : > { %p239_p2 = pnand %p6391_p0, %p238_p1 }
   0x6   : > { %242 = sbr.rel (%p239_p2) target bundleno = 1106 (0x452), region = 48 }
   0xb   : > { %v317_v0 = vld [vmem:[%s12086_s1 + $0x18] sm:$0xff]  ;;  %v316_v1 = vld [vmem:[%s12086_s1 + $0x10] sm:$0xff]  ;;  %v315_v2 = vld [vmem:[%s12086_s1 + $0x8] sm:$0xff]  ;;  %s6392_s9 = sshll.u32 %s6387_s25, 5  ;;  %vm325_vm0 = vcmask 261120   ;;  %vm6298_vm1 = vcmask 130048  }
   0xc   : > { %v8562_v3 = vand.u32 4294901760, %v317_v0  ;;  %v8564_v4 = vand.u32 4294901760, %v316_v1  ;;  %v8566_v5 = vand.u32 4294901760, %v315_v2  ;;  %v314_v6 = vld [vmem:[%s12086_s1] sm:$0xff]  ;;  %p271_p3 = scmp.lt.s32.totalorder %s6392_s9, 63 }
   0xd   : > { %v8571_v7 = vand.u32 4294901760, %v314_v6 }
   0xe   : > { %7193 = vmatprep.subr.mxu0 %v8562_v3  ;;  %v8575_v8 = vsub.f32 %v317_v0, %v8562_v3  ;;  %v8578_v9 = vsub.f32 %v316_v1, %v8564_v4  ;;  %v8581_v10 = vsub.f32 %v315_v2, %v8566_v5  ;;  %s13162_s9 = smov (!%p271_p3, %s6392_s9), 63 }
   0xf   : > { %7194 = vmatpush3.msra.mxu0 %v8562_v3  ;;  %v8587_v11 = vsub.f32 %v314_v6, %v8571_v7  ;;  %s6393_s12 = sshll.u32 %s13162_s9, 3 }
  0x10   : > { %v8590_v12 = vand.u32 4294901760, %v8575_v8  ;;  %7195 = vmatprep.subr.mxu0 %v8564_v4  ;;  %v8594_v13 = vand.u32 4294901760, %v8578_v9  ;;  %v8597_v14 = vand.u32 4294901760, %v8581_v10  ;;  %s8609_s15 = scalar_lea.vmem %s12085_s0, %s6393_s12  ;;  %s11930_s29 = scalar_lea.vmem %s12092_s7, %s6393_s12 }
  0x11   : > { %7196 = vmatpush3.msra.mxu0 %v8564_v4  ;;  %v8602_v15 = vand.u32 4294901760, %v8587_v11  ;;  %v282_v19 = vld [vmem:[%s8609_s15] sm:$0xff]  ;;  %v283_v20 = vld [vmem:[%s8609_s15 + $0x8] sm:$0xff]  ;;  %v284_v21 = vld [vmem:[%s8609_s15 + $0x10] sm:$0xff] }
  0x12   : > { %v839_v16 = vsub.f32 %v8575_v8, %v8590_v12  ;;  %v846_v17 = vsub.f32 %v8578_v9, %v8594_v13  ;;  %7197 = vmatprep.subr.mxu0 %v8566_v5  ;;  %v853_v18 = vsub.f32 %v8581_v10, %v8597_v14  ;;  %v327_v23 = vsel %vm325_vm0, %v282_v19, 0  ;;  %v285_v26 = vld [vmem:[%s8609_s15 + $0x18] sm:$0xff]  ;;  %v286_v27 = vld [vmem:[%s8609_s15 + $0x20] sm:$0xff]  ;;  %v287_v28 = vld [vmem:[%s8609_s15 + $0x28] sm:$0xff] }
  0x13   : > { %7198 = vmatpush3.msra.mxu0 %v8566_v5  ;;  %v860_v22 = vsub.f32 %v8587_v11, %v8602_v15  ;;  %v330_v24 = vsel %vm325_vm0, %v283_v20, 0  ;;  %v333_v25 = vsel %vm325_vm0, %v284_v21, 0  ;;  %v8631_v32 = vand.u32 4294901760, %v327_v23  ;;  %v288_v37 = vld [vmem:[%s8609_s15 + $0x30] sm:$0xff]  ;;  %v289_v38 = vld [vmem:[%s8609_s15 + $0x38] sm:$0xff]  ;;  %v290_v63 = vld [vmem:[%s8609_s15 + $0x40] sm:$0xff] }
  0x14   : > { %v840_v29 = vand.u32 4294901760, %v839_v16  ;;  %v847_v30 = vand.u32 4294901760, %v846_v17  ;;  %v854_v31 = vand.u32 4294901760, %v853_v18  ;;  %7199 = vmatprep.subr.mxu0 %v8571_v7  ;;  %v8634_v34 = vand.u32 4294901760, %v330_v24  ;;  %v291_v16 = vld [vmem:[%s8609_s15 + $0x48] sm:$0xff]  ;;  %v292_v21 = vld [vmem:[%s8609_s15 + $0x50] sm:$0xff] }
  0x15   : > { %7200 = vmatpush3.msra.mxu0 %v8571_v7  ;;  %v861_v33 = vand.u32 4294901760, %v860_v22  ;;  %v8636_v35 = vand.u32 4294901760, %v333_v25  ;;  %v336_v36 = vsel %vm325_vm0, %v285_v26, 0  ;;  %v8642_v39 = vsub.f32 %v327_v23, %v8631_v32  ;;  %7257 = vmatprep.mubr.f32.mxu1 %v8631_v32  ;;  %v294_v26 = vld [vmem:[%s8609_s15 + $0x60] sm:$0xff] }
  0x16   : > { %12495 = vst [vmem:[#allocation2_spill] sm:$0xff] %v8634_v34  ;;  %7249 = vmatprep.subr.mxu1 %v840_v29  ;;  %v8645_v40 = vand.u32 4294901760, %v336_v36  ;;  %v339_v41 = vsel %vm325_vm0, %v286_v27, 0  ;;  %v342_v42 = vsel %vm325_vm0, %v287_v28, 0  ;;  %7305 = vmatprep.subr.mxu0 %v8575_v8  ;;  %v8651_v43 = vsub.f32 %v330_v24, %v8634_v34 }
  0x17   : > { %12496 = vst [vmem:[#allocation3_spill] sm:$0xff] %v8636_v35  ;;  %7250 = vmatpush3.msra.mxu1 %v840_v29  ;;  %v8654_v44 = vsub.f32 %v333_v25, %v8636_v35  ;;  %v8656_v45 = vand.u32 4294901760, %v339_v41  ;;  %v8658_v46 = vand.u32 4294901760, %v342_v42  ;;  %v12106_v47 = vand.u32 4294901760, %v8642_v39  ;;  %v293_v25 = vld [vmem:[%s8609_s15 + $0x58] sm:$0xff] }
  0x18   : > { %12497 = vst [vmem:[#allocation4_spill] sm:$0xff] %v8645_v40  ;;  %7251 = vmatprep.subr.mxu1 %v847_v30  ;;  %v8662_v48 = vsub.f32 %v336_v36, %v8645_v40  ;;  %v345_v49 = vsel %vm325_vm0, %v288_v37, 0  ;;  %v348_v50 = vsel %vm325_vm0, %v289_v38, 0  ;;  %v12104_v51 = vand.u32 4294901760, %v8651_v43  ;;  %v295_v38 = vld [vmem:[%s8609_s15 + $0x68] sm:$0xff] }
  0x19   : > { %12498 = vst [vmem:[#allocation5_spill] sm:$0xff] %v8656_v45  ;;  %12499 = vst [vmem:[#allocation6_spill] sm:$0xff] %v8658_v46  ;;  %7252 = vmatpush3.msra.mxu1 %v847_v30  ;;  %v12102_v52 = vand.u32 4294901760, %v8654_v44  ;;  %v8669_v53 = vsub.f32 %v339_v41, %v8656_v45  ;;  %v8672_v54 = vsub.f32 %v342_v42, %v8658_v46  ;;  %v8678_v57 = vand.u32 4294901760, %v345_v49 }
  0x1a   : > { %7253 = vmatprep.subr.mxu1 %v854_v31  ;;  %v494_v55 = vsub.f32 %v8642_v39, %v12106_v47  ;;  %v12101_v56 = vand.u32 4294901760, %v8662_v48  ;;  %v8680_v58 = vand.u32 4294901760, %v348_v50  ;;  %v504_v59 = vsub.f32 %v8651_v43, %v12104_v51 }
  0x1b   : > { %12500 = vst [vmem:[#allocation7_spill] sm:$0xff] %v8678_v57  ;;  %7254 = vmatpush3.msra.mxu1 %v854_v31  ;;  %v514_v60 = vsub.f32 %v8654_v44, %v12102_v52  ;;  %v12100_v61 = vand.u32 4294901760, %v8669_v53  ;;  %v12099_v62 = vand.u32 4294901760, %v8672_v54  ;;  %v8695_v2 = vsub.f32 %v345_v49, %v8678_v57 }
  0x1c   : > { %12501 = vst [vmem:[#allocation8_spill] sm:$0xff] %v8680_v58  ;;  %7255 = vmatprep.subr.mxu1 %v861_v33  ;;  %v495_v0 = vand.u32 4294901760, %v494_v55  ;;  %v524_v1 = vsub.f32 %v8662_v48, %v12101_v56  ;;  %v8698_v6 = vsub.f32 %v348_v50, %v8680_v58  ;;  %v505_v17 = vand.u32 4294901760, %v504_v59  ;;  %v296_v50 = vld [vmem:[%s8609_s15 + $0x70] sm:$0xff] }
  0x1d   : > { %7256 = vmatpush3.msra.mxu1 %v861_v33  ;;  %v515_v18 = vand.u32 4294901760, %v514_v60  ;;  %v534_v19 = vsub.f32 %v8669_v53, %v12100_v61  ;;  %v544_v20 = vsub.f32 %v8672_v54, %v12099_v62  ;;  %v12098_v22 = vand.u32 4294901760, %v8695_v2 }
  0x1e   : > { %7201 = vmatprep.mubr.f32.mxu0 %v495_v0  ;;  %7258 = vmatmul.mubr.f32.vlgmr.msra.gmra.mxu1 %v8634_v34  ;;  %v12097_v23 = vand.u32 4294901760, %v8698_v6  ;;  %v351_v24 = vsel %vm325_vm0, %v290_v63, 0  ;;  %v525_v27 = vand.u32 4294901760, %v524_v1  ;;  %v354_v30 = vsel %vm325_vm0, %v291_v16, 0 }
  0x1f   : > { %7202 = vmatmul.mubr.f32.vlgmr.msra.gmra.mxu0 %v505_v17  ;;  %7361 = vmatprep.subr.mxu1 %v8562_v3  ;;  %v535_v28 = vand.u32 4294901760, %v534_v19  ;;  %v8715_v29 = vand.u32 4294901760, %v351_v24  ;;  %v545_v31 = vand.u32 4294901760, %v544_v20  ;;  %v554_v33 = vsub.f32 %v8695_v2, %v12098_v22 }
  0x20   : > { %7306 = vmatpush3.msra.mxu0 %v8575_v8  ;;  %7362 = vmatpush3.msra.mxu1 %v8562_v3  ;;  %v8723_v36 = vand.u32 4294901760, %v354_v30  ;;  %v357_v37 = vsel %vm325_vm0, %v292_v21, 0  ;;  %v360_v8 = vsel %vm325_vm0, %v293_v25, 0  ;;  %v363_v49 = vsel %vm325_vm0, %v294_v26, 0 }
  0x21   : > { %12502 = vst [vmem:[#allocation9_spill] sm:$0xff] %v8715_v29  ;;  %7204 = vmatprep.mubr.f32.mxu0 %v515_v18  ;;  %7260 = vmatprep.mubr.f32.mxu1 %v8636_v35  ;;  %v8729_v41 = vsub.f32 %v351_v24, %v8715_v29  ;;  %v8731_v42 = vand.u32 4294901760, %v357_v37  ;;  %v555_v55 = vand.u32 4294901760, %v554_v33  ;;  %v564_v59 = vsub.f32 %v8698_v6, %v12097_v23  ;;  %v297_v18 = vld [vmem:[%s8609_s15 + $0x78] sm:$0xff]  ;;  %v302_v23 = vld [vmem:[%s8609_s15 + $0xa0] sm:$0xff] }
  0x22   : > { %12503 = vst [vmem:[#allocation10_spill] sm:$0xff] %v8723_v36  ;;  %7261 = vmatmul.mubr.f32.gmra.mxu1 %v8645_v40  ;;  %7307 = vmatprep.subr.mxu0 %v8578_v9  ;;  %v8742_v60 = vsub.f32 %v354_v30, %v8723_v36  ;;  %v8744_v63 = vand.u32 4294901760, %v360_v8  ;;  %v8751_v16 = vand.u32 4294901760, %v363_v49  ;;  %v366_v17 = vsel %vm325_vm0, %v295_v38, 0 }
  0x23   : > { %12504 = vst [vmem:[#allocation11_spill] sm:$0xff] %v8731_v42  ;;  %7205 = vmatmul.mubr.f32.gmra.mxu0 %v525_v27  ;;  %7263 = vmatprep.mubr.f32.mxu1 %v8656_v45  ;;  %v12095_v0 = vand.u32 4294901760, %v8729_v41  ;;  %v8749_v1 = vsub.f32 %v357_v37, %v8731_v42  ;;  %v8760_v21 = vand.u32 4294901760, %v366_v17  ;;  %v369_v24 = vsel %vm325_vm0, %v296_v50, 0  ;;  %v298_v37 = vld [vmem:[%s8609_s15 + $0x80] sm:$0xff]  ;;  %v312_v45 = vld [vmem:[%s8609_s15 + $0xf0] sm:$0xff] }
  0x24   : > { %12505 = vst [vmem:[#allocation12_spill] sm:$0xff] %v8744_v63  ;;  %12506 = vst [vmem:[#allocation13_spill] sm:$0xff] %v8751_v16  ;;  %7207 = vmatprep.mubr.f32.mxu0 %v535_v28  ;;  %v12094_v19 = vand.u32 4294901760, %v8742_v60  ;;  %7308 = vmatpush3.msra.mxu0 %v8578_v9  ;;  %v8758_v20 = vsub.f32 %v360_v8, %v8744_v63  ;;  %v8769_v27 = vsub.f32 %v363_v49, %v8751_v16 }
  0x25   : > { %12507 = vst [vmem:[#allocation14_spill] sm:$0xff] %v8760_v21  ;;  %v574_v25 = vsub.f32 %v8729_v41, %v12095_v0  ;;  %7363 = vmatprep.subr.mxu1 %v8564_v4  ;;  %v12093_v26 = vand.u32 4294901760, %v8749_v1  ;;  %v8771_v28 = vand.u32 4294901760, %v369_v24  ;;  %7309 = vmatprep.subr.mxu0 %v8581_v10  ;;  %v8777_v30 = vsub.f32 %v366_v17, %v8760_v21  ;;  %v299_v17 = vld [vmem:[%s8609_s15 + $0x88] sm:$0xff] }
  0x26   : > { %7264 = vmatmul.mubr.f32.gmra.mxu1 %v8658_v46  ;;  %v12096_v9 = vand.u32 4294901760, %v8758_v20  ;;  %v372_v33 = vsel %vm325_vm0, %v297_v18, 0  ;;  %7310 = vmatpush3.msra.mxu0 %v8581_v10  ;;  %v565_v38 = vand.u32 4294901760, %v564_v59  ;;  %v584_v8 = vsub.f32 %v8742_v60, %v12094_v19  ;;  %v300_v18 = vld [vmem:[%s8609_s15 + $0x90] sm:$0xff]  ;;  %v311_v46 = vld [vmem:[%s8609_s15 + $0xe8] sm:$0xff] }
  0x27   : > { %12508 = vst [vmem:[#allocation15_spill] sm:$0xff] %v8771_v28  ;;  %7208 = vmatmul.mubr.f32.gmra.mxu0 %v545_v31  ;;  %7266 = vmatprep.mubr.f32.mxu1 %v8678_v57  ;;  %v8787_v49 = vsub.f32 %v369_v24, %v8771_v28  ;;  %v575_v50 = vand.u32 4294901760, %v574_v25  ;;  %v594_v10 = vsub.f32 %v8749_v1, %v12093_v26  ;;  %v12103_v31 = vand.u32 4294901760, %v8769_v27  ;;  %v309_v57 = vld [vmem:[%s8609_s15 + $0xd8] sm:$0xff] }
  0x28   : > { %7210 = vmatprep.mubr.f32.mxu0 %v555_v55  ;;  %7364 = vmatpush3.msra.mxu1 %v8564_v4  ;;  %v8794_v59 = vand.u32 4294901760, %v372_v33  ;;  %v604_v24 = vsub.f32 %v8758_v20, %v12096_v9  ;;  %v375_v55 = vsel %vm325_vm0, %v298_v37, 0  ;;  %v12105_v25 = vand.u32 4294901760, %v8777_v30  ;;  %v301_v9 = vld [vmem:[%s8609_s15 + $0x98] sm:$0xff] }
  0x29   : > { %7365 = vmatprep.subr.mxu1 %v8566_v5  ;;  %7311 = vmatprep.subr.mxu0 %v8587_v11  ;;  %v12107_v26 = vand.u32 4294901760, %v8787_v49  ;;  %v8810_v0 = vand.u32 4294901760, %v375_v55  ;;  %v585_v37 = vand.u32 4294901760, %v584_v8  ;;  %v378_v22 = vsel %vm325_vm0, %v299_v17, 0 }
  0x2a   : > { %12509 = vst [vmem:[#allocation16_spill] sm:$0xff] %v8794_v59  ;;  %7267 = vmatmul.mubr.f32.gmra.mxu1 %v8680_v58  ;;  %v8808_v19 = vsub.f32 %v372_v33, %v8794_v59  ;;  %7312 = vmatpush3.msra.mxu0 %v8587_v11  ;;  %v381_v62 = vsel %vm325_vm0, %v300_v18, 0  ;;  %v595_v61 = vand.u32 4294901760, %v594_v10  ;;  %v614_v33 = vsub.f32 %v8769_v27, %v12103_v31  ;;  %v303_v11 = vld [vmem:[%s8609_s15 + $0xa8] sm:$0xff] }
  0x2b   : > { %12510 = vst [vmem:[#allocation17_spill] sm:$0xff] %v8810_v0  ;;  %7211 = vmatmul.mubr.f32.gmra.mxu0 %v565_v38  ;;  %7269 = vmatprep.mubr.f32.mxu1 %v8715_v29  ;;  %v8822_v56 = vsub.f32 %v375_v55, %v8810_v0  ;;  %v8824_v52 = vand.u32 4294901760, %v378_v22  ;;  %v304_v38 = vld [vmem:[%s8609_s15 + $0xb0] sm:$0xff]  ;;  %v8829_v8 = vand.u32 4294901760, %v381_v62  ;;  %v384_v17 = vsel %vm325_vm0, %v301_v9, 0 }
  0x2c   : > { %7213 = vmatprep.mubr.f32.mxu0 %v575_v50  ;;  %7366 = vmatpush3.msra.mxu1 %v8566_v5  ;;  %v387_v50 = vsel %vm325_vm0, %v302_v23, 0  ;;  %v605_v10 = vand.u32 4294901760, %v604_v24  ;;  %v624_v18 = vsub.f32 %v8777_v30, %v12105_v25  ;;  %v634_v55 = vsub.f32 %v8787_v49, %v12107_v26 }
  0x2d   : > { %12511 = vst [vmem:[#allocation18_spill] sm:$0xff] %v8824_v52  ;;  %12512 = vst [vmem:[#allocation19_spill] sm:$0xff] %v8829_v8  ;;  %7367 = vmatprep.subr.mxu1 %v8571_v7  ;;  %7417 = vmatprep.subr.mxu0 %v8590_v12  ;;  %v8845_v23 = vsub.f32 %v378_v22, %v8824_v52  ;;  %v8847_v31 = vand.u32 4294901760, %v384_v17  ;;  %v390_v24 = vsel %vm325_vm0, %v303_v11, 0  ;;  %v393_v51 = vsel %vm325_vm0, %v304_v38, 0  ;;  %v306_v22 = vld [vmem:[%s8609_s15 + $0xc0] sm:$0xff] }
  0x2e   : > { %7270 = vmatmul.mubr.f32.gmra.mxu1 %v8723_v36  ;;  %v615_v25 = vand.u32 4294901760, %v614_v33  ;;  %v8853_v26 = vsub.f32 %v381_v62, %v8829_v8  ;;  %v8855_v9 = vand.u32 4294901760, %v387_v50  ;;  %v625_v11 = vand.u32 4294901760, %v624_v18 }
  0x2f   : > { %7214 = vmatmul.mubr.f32.gmra.mxu0 %v585_v37  ;;  %7272 = vmatprep.mubr.f32.mxu1 %v8731_v42  ;;  %v305_v37 = vld [vmem:[%s8609_s15 + $0xb8] sm:$0xff]  ;;  %v635_v38 = vand.u32 4294901760, %v634_v55  ;;  %v8864_v33 = vand.u32 4294901760, %v393_v51  ;;  %v12515_v62 = vand.u32 4294901760, %v8808_v19  ;;  %v12126_v42 = vand.u32 4294901760, %v8845_v23 }
  0x30   : > { %7216 = vmatprep.mubr.f32.mxu0 %v595_v61  ;;  %12513 = vst [vmem:[#allocation20_spill] sm:$0xff] %v8855_v9  ;;  %7368 = vmatpush3.msra.mxu1 %v8571_v7  ;;  %v8862_v61 = vand.u32 4294901760, %v390_v24  ;;  %v8872_v36 = vsub.f32 %v384_v17, %v8847_v31  ;;  %v396_v18 = vsel %vm325_vm0, %v305_v37, 0  ;;  %v12516_v55 = vand.u32 4294901760, %v8822_v56 }
  0x31   : > { %7473 = vmatprep.subr.mxu1 %v8562_v3  ;;  %12514 = vst [vmem:[#allocation21_spill] sm:$0xff] %v8864_v33  ;;  %v644_v47 = vsub.f32 %v8808_v19, %v12515_v62  ;;  %v399_v29 = vsel %vm325_vm0, %v306_v22, 0  ;;  %v307_v62 = vld [vmem:[%s8609_s15 + $0xc8] sm:$0xff]  ;;  %v8891_v37 = vand.u32 4294901760, %v396_v18  ;;  %v664_v22 = vsub.f32 %v8845_v23, %v12126_v42 }
  0x32   : > { %7273 = vmatmul.mubr.f32.gmra.mxu1 %v8744_v63  ;;  %v654_v63 = vsub.f32 %v8822_v56, %v12516_v55  ;;  %v8886_v17 = vsub.f32 %v390_v24, %v8862_v61  ;;  %v308_v55 = vld [vmem:[%s8609_s15 + $0xd0] sm:$0xff]  ;;  %v8899_v24 = vand.u32 4294901760, %v399_v29 }
  0x33   : > { %7217 = vmatmul.mubr.f32.gmra.mxu0 %v605_v10  ;;  %7275 = vmatprep.mubr.f32.mxu1 %v8751_v16  ;;  %v8880_v16 = vsub.f32 %v387_v50, %v8855_v9  ;;  %v645_v50 = vand.u32 4294901760, %v644_v47  ;;  %v405_v47 = vsel %vm325_vm0, %v308_v55, 0 }
  0x34   : > { %7219 = vmatprep.mubr.f32.mxu0 %v615_v25  ;;  %v8889_v25 = vsub.f32 %v393_v51, %v8864_v33  ;;  %v12517_v51 = vand.u32 4294901760, %v8853_v26 }
  0x36   : > { %7276 = vmatmul.mubr.f32.gmra.mxu1 %v8760_v21  ;;  %v655_v21 = vand.u32 4294901760, %v654_v63  ;;  %v674_v58 = vsub.f32 %v8853_v26, %v12517_v51  ;;  %v8912_v63 = vsub.f32 %v396_v18, %v8891_v37  ;;  %v665_v51 = vand.u32 4294901760, %v664_v22 }
  0x37   : > { %7220 = vmatmul.mubr.f32.gmra.mxu0 %v625_v11  ;;  %7278 = vmatprep.mubr.f32.mxu1 %v8771_v28  ;;  %v402_v28 = vsel %vm325_vm0, %v307_v62, 0  ;;  %v12518_v62 = vand.u32 4294901760, %v8872_v36  ;;  %v8920_v11 = vsub.f32 %v399_v29, %v8899_v24  ;;  %v12519_v18 = vand.u32 4294901760, %v8880_v16 }
  0x38   : > { %7222 = vmatprep.mubr.f32.mxu0 %v635_v38  ;;  %v310_v38 = vld [vmem:[%s8609_s15 + $0xe0] sm:$0xff]  ;;  %v8922_v42 = vand.u32 4294901760, %v402_v28  ;;  %v675_v10 = vand.u32 4294901760, %v674_v58  ;;  %v12520_v29 = vand.u32 4294901760, %v8886_v17 }
  0x39   : > { %v684_v55 = vsub.f32 %v8872_v36, %v12518_v62  ;;  %v411_v22 = vsel %vm325_vm0, %v310_v38, 0 }
  0x3a   : > { %7279 = vmatmul.mubr.f32.gmra.mxu1 %v8794_v59  ;;  %v694_v59 = vsub.f32 %v8880_v16, %v12519_v18  ;;  %v704_v62 = vsub.f32 %v8886_v17, %v12520_v29  ;;  %v414_v18 = vsel %vm325_vm0, %v311_v46, 0 }
  0x3b   : > { %7223 = vmatmul.mubr.f32.gmra.mxu0 %v645_v50  ;;  %7281 = vmatprep.mubr.f32.mxu1 %v8810_v0  ;;  %v8927_v50 = vand.u32 4294901760, %v405_v47  ;;  %v408_v0 = vsel %vm325_vm0, %v309_v57, 0  ;;  %v685_v57 = vand.u32 4294901760, %v684_v55 }
  0x3c   : > { %7225 = vmatprep.mubr.f32.mxu0 %v655_v21  ;;  %v12521_v21 = vand.u32 4294901760, %v8889_v25  ;;  %v8946_v40 = vand.u32 4294901760, %v408_v0  ;;  %v695_v29 = vand.u32 4294901760, %v694_v59  ;;  %v705_v55 = vand.u32 4294901760, %v704_v62 }
  0x3d   : > { %v8949_v35 = vsub.f32 %v405_v47, %v8927_v50  ;;  %v12523_v59 = vand.u32 4294901760, %v8920_v11  ;;  %v8968_v47 = vand.u32 4294901760, %v414_v18 }
  0x3e   : > { %7282 = vmatmul.mubr.f32.gmra.mxu1 %v8824_v52  ;;  %v714_v58 = vsub.f32 %v8889_v25, %v12521_v21  ;;  %v8944_v52 = vsub.f32 %v402_v28, %v8922_v42  ;;  %v8951_v21 = vand.u32 4294901760, %v411_v22  ;;  %v12522_v28 = vand.u32 4294901760, %v8912_v63 }
  0x3f   : > { %7226 = vmatmul.mubr.f32.gmra.mxu0 %v665_v51  ;;  %7284 = vmatprep.mubr.f32.mxu1 %v8829_v8  ;;  %v417_v51 = vsel %vm325_vm0, %v312_v45, 0  ;;  %v313_v8 = vld [vmem:[%s8609_s15 + $0xf8] sm:$0xff]  ;;  %v8966_v45 = vsub.f32 %v408_v0, %v8946_v40  ;;  %v8984_v62 = vsub.f32 %v414_v18, %v8968_v47 }
  0x40   : > { %7228 = vmatprep.mubr.f32.mxu0 %v675_v10  ;;  %v715_v38 = vand.u32 4294901760, %v714_v58  ;;  %v724_v34 = vsub.f32 %v8912_v63, %v12522_v28  ;;  %v734_v10 = vsub.f32 %v8920_v11, %v12523_v59  ;;  %v12149_v46 = vand.u32 4294901760, %v8944_v52 }
  0x41   : > { %v8972_v58 = vsub.f32 %v411_v22, %v8951_v21  ;;  %v420_v28 = vsel %vm325_vm0, %v313_v8, 0  ;;  %v12524_v8 = vand.u32 4294901760, %v8949_v35 }
  0x42   : > { %7285 = vmatmul.mubr.f32.gmra.mxu1 %v8847_v31  ;;  %v725_v59 = vand.u32 4294901760, %v724_v34  ;;  %v744_v0 = vsub.f32 %v8944_v52, %v12149_v46  ;;  %v8986_v22 = vand.u32 4294901760, %v420_v28 }
  0x43   : > { %7229 = vmatmul.mubr.f32.gmra.mxu0 %v685_v57  ;;  %7287 = vmatprep.mubr.f32.mxu1 %v8855_v9  ;;  %v8974_v57 = vand.u32 4294901760, %v417_v51  ;;  %v735_v9 = vand.u32 4294901760, %v734_v10  ;;  %v754_v34 = vsub.f32 %v8949_v35, %v12524_v8  ;;  %v12151_v10 = vand.u32 4294901760, %v8984_v62 }
  0x44   : > { %7231 = vmatprep.mubr.f32.mxu0 %v695_v29  ;;  %v12150_v29 = vand.u32 4294901760, %v8966_v45  ;;  %v745_v18 = vand.u32 4294901760, %v744_v0  ;;  %v9002_v46 = vsub.f32 %v420_v28, %v8986_v22 }
  0x45   : > { %v755_v8 = vand.u32 4294901760, %v754_v34 }
  0x46   : > { %7288 = vmatmul.mubr.f32.gmra.mxu1 %v8862_v61  ;;  %v803_v28 = vand.u32 4294901760, %v9002_v46 }
  0x47   : > { %7232 = vmatmul.mubr.f32.gmra.mxu0 %v705_v55  ;;  %7290 = vmatprep.mubr.f32.mxu1 %v8864_v33  ;;  %v773_v55 = vand.u32 4294901760, %v8972_v58  ;;  %v8993_v33 = vsub.f32 %v417_v51, %v8974_v57 }
  0x48   : > { %7234 = vmatprep.mubr.f32.mxu0 %v715_v38  ;;  %v764_v38 = vsub.f32 %v8966_v45, %v12150_v29  ;;  %v784_v29 = vsub.f32 %v8984_v62, %v12151_v10 }
  0x49   : > { %v774_v51 = vsub.f32 %v8972_v58, %v773_v55 }
  0x4a   : > { %7291 = vmatmul.mubr.f32.gmra.mxu1 %v8891_v37  ;;  %v765_v0 = vand.u32 4294901760, %v764_v38  ;;  %v804_v38 = vsub.f32 %v9002_v46, %v803_v28 }
  0x4b   : > { %7235 = vmatmul.mubr.f32.gmra.mxu0 %v725_v59  ;;  %7293 = vmatprep.mubr.f32.mxu1 %v8899_v24  ;;  %v793_v59 = vand.u32 4294901760, %v8993_v33 }
  0x4c   : > { %7237 = vmatprep.mubr.f32.mxu0 %v735_v9  ;;  %v775_v9 = vand.u32 4294901760, %v774_v51  ;;  %v12525_v51 = vand.u32 4294901760, %v8642_v39 }
  0x4d   : > { %v794_v34 = vsub.f32 %v8993_v33, %v793_v59 }
  0x4e   : > { %7294 = vmatmul.mubr.f32.gmra.mxu1 %v8922_v42 }
  0x4f   : > { %7238 = vmatmul.mubr.f32.gmra.mxu0 %v745_v18  ;;  %7296 = vmatprep.mubr.f32.mxu1 %v8927_v50  ;;  %v785_v18 = vand.u32 4294901760, %v784_v29  ;;  %v795_v10 = vand.u32 4294901760, %v794_v34  ;;  %v12526_v29 = vand.u32 4294901760, %v8651_v43  ;;  %v12572_v34 = vld [vmem:[#allocation16_spill] sm:$0xff] }
  0x50   : > { %7240 = vmatprep.mubr.f32.mxu0 %v755_v8  ;;  %v805_v8 = vand.u32 4294901760, %v804_v38 }
  0x52   : > { %7297 = vmatmul.mubr.f32.gmra.mxu1 %v8946_v40 }
  0x53   : > { %7241 = vmatmul.mubr.f32.gmra.mxu0 %v765_v0  ;;  %7299 = vmatprep.mubr.f32.mxu1 %v8951_v21  ;;  %v12528_v0 = vand.u32 4294901760, %v8662_v48 }
  0x54   : > { %7243 = vmatprep.mubr.f32.mxu0 %v775_v9 }
  0x56   : > { %7300 = vmatmul.mubr.f32.gmra.mxu1 %v8968_v47 }
  0x57   : > { %7244 = vmatmul.mubr.f32.gmra.mxu0 %v785_v18  ;;  %7302 = vmatprep.mubr.f32.mxu1 %v8974_v57  ;;  %v12573_v18 = vld [vmem:[#allocation17_spill] sm:$0xff] }
  0x58   : > { %7246 = vmatprep.mubr.f32.mxu0 %v795_v10  ;;  %v12527_v10 = vand.u32 4294901760, %v8654_v44 }
  0x5a   : > { %7303 = vmatmul.mubr.f32.gmra.mxu1 %v8986_v22 }
  0x5b   : > { %7247 = vmatmul.mubr.f32.gmra.mxu0 %v805_v8  ;;  %7369 = vmatprep.mubr.f32.mxu1 %v12525_v51  ;;  %v2285_v51 = vld [vmem:[%s12088_s3 + $0x68] sm:$0xff] }
  0x5c   : > { %7313 = vmatprep.mubr.f32.mxu0 %v8642_v39  ;;  %v12529_v39 = vand.u32 4294901760, %v8669_v53 }
  0x5e   : > { %7370 = vmatmul.mubr.f32.vlgmr.msra.gmra.mxu1 %v12526_v29 }
  0x5f   : > { %7314 = vmatmul.mubr.f32.vlgmr.msra.gmra.mxu0 %v8651_v43  ;;  %7474 = vmatpush3.msra.mxu1 %v8562_v3  ;;  %v12530_v3 = vand.u32 4294901760, %v8672_v54  ;;  %v12537_v43 = vand.u32 4294901760, %v8769_v27 }
  0x60   : > { %7418 = vmatpush3.msra.mxu0 %v8590_v12  ;;  %7316 = vmatprep.mubr.f32.mxu0 %v8654_v44  ;;  %v12531_v12 = vand.u32 4294901760, %v8695_v2  ;;  %v12539_v44 = vand.u32 4294901760, %v8787_v49 }
  0x61   : > { %7372 = vmatprep.mubr.f32.mxu1 %v12527_v10  ;;  %7419 = vmatprep.subr.mxu0 %v8594_v13 }
  0x62   : > { %7373 = vmatmul.mubr.f32.gmra.mxu1 %v12528_v0  ;;  %7420 = vmatpush3.msra.mxu0 %v8594_v13  ;;  %v12533_v13 = vand.u32 4294901760, %v8729_v41  ;;  %v9200_v0 = vand.u32 4294901760, %v2285_v51 }
  0x63   : > { %7317 = vmatmul.mubr.f32.gmra.mxu0 %v8662_v48  ;;  %7375 = vmatprep.mubr.f32.mxu1 %v12529_v39  ;;  %v12540_v48 = vand.u32 4294901760, %v8808_v19  ;;  %v12577_v39 = vld [vmem:[#allocation18_spill] sm:$0xff] }
  0x64   : > { %7319 = vmatprep.mubr.f32.mxu0 %v8669_v53  ;;  %7475 = vmatprep.subr.mxu1 %v8564_v4  ;;  %v12541_v53 = vand.u32 4294901760, %v8822_v56 }
  0x65   : > { %7476 = vmatpush3.msra.mxu1 %v8564_v4  ;;  %7421 = vmatprep.subr.mxu0 %v8597_v14  ;;  %v12532_v4 = vand.u32 4294901760, %v8698_v6 }
  0x66   : > { %7376 = vmatmul.mubr.f32.gmra.mxu1 %v12530_v3  ;;  %7422 = vmatpush3.msra.mxu0 %v8597_v14  ;;  %v12535_v14 = vand.u32 4294901760, %v8749_v1  ;;  %v12578_v3 = vld [vmem:[#allocation19_spill] sm:$0xff] }
  0x67   : > { %7320 = vmatmul.mubr.f32.gmra.mxu0 %v8672_v54  ;;  %7378 = vmatprep.mubr.f32.mxu1 %v12531_v12  ;;  %v12542_v54 = vand.u32 4294901760, %v8845_v23 }
  0x68   : > { %7322 = vmatprep.mubr.f32.mxu0 %v8695_v2  ;;  %7477 = vmatprep.subr.mxu1 %v8566_v5  ;;  %v12543_v2 = vand.u32 4294901760, %v8853_v26 }
  0x69   : > { %7478 = vmatpush3.msra.mxu1 %v8566_v5  ;;  %7423 = vmatprep.subr.mxu0 %v8602_v15  ;;  %v12534_v5 = vand.u32 4294901760, %v8742_v60 }
  0x6a   : > { %7379 = vmatmul.mubr.f32.gmra.mxu1 %v12532_v4  ;;  %7424 = vmatpush3.msra.mxu0 %v8602_v15  ;;  %v12536_v15 = vand.u32 4294901760, %v8758_v20  ;;  %v9208_v4 = vsub.f32 %v2285_v51, %v9200_v0 }
  0x6b   : > { %7323 = vmatmul.mubr.f32.gmra.mxu0 %v8698_v6  ;;  %7381 = vmatprep.mubr.f32.mxu1 %v12533_v13  ;;  %v12544_v6 = vand.u32 4294901760, %v8872_v36  ;;  %v2284_v13 = vld [vmem:[%s12088_s3 + $0x60] sm:$0xff] }
  0x6c   : > { %7325 = vmatprep.mubr.f32.mxu0 %v8729_v41  ;;  %7479 = vmatprep.subr.mxu1 %v8571_v7  ;;  %v12545_v41 = vand.u32 4294901760, %v8880_v16 }
  0x6d   : > { %7480 = vmatpush3.msra.mxu1 %v8571_v7  ;;  %v12538_v7 = vand.u32 4294901760, %v8777_v30 }
  0x6e   : > { %7382 = vmatmul.mubr.f32.gmra.mxu1 %v12534_v5 }
  0x6f   : > { %7326 = vmatmul.mubr.f32.gmra.mxu0 %v8742_v60  ;;  %7384 = vmatprep.mubr.f32.mxu1 %v12535_v14  ;;  %v12547_v60 = vand.u32 4294901760, %v8889_v25  ;;  %v9216_v14 = vand.u32 4294901760, %v9208_v4 }
  0x70   : > { %7328 = vmatprep.mubr.f32.mxu0 %v8749_v1  ;;  %v12548_v1 = vand.u32 4294901760, %v8912_v63 }
  0x72   : > { %7385 = vmatmul.mubr.f32.gmra.mxu1 %v12536_v15  ;;  %v9218_v15 = vand.u32 4294901760, %v2284_v13 }
  0x73   : > { %7329 = vmatmul.mubr.f32.gmra.mxu0 %v8758_v20  ;;  %7387 = vmatprep.mubr.f32.mxu1 %v12537_v43  ;;  %v12552_v20 = vand.u32 4294901760, %v8966_v45  ;;  %v12582_v43 = vld [vmem:[#allocation20_spill] sm:$0xff] }
  0x74   : > { %7331 = vmatprep.mubr.f32.mxu0 %v8769_v27  ;;  %v12556_v27 = vld [vmem:[#allocation4_spill] sm:$0xff] }
  0x76   : > { %7388 = vmatmul.mubr.f32.gmra.mxu1 %v12538_v7  ;;  %v2714_v7 = vsub.f32 %v9208_v4, %v9216_v14 }
  0x77   : > { %7332 = vmatmul.mubr.f32.gmra.mxu0 %v8777_v30  ;;  %7390 = vmatprep.mubr.f32.mxu1 %v12539_v44  ;;  %v12557_v30 = vld [vmem:[#allocation5_spill] sm:$0xff]  ;;  %v9227_v44 = vsub.f32 %v2284_v13, %v9218_v15 }
  0x78   : > { %7334 = vmatprep.mubr.f32.mxu0 %v8787_v49  ;;  %v12558_v49 = vld [vmem:[#allocation6_spill] sm:$0xff] }
  0x7a   : > { %7391 = vmatmul.mubr.f32.gmra.mxu1 %v12540_v48  ;;  %v2283_v48 = vld [vmem:[%s12088_s3 + $0x58] sm:$0xff] }
  0x7b   : > { %7335 = vmatmul.mubr.f32.gmra.mxu0 %v8808_v19  ;;  %7393 = vmatprep.mubr.f32.mxu1 %v12541_v53  ;;  %v12551_v19 = vand.u32 4294901760, %v8949_v35  ;;  %v2715_v53 = vand.u32 4294901760, %v2714_v7 }
  0x7c   : > { %7337 = vmatprep.mubr.f32.mxu0 %v8822_v56  ;;  %v12546_v56 = vand.u32 4294901760, %v8886_v17 }
  0x7e   : > { %7394 = vmatmul.mubr.f32.gmra.mxu1 %v12542_v54  ;;  %v9237_v54 = vand.u32 4294901760, %v2283_v48 }
  0x7f   : > { %7338 = vmatmul.mubr.f32.gmra.mxu0 %v8845_v23  ;;  %7396 = vmatprep.mubr.f32.mxu1 %v12543_v2  ;;  %v12560_v23 = vld [vmem:[#allocation8_spill] sm:$0xff]  ;;  %v12586_v2 = vld [vmem:[#allocation21_spill] sm:$0xff] }
  0x80   : > { %7340 = vmatprep.mubr.f32.mxu0 %v8853_v26  ;;  %v12553_v26 = vand.u32 4294901760, %v8984_v62  ;;  %12576 = vst [vmem:[#allocation8_spill] sm:$0xff] %v9200_v0 }
  0x82   : > { %7397 = vmatmul.mubr.f32.gmra.mxu1 %v12544_v6 }
  0x83   : > { %7341 = vmatmul.mubr.f32.gmra.mxu0 %v8872_v36  ;;  %7399 = vmatprep.mubr.f32.mxu1 %v12545_v41  ;;  %v12549_v36 = vand.u32 4294901760, %v8920_v11  ;;  %v9246_v41 = vsub.f32 %v2283_v48, %v9237_v54 }
  0x84   : > { %7343 = vmatprep.mubr.f32.mxu0 %v8880_v16  ;;  %v12550_v16 = vand.u32 4294901760, %v8944_v52 }
  0x86   : > { %7400 = vmatmul.mubr.f32.gmra.mxu1 %v12546_v56  ;;  %v2282_v56 = vld [vmem:[%s12088_s3 + $0x50] sm:$0xff] }
  0x87   : > { %7344 = vmatmul.mubr.f32.gmra.mxu0 %v8886_v17  ;;  %7402 = vmatprep.mubr.f32.mxu1 %v12547_v60  ;;  %v12562_v17 = vld [vmem:[#allocation10_spill] sm:$0xff] }
  0x88   : > { %7346 = vmatprep.mubr.f32.mxu0 %v8889_v25  ;;  %v12563_v25 = vld [vmem:[#allocation11_spill] sm:$0xff]  ;;  %12580 = vst [vmem:[#allocation10_spill] sm:$0xff] %v9216_v14 }
  0x89   : > { %12581 = vst [vmem:[#allocation11_spill] sm:$0xff] %v9218_v15 }
  0x8a   : > { %7403 = vmatmul.mubr.f32.gmra.mxu1 %v12548_v1  ;;  %v9256_v1 = vand.u32 4294901760, %v2282_v56 }
  0x8b   : > { %7347 = vmatmul.mubr.f32.gmra.mxu0 %v8912_v63  ;;  %7405 = vmatprep.mubr.f32.mxu1 %v12549_v36  ;;  %v12565_v63 = vld [vmem:[#allocation13_spill] sm:$0xff] }
  0x8c   : > { %7349 = vmatprep.mubr.f32.mxu0 %v8920_v11  ;;  %v12564_v11 = vld [vmem:[#allocation12_spill] sm:$0xff]  ;;  %12589 = vst [vmem:[#allocation17_spill] sm:$0xff] %v9256_v1 }
  0x8d   : > { %12583 = vst [vmem:[#allocation12_spill] sm:$0xff] %v9227_v44 }
  0x8e   : > { %7406 = vmatmul.mubr.f32.gmra.mxu1 %v12550_v16  ;;  %v9265_v16 = vsub.f32 %v2282_v56, %v9256_v1 }
  0x8f   : > { %7350 = vmatmul.mubr.f32.gmra.mxu0 %v8944_v52  ;;  %7408 = vmatprep.mubr.f32.mxu1 %v12551_v19  ;;  %v12555_v52 = vld [vmem:[#allocation3_spill] sm:$0xff] }
  0x90   : > { %7352 = vmatprep.mubr.f32.mxu0 %v8949_v35  ;;  %v12554_v35 = vld [vmem:[#allocation2_spill] sm:$0xff]  ;;  %12590 = vst [vmem:[#allocation18_spill] sm:$0xff] %v9265_v16  ;;  %v2281_v19 = vld [vmem:[%s12088_s3 + $0x48] sm:$0xff] }
  0x92   : > { %7409 = vmatmul.mubr.f32.gmra.mxu1 %v12552_v20 }
  0x93   : > { %7353 = vmatmul.mubr.f32.gmra.mxu0 %v8966_v45  ;;  %7411 = vmatprep.mubr.f32.mxu1 %v773_v55 }
  0x94   : > { %7355 = vmatprep.mubr.f32.mxu0 %v8972_v58  ;;  %v12568_v58 = vld [vmem:[#allocation15_spill] sm:$0xff] }
  0x95   : > { %12587 = vst [vmem:[#allocation15_spill] sm:$0xff] %v9246_v41 }
  0x96   : > { %7412 = vmatmul.mubr.f32.gmra.mxu1 %v12553_v26  ;;  %v9275_v26 = vand.u32 4294901760, %v2281_v19 }
  0x97   : > { %7356 = vmatmul.mubr.f32.gmra.mxu0 %v8984_v62  ;;  %7414 = vmatprep.mubr.f32.mxu1 %v793_v59  ;;  %v12567_v62 = vld [vmem:[#allocation14_spill] sm:$0xff]  ;;  %v2286_v59 = vld [vmem:[%s12088_s3 + $0x70] sm:$0xff] }
  0x98   : > { %7358 = vmatprep.mubr.f32.mxu0 %v8993_v33  ;;  %v12561_v33 = vld [vmem:[#allocation9_spill] sm:$0xff]  ;;  %v9181_v9 = vand.u32 4294901760, %v2286_v59  ;;  %12585 = vst [vmem:[#allocation14_spill] sm:$0xff] %v9237_v54  ;;  %12592 = vst [vmem:[#allocation20_spill] sm:$0xff] %v9275_v26 }
  0x99   : > { %12579 = vst [vmem:[#allocation9_spill] sm:$0xff] %v9208_v4 }
  0x9a   : > { %7415 = vmatmul.mubr.f32.gmra.mxu1 %v803_v28  ;;  %12571 = vst [vmem:[#allocation5_spill] sm:$0xff] %v9181_v9  ;;  %v9189_v8 = vsub.f32 %v2286_v59, %v9181_v9  ;;  %v2276_v59 = vld [vmem:[%s12088_s3 + $0x20] sm:$0xff] }
  0x9b   : > { %7359 = vmatmul.mubr.f32.gmra.mxu0 %v9002_v46  ;;  %7481 = vmatprep.mubr.f32.mxu1 %v8631_v32  ;;  %v2287_v46 = vld [vmem:[%s12088_s3 + $0x78] sm:$0xff]  ;;  %v9348_v51 = vand.u32 4294901760, %v2276_v59 }
  0x9c   : > { %7425 = vmatprep.mubr.f32.mxu0 %v8631_v32  ;;  %v12559_v32 = vld [vmem:[#allocation7_spill] sm:$0xff]  ;;  %v9164_v45 = vand.u32 4294901760, %v2287_v46  ;;  %12574 = vst [vmem:[#allocation6_spill] sm:$0xff] %v9189_v8  ;;  %v9198_v10 = vand.u32 4294901760, %v9189_v8 }
  0x9d   : > { %12605 = vst [vmem:[#allocation33_spill] sm:$0xff] %v9348_v51 }
  0x9e   : > { %7482 = vmatmul.mubr.f32.vlgmr.msra.gmra.mxu1 %v12554_v35  ;;  %12566 = vst [vmem:[#allocation2_spill] sm:$0xff] %v9164_v45  ;;  %v9170_v55 = vsub.f32 %v2287_v46, %v9164_v45  ;;  %7529 = vmatprep.subr.mxu0 %v9164_v45  ;;  %12575 = vst [vmem:[#allocation7_spill] sm:$0xff] %v9198_v10  ;;  %v2707_v12 = vsub.f32 %v9189_v8, %v9198_v10 }
  0x9f   : > { %7426 = vmatmul.mubr.f32.vlgmr.msra.gmra.mxu0 %v12554_v35  ;;  %7484 = vmatprep.mubr.f32.mxu1 %v12555_v52 }
  0xa0   : > { %7428 = vmatprep.mubr.f32.mxu0 %v12555_v52  ;;  %12569 = vst [vmem:[#allocation3_spill] sm:$0xff] %v9170_v55  ;;  %7530 = vmatpush3.msra.mxu0 %v9164_v45  ;;  %v9179_v28 = vand.u32 4294901760, %v9170_v55  ;;  %v2708_v5 = vand.u32 4294901760, %v2707_v12  ;;  %v9287_v52 = vsub.f32 %v2281_v19, %v9275_v26  ;;  %v9361_v12 = vsub.f32 %v2276_v59, %v9348_v51 }
  0xa1   : > { %7531 = vmatprep.subr.mxu0 %v9181_v9 }
  0xa2   : > { %7485 = vmatmul.mubr.f32.gmra.mxu1 %v12556_v27  ;;  %12570 = vst [vmem:[#allocation4_spill] sm:$0xff] %v9179_v28  ;;  %v2700_v38 = vsub.f32 %v9170_v55, %v9179_v28  ;;  %7532 = vmatpush3.msra.mxu0 %v9181_v9  ;;  %12593 = vst [vmem:[#allocation21_spill] sm:$0xff] %v9287_v52  ;;  %v9374_v7 = vand.u32 4294901760, %v9361_v12 }
  0xa3   : > { %7429 = vmatmul.mubr.f32.gmra.mxu0 %v12556_v27  ;;  %7487 = vmatprep.mubr.f32.mxu1 %v12557_v30  ;;  %12607 = vst [vmem:[#allocation35_spill] sm:$0xff] %v9361_v12 }
  0xa4   : > { %7431 = vmatprep.mubr.f32.mxu0 %v12557_v30  ;;  %v2701_v29 = vand.u32 4294901760, %v2700_v38  ;;  %7533 = vmatprep.subr.mxu0 %v9200_v0  ;;  %v2279_v30 = vld [vmem:[%s12088_s3 + $0x38] sm:$0xff]  ;;  %12610 = vst [vmem:[#allocation38_spill] sm:$0xff] %v9374_v7 }
  0xa5   : > { %7534 = vmatpush3.msra.mxu0 %v9200_v0 }
  0xa6   : > { %7488 = vmatmul.mubr.f32.gmra.mxu1 %v12558_v49  ;;  %7609 = vmatprep.subr.mxu1 %v2701_v29 }
  0xa7   : > { %7432 = vmatmul.mubr.f32.gmra.mxu0 %v12558_v49  ;;  %7490 = vmatprep.mubr.f32.mxu1 %v12559_v32 }
  0xa8   : > { %7434 = vmatprep.mubr.f32.mxu0 %v12559_v32  ;;  %7610 = vmatpush3.msra.mxu1 %v2701_v29 }
  0xa9   : > { %7611 = vmatprep.subr.mxu1 %v2708_v5  ;;  %7535 = vmatprep.subr.mxu0 %v9218_v15 }
  0xaa   : > { %7491 = vmatmul.mubr.f32.gmra.mxu1 %v12560_v23  ;;  %7536 = vmatpush3.msra.mxu0 %v9218_v15 }
  0xab   : > { %7435 = vmatmul.mubr.f32.gmra.mxu0 %v12560_v23  ;;  %7493 = vmatprep.mubr.f32.mxu1 %v12561_v33  ;;  %v9302_v23 = vand.u32 4294901760, %v2279_v30 }
  0xac   : > { %7437 = vmatprep.mubr.f32.mxu0 %v12561_v33  ;;  %7612 = vmatpush3.msra.mxu1 %v2708_v5  ;;  %v2274_v5 = vld [vmem:[%s12088_s3 + $0x10] sm:$0xff] }
  0xad   : > { %7613 = vmatprep.subr.mxu1 %v2715_v53  ;;  %7537 = vmatprep.subr.mxu0 %v9237_v54  ;;  %12597 = vst [vmem:[#allocation25_spill] sm:$0xff] %v9302_v23 }
  0xae   : > { %7494 = vmatmul.mubr.f32.gmra.mxu1 %v12562_v17  ;;  %7538 = vmatpush3.msra.mxu0 %v9237_v54 }
  0xaf   : > { %7438 = vmatmul.mubr.f32.gmra.mxu0 %v12562_v17  ;;  %7496 = vmatprep.mubr.f32.mxu1 %v12563_v25 }
  0xb0   : > { %7440 = vmatprep.mubr.f32.mxu0 %v12563_v25  ;;  %7614 = vmatpush3.msra.mxu1 %v2715_v53  ;;  %v9317_v25 = vsub.f32 %v2279_v30, %v9302_v23  ;;  %v9379_v53 = vand.u32 4294901760, %v2274_v5 }
  0xb1   : > { %7539 = vmatprep.subr.mxu0 %v9256_v1 }
  0xb2   : > { %7497 = vmatmul.mubr.f32.gmra.mxu1 %v12564_v11  ;;  %7540 = vmatpush3.msra.mxu0 %v9256_v1  ;;  %12599 = vst [vmem:[#allocation27_spill] sm:$0xff] %v9317_v25  ;;  %12612 = vst [vmem:[#allocation40_spill] sm:$0xff] %v9379_v53 }
  0xb3   : > { %7441 = vmatmul.mubr.f32.gmra.mxu0 %v12564_v11  ;;  %7499 = vmatprep.mubr.f32.mxu1 %v12565_v63 }
  0xb4   : > { %7443 = vmatprep.mubr.f32.mxu0 %v12565_v63  ;;  %7541 = vmatprep.subr.mxu0 %v9275_v26 }
  0xb5   : > { %7542 = vmatpush3.msra.mxu0 %v9275_v26 }
  0xb6   : > { %7500 = vmatmul.mubr.f32.gmra.mxu1 %v12567_v62 }
  0xb7   : > { %7444 = vmatmul.mubr.f32.gmra.mxu0 %v12567_v62  ;;  %7502 = vmatprep.mubr.f32.mxu1 %v12568_v58  ;;  %v9329_v62 = vand.u32 4294901760, %v9317_v25 }
  0xb8   : > { %7446 = vmatprep.mubr.f32.mxu0 %v12568_v58 }
  0xb9   : > { %12601 = vst [vmem:[#allocation29_spill] sm:$0xff] %v9329_v62 }
  0xba   : > { %7503 = vmatmul.mubr.f32.gmra.mxu1 %v12572_v34 }
  0xbb   : > { %7447 = vmatmul.mubr.f32.gmra.mxu0 %v12572_v34  ;;  %7505 = vmatprep.mubr.f32.mxu1 %v12573_v18 }
  0xbc   : > { %7449 = vmatprep.mubr.f32.mxu0 %v12573_v18  ;;  %v2756_v18 = vsub.f32 %v9317_v25, %v9329_v62 }
  0xbe   : > { %7506 = vmatmul.mubr.f32.gmra.mxu1 %v12577_v39 }
  0xbf   : > { %7450 = vmatmul.mubr.f32.gmra.mxu0 %v12577_v39  ;;  %7508 = vmatprep.mubr.f32.mxu1 %v12578_v3  ;;  %v2757_v39 = vand.u32 4294901760, %v2756_v18 }
  0xc0   : > { %7452 = vmatprep.mubr.f32.mxu0 %v12578_v3 }
  0xc2   : > { %7509 = vmatmul.mubr.f32.gmra.mxu1 %v8847_v31 }
  0xc3   : > { %7453 = vmatmul.mubr.f32.gmra.mxu0 %v8847_v31  ;;  %7511 = vmatprep.mubr.f32.mxu1 %v12582_v43  ;;  %v9235_v31 = vand.u32 4294901760, %v9227_v44 }
  0xc4   : > { %7455 = vmatprep.mubr.f32.mxu0 %v12582_v43 }
  0xc5   : > { %12584 = vst [vmem:[#allocation13_spill] sm:$0xff] %v9235_v31  ;;  %v2721_v6 = vsub.f32 %v9227_v44, %v9235_v31 }
  0xc6   : > { %7512 = vmatmul.mubr.f32.gmra.mxu1 %v8862_v61 }
  0xc7   : > { %7456 = vmatmul.mubr.f32.gmra.mxu0 %v8862_v61  ;;  %7514 = vmatprep.mubr.f32.mxu1 %v12586_v2  ;;  %v2722_v60 = vand.u32 4294901760, %v2721_v6  ;;  %v9254_v61 = vand.u32 4294901760, %v9246_v41  ;;  %v2777_v6 = vsub.f32 %v9361_v12, %v9374_v7 }
  0xc8   : > { %7458 = vmatprep.mubr.f32.mxu0 %v12586_v2 }
  0xc9   : > { %12588 = vst [vmem:[#allocation16_spill] sm:$0xff] %v9254_v61  ;;  %v2728_v36 = vsub.f32 %v9246_v41, %v9254_v61  ;;  %7615 = vmatprep.subr.mxu1 %v2722_v60  ;;  %v2778_v30 = vand.u32 4294901760, %v2777_v6 }
  0xca   : > { %7515 = vmatmul.mubr.f32.gmra.mxu1 %v8891_v37 }
  0xcb   : > { %7459 = vmatmul.mubr.f32.gmra.mxu0 %v8891_v37  ;;  %7517 = vmatprep.mubr.f32.mxu1 %v8899_v24  ;;  %v2729_v20 = vand.u32 4294901760, %v2728_v36  ;;  %v9273_v37 = vand.u32 4294901760, %v9265_v16  ;;  %v2273_v36 = vld [vmem:[%s12088_s3 + $0x8] sm:$0xff] }
  0xcc   : > { %7461 = vmatprep.mubr.f32.mxu0 %v8899_v24  ;;  %7616 = vmatpush3.msra.mxu1 %v2722_v60  ;;  %v2280_v24 = vld [vmem:[%s12088_s3 + $0x40] sm:$0xff]  ;;  %v9396_v60 = vsub.f32 %v2274_v5, %v9379_v53 }
  0xcd   : > { %12591 = vst [vmem:[#allocation19_spill] sm:$0xff] %v9273_v37  ;;  %v2735_v35 = vsub.f32 %v9265_v16, %v9273_v37  ;;  %v9289_v27 = vand.u32 4294901760, %v2280_v24  ;;  %7617 = vmatprep.subr.mxu1 %v2729_v20 }
  0xce   : > { %7518 = vmatmul.mubr.f32.gmra.mxu1 %v8922_v42  ;;  %12614 = vst [vmem:[#allocation42_spill] sm:$0xff] %v9396_v60 }
  0xcf   : > { %7462 = vmatmul.mubr.f32.gmra.mxu0 %v8922_v42  ;;  %7520 = vmatprep.mubr.f32.mxu1 %v8927_v50  ;;  %12594 = vst [vmem:[#allocation22_spill] sm:$0xff] %v9289_v27  ;;  %v2736_v49 = vand.u32 4294901760, %v2735_v35  ;;  %v9297_v42 = vand.u32 4294901760, %v9287_v52  ;;  %v9300_v32 = vsub.f32 %v2280_v24, %v9289_v27  ;;  %v9402_v24 = vand.u32 4294901760, %v2273_v36 }
  0xd0   : > { %7464 = vmatprep.mubr.f32.mxu0 %v8927_v50  ;;  %7618 = vmatpush3.msra.mxu1 %v2729_v20  ;;  %v2278_v50 = vld [vmem:[%s12088_s3 + $0x30] sm:$0xff] }
  0xd1   : > { %12595 = vst [vmem:[#allocation23_spill] sm:$0xff] %v9297_v42  ;;  %12596 = vst [vmem:[#allocation24_spill] sm:$0xff] %v9300_v32  ;;  %v2742_v33 = vsub.f32 %v9287_v52, %v9297_v42  ;;  %v9314_v17 = vand.u32 4294901760, %v9300_v32  ;;  %v9319_v11 = vand.u32 4294901760, %v2278_v50  ;;  %7619 = vmatprep.subr.mxu1 %v2736_v49  ;;  %7543 = vmatprep.subr.mxu0 %v9289_v27 }
  0xd2   : > { %7521 = vmatmul.mubr.f32.gmra.mxu1 %v8946_v40  ;;  %7544 = vmatpush3.msra.mxu0 %v9289_v27  ;;  %12615 = vst [vmem:[#allocation43_spill] sm:$0xff] %v9402_v24 }
  0xd3   : > { %7465 = vmatmul.mubr.f32.gmra.mxu0 %v8946_v40  ;;  %7523 = vmatprep.mubr.f32.mxu1 %v8951_v21  ;;  %12598 = vst [vmem:[#allocation26_spill] sm:$0xff] %v9314_v17  ;;  %12600 = vst [vmem:[#allocation28_spill] sm:$0xff] %v9319_v11  ;;  %v2277_v40 = vld [vmem:[%s12088_s3 + $0x28] sm:$0xff]  ;;  %v2743_v63 = vand.u32 4294901760, %v2742_v33  ;;  %v2749_v46 = vsub.f32 %v9300_v32, %v9314_v17  ;;  %v9332_v58 = vsub.f32 %v2278_v50, %v9319_v11  ;;  %v2272_v33 = vld [vmem:[%s12088_s3] sm:$0xff] }
  0xd4   : > { %7467 = vmatprep.mubr.f32.mxu0 %v8951_v21  ;;  %7620 = vmatpush3.msra.mxu1 %v2736_v49  ;;  %v9336_v21 = vand.u32 4294901760, %v2277_v40  ;;  %v9408_v50 = vand.u32 4294901760, %v9396_v60  ;;  %v9420_v59 = vand.u32 4294901760, %v2272_v33 }
  0xd5   : > { %12602 = vst [vmem:[#allocation30_spill] sm:$0xff] %v9332_v58  ;;  %v2750_v34 = vand.u32 4294901760, %v2749_v46  ;;  %v9346_v38 = vand.u32 4294901760, %v9332_v58  ;;  %7621 = vmatprep.subr.mxu1 %v2743_v63  ;;  %7545 = vmatprep.subr.mxu0 %v9302_v23  ;;  %v9418_v46 = vsub.f32 %v2273_v36, %v9402_v24 }
  0xd6   : > { %7524 = vmatmul.mubr.f32.gmra.mxu1 %v8968_v47  ;;  %12603 = vst [vmem:[#allocation31_spill] sm:$0xff] %v9336_v21  ;;  %v9352_v29 = vsub.f32 %v2277_v40, %v9336_v21  ;;  %7546 = vmatpush3.msra.mxu0 %v9302_v23  ;;  %12616 = vst [vmem:[#allocation44_spill] sm:$0xff] %v9408_v50 }
  0xd7   : > { %7468 = vmatmul.mubr.f32.gmra.mxu0 %v8968_v47  ;;  %7526 = vmatprep.mubr.f32.mxu1 %v8974_v57  ;;  %12604 = vst [vmem:[#allocation32_spill] sm:$0xff] %v9346_v38  ;;  %v2275_v47 = vld [vmem:[%s12088_s3 + $0x18] sm:$0xff]  ;;  %v2763_v3 = vsub.f32 %v9332_v58, %v9346_v38  ;;  %12617 = vst [vmem:[#allocation45_spill] sm:$0xff] %v9418_v46  ;;  %v9431_v5 = vand.u32 4294901760, %v9418_v46 }
  0xd8   : > { %7470 = vmatprep.mubr.f32.mxu0 %v8974_v57  ;;  %12606 = vst [vmem:[#allocation34_spill] sm:$0xff] %v9352_v29  ;;  %7622 = vmatpush3.msra.mxu1 %v2743_v63  ;;  %v9363_v13 = vand.u32 4294901760, %v2275_v47  ;;  %v9367_v57 = vand.u32 4294901760, %v9352_v29  ;;  %12618 = vst [vmem:[#allocation46_spill] sm:$0xff] %v9420_v59 }
  0xd9   : > { %7623 = vmatprep.subr.mxu1 %v2750_v34  ;;  %v2764_v43 = vand.u32 4294901760, %v2763_v3  ;;  %7547 = vmatprep.subr.mxu0 %v9319_v11  ;;  %12619 = vst [vmem:[#allocation47_spill] sm:$0xff] %v9431_v5 }
  0xda   : > { %12608 = vst [vmem:[#allocation36_spill] sm:$0xff] %v9363_v13  ;;  %7527 = vmatmul.mubr.f32.gmra.mxu1 %v8986_v22  ;;  %12609 = vst [vmem:[#allocation37_spill] sm:$0xff] %v9367_v57  ;;  %v9377_v48 = vsub.f32 %v2275_v47, %v9363_v13  ;;  %v2770_v2 = vsub.f32 %v9352_v29, %v9367_v57  ;;  %7548 = vmatpush3.msra.mxu0 %v9319_v11 }
  0xdb   : > { %7471 = vmatmul.mubr.f32.gmra.mxu0 %v8986_v22  ;;  %7624 = vmatpush3.msra.mxu1 %v2750_v34  ;;  %v9387_v22 = vld [vmem:[%s12087_s2] ss:$0 sm:$0xff]  ;;  %v2791_v47 = vsub.f32 %v9396_v60, %v9408_v50 }
  0xdc   : > { %12611 = vst [vmem:[#allocation39_spill] sm:$0xff] %v9377_v48  ;;  %7625 = vmatprep.subr.mxu1 %v2757_v39  ;;  %v9393_v56 = vand.u32 4294901760, %v9377_v48  ;;  %v2771_v20 = vand.u32 4294901760, %v2770_v2  ;;  %7549 = vmatprep.subr.mxu0 %v9336_v21 }
  0xdd   : > { %7626 = vmatpush3.msra.mxu1 %v2757_v39  ;;  %7550 = vmatpush3.msra.mxu0 %v9336_v21  ;;  %v2792_v6 = vand.u32 4294901760, %v2791_v47 }
  0xde   : > { %12613 = vst [vmem:[#allocation41_spill] sm:$0xff] %v9393_v56  ;;  %v7259_v19 = vpop.f32.mrf.mxu1  ;;  %7627 = vmatprep.subr.mxu1 %v2764_v43  ;;  %v2784_v49 = vsub.f32 %v9377_v48, %v9393_v56  ;;  %7551 = vmatprep.subr.mxu0 %v9348_v51 }
  0xdf   : > { %v7203_v35 = vpop.f32.mrf.mxu0  ;;  %7628 = vmatpush3.msra.mxu1 %v2764_v43  ;;  %7552 = vmatpush3.msra.mxu0 %v9348_v51  ;;  %v9434_v43 = vsub.f32 %v2272_v33, %v9420_v59 }
  0xe0   : > { %v508_v40 = vadd.f32 %v7203_v35, %v9387_v22  ;;  %v9414_v63 = vpop.f32.mrf.mxu1  ;;  %7629 = vmatprep.subr.mxu1 %v2771_v20  ;;  %v2785_v18 = vand.u32 4294901760, %v2784_v49  ;;  %7553 = vmatprep.subr.mxu0 %v9363_v13 }
  0xe1   : > { %v9422_v34 = vpop.f32.mrf.mxu0  ;;  %7630 = vmatpush3.msra.mxu1 %v2771_v20  ;;  %12620 = vst [vmem:[#allocation48_spill] sm:$0xff] %v9434_v43  ;;  %7554 = vmatpush3.msra.mxu0 %v9363_v13  ;;  %v9444_v35 = vand.u32 4294901760, %v9434_v43 }
  0xe2   : > { %v9427_v39 = vadd.f32 %v7259_v19, %v508_v40  ;;  %v7262_v3 = vpop.f32.mrf.mxu1  ;;  %7631 = vmatprep.subr.mxu1 %v2778_v30  ;;  %v2798_v19 = vsub.f32 %v9418_v46, %v9431_v5  ;;  %7555 = vmatprep.subr.mxu0 %v9379_v53 }
  0xe3   : > { %v7206_v2 = vpop.f32.mrf.mxu0  ;;  %7632 = vmatpush3.msra.mxu1 %v2778_v30  ;;  %12621 = vst [vmem:[#allocation49_spill] sm:$0xff] %v9444_v35  ;;  %7556 = vmatpush3.msra.mxu0 %v9379_v53  ;;  %v2805_v47 = vsub.f32 %v9434_v43, %v9444_v35 }
  0xe4   : > { %v528_v36 = vadd.f32 %v7206_v2, %v9387_v22  ;;  %v9438_v20 = vpop.f32.mrf.mxu1  ;;  %7633 = vmatprep.subr.mxu1 %v2785_v18  ;;  %v2799_v40 = vand.u32 4294901760, %v2798_v19  ;;  %7557 = vmatprep.subr.mxu0 %v9402_v24 }
  0xe5   : > { %v9446_v49 = vpop.f32.mrf.mxu0  ;;  %7634 = vmatpush3.msra.mxu1 %v2785_v18  ;;  %v2806_v18 = vand.u32 4294901760, %v2805_v47  ;;  %7558 = vmatpush3.msra.mxu0 %v9402_v24 }
  0xe6   : > { %v9449_v30 = vadd.f32 %v7262_v3, %v528_v36  ;;  %v7265_v33 = vpop.f32.mrf.mxu1  ;;  %7635 = vmatprep.subr.mxu1 %v2792_v6  ;;  %7559 = vmatprep.subr.mxu0 %v9420_v59 }
  0xe7   : > { %v7209_v2 = vpop.f32.mrf.mxu0  ;;  %7636 = vmatpush3.msra.mxu1 %v2792_v6  ;;  %7560 = vmatpush3.msra.mxu0 %v9420_v59 }
  0xe8   : > { %v548_v5 = vadd.f32 %v7209_v2, %v9387_v22  ;;  %v9456_v50 = vpop.f32.mrf.mxu1  ;;  %7637 = vmatprep.subr.mxu1 %v2799_v40  ;;  %7689 = vmatprep.subr.mxu0 %v9170_v55 }
  0xe9   : > { %v9459_v3 = vpop.f32.mrf.mxu0  ;;  %7638 = vmatpush3.msra.mxu1 %v2799_v40 }
  0xea   : > { %v9462_v36 = vadd.f32 %v7265_v33, %v548_v5  ;;  %v7268_v19 = vpop.f32.mrf.mxu1  ;;  %7639 = vmatprep.subr.mxu1 %v2806_v18 }
  0xeb   : > { %v7212_v6 = vpop.f32.mrf.mxu0  ;;  %7640 = vmatpush3.msra.mxu1 %v2806_v18 }
  0xec   : > { %v568_v2 = vadd.f32 %v7212_v6, %v9387_v22  ;;  %v9467_v47 = vpop.f32.mrf.mxu1  ;;  %7769 = vmatprep.subr.mxu1 %v9164_v45 }
  0xed   : > { %v9470_v35 = vpop.f32.mrf.mxu0 }
  0xee   : > { %v9472_v40 = vadd.f32 %v7268_v19, %v568_v2  ;;  %v7271_v5 = vpop.f32.mrf.mxu1 }
  0xef   : > { %v7215_v33 = vpop.f32.mrf.mxu0 }
  0xf0   : > { %v588_v56 = vadd.f32 %v7215_v33, %v9387_v22  ;;  %v9475_v7 = vpop.f32.mrf.mxu1 }
  0xf1   : > { %v9477_v57 = vpop.f32.mrf.mxu0 }
  0xf2   : > { %v9479_v18 = vadd.f32 %v7271_v5, %v588_v56  ;;  %v7274_v38 = vpop.f32.mrf.mxu1 }
  0xf3   : > { %v7218_v6 = vpop.f32.mrf.mxu0 }
  0xf4   : > { %v608_v62 = vadd.f32 %v7218_v6, %v9387_v22  ;;  %v9482_v17 = vpop.f32.mrf.mxu1 }
  0xf5   : > { %v9484_v42 = vpop.f32.mrf.mxu0 }
  0xf6   : > { %v9486_v19 = vadd.f32 %v7274_v38, %v608_v62  ;;  %v7277_v2 = vpop.f32.mrf.mxu1 }
  0xf7   : > { %v7221_v37 = vpop.f32.mrf.mxu0 }
  0xf8   : > { %v628_v33 = vadd.f32 %v7221_v37, %v9387_v22  ;;  %v9489_v61 = vpop.f32.mrf.mxu1 }
  0xf9   : > { %v9491_v31 = vpop.f32.mrf.mxu0 }
  0xfa   : > { %v9493_v56 = vadd.f32 %v7277_v2, %v628_v33  ;;  %v7280_v5 = vpop.f32.mrf.mxu1 }
  0xfb   : > { %v7224_v14 = vpop.f32.mrf.mxu0 }
  0xfc   : > { %v648_v6 = vadd.f32 %v7224_v14, %v9387_v22  ;;  %v9496_v10 = vpop.f32.mrf.mxu1 }
  0xfd   : > { %v9498_v28 = vpop.f32.mrf.mxu0 }
  0xfe   : > { %v9500_v62 = vadd.f32 %v7280_v5, %v648_v6  ;;  %v7283_v38 = vpop.f32.mrf.mxu1 }
  0xff   : > { %v7227_v43 = vpop.f32.mrf.mxu0 }
 0x100   : > { %v668_v37 = vadd.f32 %v7227_v43, %v9387_v22  ;;  %v9503_v59 = vpop.f32.mrf.mxu1 }
 0x101   : > { %v9505_v46 = vpop.f32.mrf.mxu0 }
 0x102   : > { %v9507_v2 = vadd.f32 %v7283_v38, %v668_v37  ;;  %v7286_v33 = vpop.f32.mrf.mxu1 }
 0x103   : > { %v7230_v24 = vpop.f32.mrf.mxu0 }
 0x104   : > { %v688_v14 = vadd.f32 %v7230_v24, %v9387_v22  ;;  %v9510_v53 = vpop.f32.mrf.mxu1 }
 0x105   : > { %v9512_v60 = vpop.f32.mrf.mxu0 }
 0x106   : > { %v9514_v5 = vadd.f32 %v7286_v33, %v688_v14  ;;  %v7289_v6 = vpop.f32.mrf.mxu1 }
 0x107   : > { %v7233_v13 = vpop.f32.mrf.mxu0 }
 0x108   : > { %v708_v43 = vadd.f32 %v7233_v13, %v9387_v22  ;;  %v9517_v48 = vpop.f32.mrf.mxu1 }
 0x109   : > { %v9519_v51 = vpop.f32.mrf.mxu0 }
 0x10a   : > { %v9521_v38 = vadd.f32 %v7289_v6, %v708_v43  ;;  %v7292_v37 = vpop.f32.mrf.mxu1 }
 0x10b   : > { %v7236_v12 = vpop.f32.mrf.mxu0 }
 0x10c   : > { %v728_v24 = vadd.f32 %v7236_v12, %v9387_v22  ;;  %v9524_v21 = vpop.f32.mrf.mxu1 }
 0x10d   : > { %v9526_v29 = vpop.f32.mrf.mxu0 }
 0x10e   : > { %v9528_v33 = vadd.f32 %v7292_v37, %v728_v24  ;;  %v7295_v14 = vpop.f32.mrf.mxu1 }
 0x10f   : > { %v7239_v11 = vpop.f32.mrf.mxu0 }
 0x110   : > { %v748_v13 = vadd.f32 %v7239_v11, %v9387_v22  ;;  %v9531_v58 = vpop.f32.mrf.mxu1 }
 0x111   : > { %v9533_v23 = vpop.f32.mrf.mxu0 }
 0x112   : > { %v9535_v6 = vadd.f32 %v7295_v14, %v748_v13  ;;  %v7298_v43 = vpop.f32.mrf.mxu1 }
 0x113   : > { %v7242_v25 = vpop.f32.mrf.mxu0 }
 0x114   : > { %v768_v12 = vadd.f32 %v7242_v25, %v9387_v22  ;;  %v9538_v27 = vpop.f32.mrf.mxu1 }
 0x115   : > { %12622 = vst [vmem:[#allocation50_spill] sm:$0xff] %v9538_v27  ;;  %v9540_v32 = vpop.f32.mrf.mxu0 }
 0x116   : > { %v9542_v37 = vadd.f32 %v7298_v43, %v768_v12  ;;  %v7301_v24 = vpop.f32.mrf.mxu1 }
 0x117   : > { %v7245_v26 = vpop.f32.mrf.mxu0 }
 0x118   : > { %v788_v11 = vadd.f32 %v7245_v26, %v9387_v22  ;;  %v9545_v52 = vpop.f32.mrf.mxu1 }
 0x119   : > { %12623 = vst [vmem:[#allocation51_spill] sm:$0xff] %v9545_v52  ;;  %v9547_v16 = vpop.f32.mrf.mxu0 }
 0x11a   : > { %v9549_v14 = vadd.f32 %v7301_v24, %v788_v11  ;;  %v7304_v13 = vpop.f32.mrf.mxu1 }
 0x11b   : > { %v7248_v41 = vpop.f32.mrf.mxu0 }
 0x11c   : > { %v808_v25 = vadd.f32 %v7248_v41, %v9387_v22  ;;  %v9552_v1 = vpop.f32.mrf.mxu1 }
 0x11d   : > { %12624 = vst [vmem:[#allocation52_spill] sm:$0xff] %v9552_v1  ;;  %v9554_v44 = vpop.f32.mrf.mxu0 }
 0x11e   : > { %v9556_v43 = vadd.f32 %v7304_v13, %v808_v25  ;;  %v9558_v12 = vpop.f32.mrf.mxu1 }
 0x11f   : > { %12625 = vst [vmem:[#allocation53_spill] sm:$0xff] %v9558_v12  ;;  %v9560_v4 = vpop.f32.mrf.mxu0 }
 0x120   : > { %v9562_v26 = vpop.f32.mrf.mxu1 }
 0x121   : > { %12626 = vst [vmem:[#allocation54_spill] sm:$0xff] %v9562_v26  ;;  %v9564_v8 = vpop.f32.mrf.mxu0 }
 0x122   : > { %v9566_v24 = vpop.f32.mrf.mxu1 }
 0x123   : > { %12627 = vst [vmem:[#allocation55_spill] sm:$0xff] %v9566_v24  ;;  %v9568_v11 = vpop.f32.mrf.mxu0 }
 0x124   : > { %v9570_v54 = vpop.f32.mrf.mxu1 }
 0x125   : > { %12628 = vst [vmem:[#allocation56_spill] sm:$0xff] %v9570_v54  ;;  %v9572_v41 = vpop.f32.mrf.mxu0 }
 0x126   : > { %v7377_v55 = vpop.f32.mrf.mxu1 }
 0x127   : > { %v7321_v15 = vpop.f32.mrf.mxu0 }
 0x128   : > { %v1200_v13 = vadd.f32 %v7321_v15, %v9462_v36  ;;  %v9575_v25 = vpop.f32.mrf.mxu1 }
 0x129   : > { %12629 = vst [vmem:[#allocation57_spill] sm:$0xff] %v9575_v25  ;;  %v9577_v0 = vpop.f32.mrf.mxu0 }
 0x12a   : > { %v9579_v9 = vadd.f32 %v7377_v55, %v1200_v13  ;;  %v7380_v45 = vpop.f32.mrf.mxu1 }
 0x12b   : > { %v7324_v26 = vpop.f32.mrf.mxu0 }
 0x12c   : > { %12630 = vst [vmem:[#allocation58_spill] sm:$0xff] %v9579_v9  ;;  %v1214_v24 = vadd.f32 %v7324_v26, %v9472_v40  ;;  %v9582_v1 = vpop.f32.mrf.mxu1 }
 0x12d   : > { %12631 = vst [vmem:[#allocation59_spill] sm:$0xff] %v9582_v1  ;;  %v9584_v52 = vpop.f32.mrf.mxu0 }
 0x12e   : > { %v9586_v54 = vadd.f32 %v7380_v45, %v1214_v24  ;;  %v7383_v27 = vpop.f32.mrf.mxu1 }
 0x12f   : > { %v7327_v12 = vpop.f32.mrf.mxu0 }
 0x130   : > { %12632 = vst [vmem:[#allocation60_spill] sm:$0xff] %v9586_v54  ;;  %v1228_v15 = vadd.f32 %v7327_v12, %v9479_v18  ;;  %v9589_v36 = vpop.f32.mrf.mxu1 }
 0x131   : > { %12633 = vst [vmem:[#allocation61_spill] sm:$0xff] %v9589_v36  ;;  %v9591_v25 = vpop.f32.mrf.mxu0 }
 0x132   : > { %v9593_v55 = vadd.f32 %v7383_v27, %v1228_v15  ;;  %v7386_v13 = vpop.f32.mrf.mxu1 }
 0x133   : > { %v7330_v9 = vpop.f32.mrf.mxu0 }
 0x134   : > { %12634 = vst [vmem:[#allocation62_spill] sm:$0xff] %v9593_v55  ;;  %v1242_v40 = vadd.f32 %v7330_v9, %v9486_v19  ;;  %v9596_v26 = vpop.f32.mrf.mxu1 }
 0x135   : > { %12635 = vst [vmem:[#allocation63_spill] sm:$0xff] %v9596_v26  ;;  %v9598_v1 = vpop.f32.mrf.mxu0 }
 0x136   : > { %v9600_v45 = vadd.f32 %v7386_v13, %v1242_v40  ;;  %v7389_v24 = vpop.f32.mrf.mxu1 }
 0x137   : > { %v7333_v54 = vpop.f32.mrf.mxu0 }
 0x138   : > { %12636 = vst [vmem:[#allocation64_spill] sm:$0xff] %v9600_v45  ;;  %v1256_v18 = vadd.f32 %v7333_v54, %v9493_v56  ;;  %v9603_v12 = vpop.f32.mrf.mxu1 }
 0x139   : > { %12637 = vst [vmem:[#allocation65_spill] sm:$0xff] %v9603_v12  ;;  %v9605_v36 = vpop.f32.mrf.mxu0 }
 0x13a   : > { %v9607_v27 = vadd.f32 %v7389_v24, %v1256_v18  ;;  %v7392_v15 = vpop.f32.mrf.mxu1 }
 0x13b   : > { %v7336_v55 = vpop.f32.mrf.mxu0 }
 0x13c   : > { %12638 = vst [vmem:[#allocation66_spill] sm:$0xff] %v9607_v27  ;;  %v1270_v9 = vadd.f32 %v7336_v55, %v9500_v62  ;;  %v9610_v19 = vpop.f32.mrf.mxu1 }
 0x13d   : > { %12639 = vst [vmem:[#allocation67_spill] sm:$0xff] %v9610_v19  ;;  %v9612_v26 = vpop.f32.mrf.mxu0 }
 0x13e   : > { %v9614_v13 = vadd.f32 %v7392_v15, %v1270_v9  ;;  %v7395_v40 = vpop.f32.mrf.mxu1 }
 0x13f   : > { %v7339_v45 = vpop.f32.mrf.mxu0 }
 0x140   : > { %12640 = vst [vmem:[#allocation68_spill] sm:$0xff] %v9614_v13  ;;  %v1284_v54 = vadd.f32 %v7339_v45, %v9507_v2  ;;  %v9617_v56 = vpop.f32.mrf.mxu1 }
 0x141   : > { %12641 = vst [vmem:[#allocation69_spill] sm:$0xff] %v9617_v56  ;;  %v9619_v12 = vpop.f32.mrf.mxu0 }
 0x142   : > { %v9621_v24 = vadd.f32 %v7395_v40, %v1284_v54  ;;  %v7398_v18 = vpop.f32.mrf.mxu1 }
 0x143   : > { %v7342_v27 = vpop.f32.mrf.mxu0 }
 0x144   : > { %12642 = vst [vmem:[#allocation70_spill] sm:$0xff] %v9621_v24  ;;  %v1298_v62 = vadd.f32 %v7342_v27, %v9514_v5  ;;  %v9624_v55 = vpop.f32.mrf.mxu1 }
 0x145   : > { %12643 = vst [vmem:[#allocation71_spill] sm:$0xff] %v9624_v55  ;;  %v9626_v19 = vpop.f32.mrf.mxu0 }
 0x146   : > { %v9628_v15 = vadd.f32 %v7398_v18, %v1298_v62  ;;  %v7401_v9 = vpop.f32.mrf.mxu1 }
 0x147   : > { %v7345_v13 = vpop.f32.mrf.mxu0 }
 0x148   : > { %12644 = vst [vmem:[#allocation72_spill] sm:$0xff] %v9628_v15  ;;  %v1312_v2 = vadd.f32 %v7345_v13, %v9521_v38  ;;  %v9631_v45 = vpop.f32.mrf.mxu1 }
 0x149   : > { %12645 = vst [vmem:[#allocation73_spill] sm:$0xff] %v9631_v45  ;;  %v9633_v56 = vpop.f32.mrf.mxu0 }
 0x14a   : > { %v9635_v40 = vadd.f32 %v7401_v9, %v1312_v2  ;;  %v7404_v54 = vpop.f32.mrf.mxu1 }
 0x14b   : > { %v7348_v24 = vpop.f32.mrf.mxu0 }
 0x14c   : > { %12646 = vst [vmem:[#allocation74_spill] sm:$0xff] %v9635_v40  ;;  %v1326_v5 = vadd.f32 %v7348_v24, %v9528_v33  ;;  %v9638_v27 = vpop.f32.mrf.mxu1  ;;  %v498_v33 = vadd.f32 %v9387_v22, %v9422_v34  ;;  %v518_v24 = vadd.f32 %v9387_v22, %v9446_v49  ;;  %v598_v34 = vadd.f32 %v9387_v22, %v9484_v42 }
 0x14d   : > { %v9640_v55 = vpop.f32.mrf.mxu0  ;;  %v618_v49 = vadd.f32 %v9387_v22, %v9491_v31  ;;  %v678_v42 = vadd.f32 %v9387_v22, %v9512_v60  ;;  %v738_v60 = vadd.f32 %v9387_v22, %v9533_v23  ;;  %v778_v23 = vadd.f32 %v9387_v22, %v9547_v16 }
 0x14e   : > { %v9642_v18 = vadd.f32 %v7404_v54, %v1326_v5  ;;  %v7407_v62 = vpop.f32.mrf.mxu1  ;;  %v538_v54 = vadd.f32 %v9387_v22, %v9459_v3  ;;  %v638_v3 = vadd.f32 %v9387_v22, %v9498_v28  ;;  %v698_v28 = vadd.f32 %v9387_v22, %v9519_v51 }
 0x14f   : > { %v7351_v15 = vpop.f32.mrf.mxu0 }
 0x150   : > { %12647 = vst [vmem:[#allocation75_spill] sm:$0xff] %v9642_v18  ;;  %v1340_v38 = vadd.f32 %v7351_v15, %v9535_v6  ;;  %v9645_v13 = vpop.f32.mrf.mxu1  ;;  %v558_v6 = vadd.f32 %v9387_v22, %v9470_v35  ;;  %v983_v51 = vadd.f32 %v9496_v10, %v638_v3  ;;  %v798_v10 = vadd.f32 %v9387_v22, %v9554_v44 }
 0x151   : > { %v9647_v45 = vpop.f32.mrf.mxu0 }
 0x152   : > { %v9649_v9 = vadd.f32 %v7407_v62, %v1340_v38  ;;  %v7410_v2 = vpop.f32.mrf.mxu1  ;;  %v578_v62 = vadd.f32 %v9387_v22, %v9477_v57  ;;  %v658_v57 = vadd.f32 %v9387_v22, %v9505_v46  ;;  %v935_v31 = vadd.f32 %v9467_v47, %v558_v6 }
 0x153   : > { %v7354_v40 = vpop.f32.mrf.mxu0  ;;  %v718_v46 = vadd.f32 %v9387_v22, %v9526_v29  ;;  %v971_v47 = vadd.f32 %v9489_v61, %v618_v49  ;;  %v758_v29 = vadd.f32 %v9387_v22, %v9540_v32  ;;  %v1019_v61 = vadd.f32 %v9517_v48, %v698_v28  ;;  %v12650_v48 = vld [vmem:[#allocation53_spill] sm:$0xff] }
 0x154   : > { %12648 = vst [vmem:[#allocation76_spill] sm:$0xff] %v9649_v9  ;;  %v1354_v15 = vadd.f32 %v7354_v40, %v9542_v37  ;;  %v9660_v5 = vpop.f32.mrf.mxu1  ;;  %v899_v37 = vadd.f32 %v9414_v63, %v498_v33  ;;  %v911_v40 = vadd.f32 %v9438_v20, %v518_v24  ;;  %v947_v63 = vadd.f32 %v9475_v7, %v578_v62 }
 0x155   : > { %12649 = vst [vmem:[#allocation77_spill] sm:$0xff] %v9660_v5  ;;  %v9666_v38 = vpop.f32.mrf.mxu0  ;;  %v923_v5 = vadd.f32 %v9456_v50, %v538_v54  ;;  %v959_v20 = vadd.f32 %v9482_v17, %v598_v34  ;;  %v995_v17 = vadd.f32 %v9503_v59, %v658_v57  ;;  %v1007_v33 = vadd.f32 %v9510_v53, %v678_v42  ;;  %v12651_v34 = vld [vmem:[#allocation50_spill] sm:$0xff]  ;;  %v12655_v57 = vld [vmem:[#allocation55_spill] sm:$0xff] }
 0x156   : > { %v9672_v9 = vadd.f32 %v7410_v2, %v1354_v15  ;;  %v7413_v35 = vpop.f32.mrf.mxu1  ;;  %v1031_v53 = vadd.f32 %v9524_v21, %v718_v46  ;;  %v1043_v59 = vadd.f32 %v9531_v58, %v738_v60  ;;  %v1186_v32 = vadd.f32 %v9568_v11, %v9449_v30  ;;  %v12652_v21 = vld [vmem:[#allocation51_spill] sm:$0xff] }
 0x157   : > { %v7357_v18 = vpop.f32.mrf.mxu0  ;;  %v1179_v16 = vadd.f32 %v9572_v41, %v911_v40  ;;  %v1193_v44 = vadd.f32 %v9577_v0, %v923_v5  ;;  %v1055_v49 = vadd.f32 %v12651_v34, %v758_v29  ;;  %v1067_v3 = vadd.f32 %v12652_v21, %v778_v23  ;;  %v12653_v41 = vld [vmem:[#allocation52_spill] sm:$0xff]  ;;  %v12660_v23 = vld [vmem:[#allocation63_spill] sm:$0xff] }
 0x158   : > { %v1368_v2 = vadd.f32 %v7357_v18, %v9549_v14  ;;  %v9685_v15 = vpop.f32.mrf.mxu1  ;;  %v1172_v14 = vadd.f32 %v9560_v4, %v9427_v39  ;;  %v1165_v4 = vadd.f32 %v9564_v8, %v899_v37  ;;  %v1207_v8 = vadd.f32 %v9584_v52, %v935_v31  ;;  %v12654_v37 = vld [vmem:[#allocation54_spill] sm:$0xff]  ;;  %v12656_v31 = vld [vmem:[#allocation56_spill] sm:$0xff] }
 0x159   : > { %v9693_v50 = vpop.f32.mrf.mxu0  ;;  %v1221_v58 = vadd.f32 %v9591_v25, %v947_v63  ;;  %v1235_v30 = vadd.f32 %v9598_v1, %v959_v20  ;;  %v1249_v0 = vadd.f32 %v9605_v36, %v971_v47  ;;  %v1483_v42 = vadd.f32 %v12655_v57, %v1186_v32  ;;  %v12657_v63 = vld [vmem:[#allocation57_spill] sm:$0xff]  ;;  %v12658_v20 = vld [vmem:[#allocation59_spill] sm:$0xff] }
 0x15a   : > { %v9699_v18 = vadd.f32 %v7413_v35, %v1368_v2  ;;  %v7416_v7 = vpop.f32.mrf.mxu1  ;;  %v1467_v62 = vadd.f32 %v12650_v48, %v1172_v14  ;;  %v1079_v35 = vadd.f32 %v12653_v41, %v798_v10  ;;  %v1459_v40 = vadd.f32 %v12654_v37, %v1165_v4  ;;  %v12659_v36 = vld [vmem:[#allocation61_spill] sm:$0xff]  ;;  %v12662_v48 = vld [vmem:[#allocation67_spill] sm:$0xff] }
 0x15b   : > { %v7360_v24 = vpop.f32.mrf.mxu0  ;;  %v1475_v28 = vadd.f32 %v12656_v31, %v1179_v16  ;;  %v1263_v2 = vadd.f32 %v9612_v26, %v983_v51  ;;  %v1277_v46 = vadd.f32 %v9619_v12, %v995_v17  ;;  %v1491_v1 = vadd.f32 %v12657_v63, %v1193_v44  ;;  %v12661_v51 = vld [vmem:[#allocation65_spill] sm:$0xff] }
 0x15c   : > { %v1382_v39 = vadd.f32 %v7360_v24, %v9556_v43  ;;  %v9712_v54 = vpop.f32.mrf.mxu1  ;;  %v9737_v60 = vadd.f32 %v12658_v20, %v1207_v8  ;;  %v9740_v47 = vadd.f32 %v12659_v36, %v1221_v58  ;;  %v9743_v24 = vadd.f32 %v12660_v23, %v1235_v30  ;;  %v12663_v44 = vld [vmem:[#allocation69_spill] sm:$0xff]  ;;  %v12665_v30 = vld [vmem:[#allocation71_spill] sm:$0xff]  ;;  %v12672_v36 = vld [vmem:[#allocation60_spill] sm:$0xff] }
 0x15d   : > { %v1374_v6 = vpop.f32.mrf.mxu0  ;;  %v1291_v10 = vadd.f32 %v9626_v19, %v1007_v33  ;;  %v1305_v26 = vadd.f32 %v9633_v56, %v1019_v61  ;;  %v9748_v17 = vadd.f32 %v12661_v51, %v1249_v0  ;;  %v9754_v8 = vadd.f32 %v12663_v44, %v1277_v46  ;;  %v12666_v41 = vld [vmem:[#allocation73_spill] sm:$0xff] }
 0x15e   : > { %v9722_v22 = vadd.f32 %v7416_v7, %v1382_v39  ;;  %v7483_v43 = vpop.f32.mrf.mxu1  ;;  %v1333_v19 = vadd.f32 %v9647_v45, %v1043_v59  ;;  %v1361_v0 = vadd.f32 %v9693_v50, %v1067_v3  ;;  %v1375_v31 = vadd.f32 %v1374_v6, %v1079_v35 }
 0x15f   : > { %v7427_v11 = vpop.f32.mrf.mxu0  ;;  %v9764_v37 = vadd.f32 %v12666_v41, %v1305_v26  ;;  %v12673_v26 = vld [vmem:[#allocation2_spill] sm:$0xff] }
 0x160   : > { %v1796_v5 = vadd.f32 %v7427_v11, %v1467_v62  ;;  %v2050_v52 = vpop.f32.mrf.mxu1  ;;  %v9751_v62 = vadd.f32 %v12662_v48, %v1263_v2  ;;  %v9761_v11 = vadd.f32 %v12665_v30, %v1291_v10  ;;  %v12677_v30 = vld [vmem:[#allocation62_spill] sm:$0xff] }
 0x161   : > { %v1789_v25 = vpop.f32.mrf.mxu0 }
 0x162   : > { %v2057_v14 = vadd.f32 %v7483_v43, %v1796_v5  ;;  %v1790_v7 = vadd.f32 %v1789_v25, %v1459_v40  ;;  %v7486_v29 = vpop.f32.mrf.mxu1  ;;  %v1319_v43 = vadd.f32 %v9640_v55, %v1031_v53  ;;  %v1347_v40 = vadd.f32 %v9666_v38, %v1055_v49 }
 0x163   : > { %v7430_v12 = vpop.f32.mrf.mxu0 }
 0x164   : > { %v2241_v4 = vmax.f32 %v2057_v14, 0.0  ;;  %v2051_v39 = vadd.f32 %v2050_v52, %v1790_v7  ;;  %v1808_v32 = vadd.f32 %v7430_v12, %v1483_v42  ;;  %v2062_v16 = vpop.f32.mrf.mxu1  ;;  %v9774_v57 = vadd.f32 %v9638_v27, %v1319_v43  ;;  %v12670_v27 = vld [vmem:[#allocation77_spill] sm:$0xff] }
 0x165   : > { %v1801_v33 = vpop.f32.mrf.mxu0  ;;  %v9777_v42 = vadd.f32 %v9645_v13, %v1333_v19  ;;  %v9788_v63 = vadd.f32 %v12670_v27, %v1347_v40  ;;  %v9791_v13 = vadd.f32 %v9685_v15, %v1361_v0  ;;  %v9805_v15 = vadd.f32 %v9712_v54, %v1375_v31 }
 0x166   : > { %v9758_v56 = vand.u32 4294901760, %v2241_v4  ;;  %v2240_v61 = vmax.f32 %v2051_v39, 0.0  ;;  %v2069_v34 = vadd.f32 %v7486_v29, %v1808_v32  ;;  %v1802_v21 = vadd.f32 %v1801_v33, %v1475_v28  ;;  %v7489_v58 = vpop.f32.mrf.mxu1  ;;  %v12668_v28 = vld [vmem:[#allocation58_spill] sm:$0xff]  ;;  %v12674_v39 = vld [vmem:[#allocation5_spill] sm:$0xff] }
 0x167   : > { %v7433_v55 = vpop.f32.mrf.mxu0 }
 0x168   : > { %12664 = vst [vmem:[#allocation53_spill] sm:$0xff] %v9758_v56  ;;  %v9769_v45 = vsub.f32 %v2241_v4, %v9758_v56  ;;  %v9771_v53 = vand.u32 4294901760, %v2240_v61  ;;  %v2243_v59 = vmax.f32 %v2069_v34, 0.0  ;;  %v2063_v5 = vadd.f32 %v2062_v16, %v1802_v21  ;;  %v2074_v52 = vpop.f32.mrf.mxu1  ;;  %v12676_v21 = vld [vmem:[#allocation8_spill] sm:$0xff] }
 0x169   : > { %v1820_v38 = vadd.f32 %v7433_v55, %v12668_v28  ;;  %v1813_v49 = vpop.f32.mrf.mxu0  ;;  %v12679_v28 = vld [vmem:[#allocation11_spill] sm:$0xff] }
 0x16a   : > { %12667 = vst [vmem:[#allocation50_spill] sm:$0xff] %v9771_v53  ;;  %v12254_v50 = vand.u32 4294901760, %v9769_v45  ;;  %v9782_v3 = vsub.f32 %v2240_v61, %v9771_v53  ;;  %v9784_v2 = vand.u32 4294901760, %v2243_v59  ;;  %v2242_v46 = vmax.f32 %v2063_v5, 0.0  ;;  %7641 = vmatprep.mubr.f32.mxu1 %v9771_v53  ;;  %v7492_v25 = vpop.f32.mrf.mxu1 }
 0x16b   : > { %v2081_v6 = vadd.f32 %v7489_v58, %v1820_v38  ;;  %v1814_v35 = vadd.f32 %v1813_v49, %v1491_v1  ;;  %v7436_v20 = vpop.f32.mrf.mxu0  ;;  %7642 = vmatmul.mubr.f32.vlgmr.msra.gmra.mxu1 %v9758_v56 }
 0x16c   : > { %12669 = vst [vmem:[#allocation51_spill] sm:$0xff] %v9784_v2  ;;  %v2389_v14 = vsub.f32 %v9769_v45, %v12254_v50  ;;  %v9798_v7 = vsub.f32 %v2243_v59, %v9784_v2  ;;  %v9800_v29 = vand.u32 4294901760, %v2242_v46  ;;  %v1832_v23 = vadd.f32 %v7436_v20, %v12672_v36  ;;  %v2086_v10 = vpop.f32.mrf.mxu1  ;;  %7770 = vmatpush3.msra.mxu1 %v12673_v26  ;;  %v12698_v50 = vld [vmem:[#allocation70_spill] sm:$0xff] }
 0x16d   : > { %v2245_v1 = vmax.f32 %v2081_v6, 0.0  ;;  %v2075_v12 = vadd.f32 %v2074_v52, %v1814_v35  ;;  %v1825_v51 = vpop.f32.mrf.mxu0  ;;  %v12255_v4 = vand.u32 4294901760, %v9782_v3  ;;  %7771 = vmatprep.subr.mxu1 %v12674_v39 }
 0x16e   : > { %12671 = vst [vmem:[#allocation52_spill] sm:$0xff] %v9800_v29  ;;  %v2390_v32 = vand.u32 4294901760, %v2389_v14  ;;  %v9810_v16 = vsub.f32 %v2242_v46, %v9800_v29  ;;  %v2093_v48 = vadd.f32 %v7492_v25, %v1832_v23  ;;  %v1826_v44 = vadd.f32 %v1825_v51, %v9737_v60  ;;  %7644 = vmatprep.mubr.f32.mxu1 %v9800_v29  ;;  %v7495_v43 = vpop.f32.mrf.mxu1  ;;  %v12682_v51 = vld [vmem:[#allocation64_spill] sm:$0xff] }
 0x16f   : > { %7772 = vmatpush3.msra.mxu1 %v12674_v39  ;;  %v9815_v54 = vand.u32 4294901760, %v2245_v1  ;;  %v2244_v19 = vmax.f32 %v2075_v12, 0.0  ;;  %v7439_v33 = vpop.f32.mrf.mxu0  ;;  %v2379_v61 = vsub.f32 %v9782_v3, %v12255_v4  ;;  %v12251_v34 = vand.u32 4294901760, %v9798_v7 }
 0x170   : > { %7645 = vmatmul.mubr.f32.gmra.mxu1 %v9784_v2  ;;  %7773 = vmatprep.subr.mxu1 %v12676_v21  ;;  %v2247_v60 = vmax.f32 %v2093_v48, 0.0  ;;  %v2087_v58 = vadd.f32 %v2086_v10, %v1826_v44  ;;  %v1844_v41 = vadd.f32 %v7439_v33, %v12677_v30  ;;  %v2098_v40 = vpop.f32.mrf.mxu1  ;;  %v12253_v0 = vand.u32 4294901760, %v9810_v16  ;;  %v12683_v44 = vld [vmem:[#allocation3_spill] sm:$0xff] }
 0x171   : > { %12675 = vst [vmem:[#allocation54_spill] sm:$0xff] %v9815_v54  ;;  %7774 = vmatpush3.msra.mxu1 %v12676_v21  ;;  %v9827_v55 = vsub.f32 %v2245_v1, %v9815_v54  ;;  %v9829_v59 = vand.u32 4294901760, %v2244_v19  ;;  %v1837_v5 = vpop.f32.mrf.mxu0  ;;  %v2380_v52 = vand.u32 4294901760, %v2379_v61  ;;  %v2409_v31 = vsub.f32 %v9798_v7, %v12251_v34 }
 0x172   : > { %7775 = vmatprep.subr.mxu1 %v12679_v28  ;;  %v9835_v38 = vand.u32 4294901760, %v2247_v60  ;;  %v2246_v49 = vmax.f32 %v2087_v58, 0.0  ;;  %v2105_v46 = vadd.f32 %v7495_v43, %v1844_v41  ;;  %v1838_v25 = vadd.f32 %v1837_v5, %v9740_v47  ;;  %v7498_v27 = vpop.f32.mrf.mxu1 }
 0x173   : > { %12678 = vst [vmem:[#allocation55_spill] sm:$0xff] %v9829_v59  ;;  %7776 = vmatpush3.msra.mxu1 %v12679_v28  ;;  %v9840_v6 = vsub.f32 %v2244_v19, %v9829_v59  ;;  %7561 = vmatprep.mubr.f32.mxu0 %v2380_v52  ;;  %v7442_v35 = vpop.f32.mrf.mxu0  ;;  %v2399_v20 = vsub.f32 %v9810_v16, %v12253_v0  ;;  %v2410_v14 = vand.u32 4294901760, %v2409_v31  ;;  %v12248_v36 = vand.u32 4294901760, %v9827_v55 }
 0x174   : > { %12680 = vst [vmem:[#allocation56_spill] sm:$0xff] %v9835_v38  ;;  %7647 = vmatprep.mubr.f32.mxu1 %v9829_v59  ;;  %v9848_v23 = vsub.f32 %v2247_v60, %v9835_v38  ;;  %v9850_v47 = vand.u32 4294901760, %v2246_v49  ;;  %v2249_v10 = vmax.f32 %v2105_v46, 0.0  ;;  %v2099_v1 = vadd.f32 %v2098_v40, %v1838_v25  ;;  %7562 = vmatmul.mubr.f32.vlgmr.msra.gmra.mxu0 %v2390_v32  ;;  %v2110_v12 = vpop.f32.mrf.mxu1  ;;  %v12684_v60 = vld [vmem:[#allocation14_spill] sm:$0xff] }
 0x175   : > { %7648 = vmatmul.mubr.f32.gmra.mxu1 %v9815_v54  ;;  %v1856_v48 = vadd.f32 %v7442_v35, %v12682_v51  ;;  %7690 = vmatpush3.msra.mxu0 %v12683_v44  ;;  %v1849_v43 = vpop.f32.mrf.mxu0  ;;  %v2400_v19 = vand.u32 4294901760, %v2399_v20  ;;  %v12249_v33 = vand.u32 4294901760, %v9840_v6  ;;  %v2429_v61 = vsub.f32 %v9827_v55, %v12248_v36  ;;  %v12686_v40 = vld [vmem:[#allocation6_spill] sm:$0xff] }
 0x176   : > { %12681 = vst [vmem:[#allocation57_spill] sm:$0xff] %v9850_v47  ;;  %7777 = vmatprep.subr.mxu1 %v12684_v60  ;;  %v9861_v58 = vsub.f32 %v2246_v49, %v9850_v47  ;;  %v9863_v32 = vand.u32 4294901760, %v2249_v10  ;;  %v2248_v30 = vmax.f32 %v2099_v1, 0.0  ;;  %v1850_v41 = vadd.f32 %v1849_v43, %v9743_v24  ;;  %7650 = vmatprep.mubr.f32.mxu1 %v9850_v47  ;;  %v7501_v5 = vpop.f32.mrf.mxu1  ;;  %v12688_v1 = vld [vmem:[#allocation66_spill] sm:$0xff] }
 0x177   : > { %7691 = vmatprep.subr.mxu0 %v12686_v40  ;;  %v2117_v52 = vadd.f32 %v7498_v27, %v1856_v48  ;;  %7564 = vmatprep.mubr.f32.mxu0 %v2400_v19  ;;  %v7445_v31 = vpop.f32.mrf.mxu0  ;;  %v2419_v49 = vsub.f32 %v9840_v6, %v12249_v33  ;;  %v2430_v46 = vand.u32 4294901760, %v2429_v61  ;;  %v12247_v25 = vand.u32 4294901760, %v9848_v23  ;;  %v12689_v19 = vld [vmem:[#allocation9_spill] sm:$0xff] }
 0x178   : > { %12685 = vst [vmem:[#allocation59_spill] sm:$0xff] %v9863_v32  ;;  %7692 = vmatpush3.msra.mxu0 %v12686_v40  ;;  %v9874_v35 = vsub.f32 %v2249_v10, %v9863_v32  ;;  %v9876_v24 = vand.u32 4294901760, %v2248_v30  ;;  %v2111_v20 = vadd.f32 %v2110_v12, %v1850_v41  ;;  %v1868_v51 = vadd.f32 %v7445_v31, %v12688_v1  ;;  %v2122_v27 = vpop.f32.mrf.mxu1 }
 0x179   : > { %7565 = vmatmul.mubr.f32.gmra.mxu0 %v2410_v14  ;;  %7651 = vmatmul.mubr.f32.gmra.mxu1 %v9835_v38  ;;  %v2251_v48 = vmax.f32 %v2117_v52, 0.0  ;;  %v1861_v44 = vpop.f32.mrf.mxu0  ;;  %v2420_v43 = vand.u32 4294901760, %v2419_v49  ;;  %v12250_v61 = vand.u32 4294901760, %v9861_v58  ;;  %v2449_v10 = vsub.f32 %v9848_v23, %v12247_v25  ;;  %v12691_v25 = vld [vmem:[#allocation12_spill] sm:$0xff] }
 0x17a   : > { %12687 = vst [vmem:[#allocation61_spill] sm:$0xff] %v9876_v24  ;;  %7693 = vmatprep.subr.mxu0 %v12689_v19  ;;  %7778 = vmatpush3.msra.mxu1 %v12684_v60  ;;  %v9887_v12 = vsub.f32 %v2248_v30, %v9876_v24  ;;  %v2250_v14 = vmax.f32 %v2111_v20, 0.0  ;;  %v2129_v41 = vadd.f32 %v7501_v5, %v1868_v51  ;;  %v7504_v52 = vpop.f32.mrf.mxu1  ;;  %v12252_v5 = vand.u32 4294901760, %v9874_v35 }
 0x17b   : > { %v1862_v40 = vadd.f32 %v1861_v44, %v9748_v17  ;;  %7653 = vmatprep.mubr.f32.mxu1 %v9876_v24  ;;  %7694 = vmatpush3.msra.mxu0 %v12689_v19  ;;  %v9892_v31 = vand.u32 4294901760, %v2251_v48  ;;  %v7448_v49 = vpop.f32.mrf.mxu0  ;;  %v2439_v1 = vsub.f32 %v9861_v58, %v12250_v61  ;;  %v2450_v30 = vand.u32 4294901760, %v2449_v10  ;;  %v12693_v44 = vld [vmem:[#allocation68_spill] sm:$0xff] }
 0x17c   : > { %7567 = vmatprep.mubr.f32.mxu0 %v2420_v43  ;;  %7695 = vmatprep.subr.mxu0 %v12691_v25  ;;  %v9899_v20 = vand.u32 4294901760, %v2250_v14  ;;  %v2253_v17 = vmax.f32 %v2129_v41, 0.0  ;;  %v1880_v36 = vadd.f32 %v7448_v49, %v12693_v44  ;;  %v2134_v43 = vpop.f32.mrf.mxu1  ;;  %v12256_v10 = vand.u32 4294901760, %v9887_v12  ;;  %v12696_v44 = vld [vmem:[#allocation15_spill] sm:$0xff] }
 0x17d   : > { %12690 = vst [vmem:[#allocation63_spill] sm:$0xff] %v9892_v31  ;;  %v2123_v51 = vadd.f32 %v2122_v27, %v1862_v40  ;;  %7568 = vmatmul.mubr.f32.gmra.mxu0 %v2430_v46  ;;  %7654 = vmatmul.mubr.f32.gmra.mxu1 %v9863_v32  ;;  %v9904_v19 = vsub.f32 %v2251_v48, %v9892_v31  ;;  %v1873_v33 = vpop.f32.mrf.mxu0  ;;  %v2440_v61 = vand.u32 4294901760, %v2439_v1  ;;  %v12694_v27 = vld [vmem:[#allocation17_spill] sm:$0xff] }
 0x17e   : > { %12692 = vst [vmem:[#allocation65_spill] sm:$0xff] %v9899_v20  ;;  %7696 = vmatpush3.msra.mxu0 %v12691_v25  ;;  %v2469_v41 = vsub.f32 %v9874_v35, %v12252_v5  ;;  %7779 = vmatprep.subr.mxu1 %v12694_v27  ;;  %v9913_v46 = vsub.f32 %v2250_v14, %v9899_v20  ;;  %v9915_v40 = vand.u32 4294901760, %v2253_v17  ;;  %v7507_v1 = vpop.f32.mrf.mxu1 }
 0x17f   : > { %v2252_v49 = vmax.f32 %v2123_v51, 0.0  ;;  %v2141_v48 = vadd.f32 %v7504_v52, %v1880_v36  ;;  %7656 = vmatprep.mubr.f32.mxu1 %v9899_v20  ;;  %7697 = vmatprep.subr.mxu0 %v12696_v44  ;;  %v1874_v25 = vadd.f32 %v1873_v33, %v9751_v62  ;;  %v7451_v34 = vpop.f32.mrf.mxu0  ;;  %v2459_v5 = vsub.f32 %v9887_v12, %v12256_v10 }
 0x180   : > { %12695 = vst [vmem:[#allocation67_spill] sm:$0xff] %v9915_v40  ;;  %7570 = vmatprep.mubr.f32.mxu0 %v2440_v61  ;;  %v2470_v0 = vand.u32 4294901760, %v2469_v41  ;;  %7698 = vmatpush3.msra.mxu0 %v12696_v44  ;;  %v12257_v14 = vand.u32 4294901760, %v9904_v19  ;;  %v9926_v36 = vsub.f32 %v2253_v17, %v9915_v40  ;;  %v1892_v4 = vadd.f32 %v7451_v34, %v12698_v50  ;;  %v2146_v62 = vpop.f32.mrf.mxu1  ;;  %v12699_v44 = vld [vmem:[#allocation18_spill] sm:$0xff] }
 0x181   : > { %v9928_v52 = vand.u32 4294901760, %v2252_v49  ;;  %v2255_v51 = vmax.f32 %v2141_v48, 0.0  ;;  %7571 = vmatmul.mubr.f32.gmra.mxu0 %v2450_v30  ;;  %7657 = vmatmul.mubr.f32.gmra.mxu1 %v9892_v31  ;;  %v2135_v33 = vadd.f32 %v2134_v43, %v1874_v25  ;;  %v1885_v61 = vpop.f32.mrf.mxu0  ;;  %v2460_v10 = vand.u32 4294901760, %v2459_v5 }
 0x182   : > { %v12264_v41 = vand.u32 4294901760, %v9913_v46  ;;  %7699 = vmatprep.subr.mxu0 %v12699_v44  ;;  %v2489_v17 = vsub.f32 %v9904_v19, %v12257_v14  ;;  %7780 = vmatpush3.msra.mxu1 %v12694_v27  ;;  %v2153_v34 = vadd.f32 %v7507_v1, %v1892_v4  ;;  %v1886_v30 = vadd.f32 %v1885_v61, %v9754_v8  ;;  %v7510_v5 = vpop.f32.mrf.mxu1  ;;  %v12702_v61 = vld [vmem:[#allocation72_spill] sm:$0xff] }
 0x183   : > { %12697 = vst [vmem:[#allocation69_spill] sm:$0xff] %v9928_v52  ;;  %v9939_v48 = vsub.f32 %v2252_v49, %v9928_v52  ;;  %v9941_v50 = vand.u32 4294901760, %v2255_v51  ;;  %7659 = vmatprep.mubr.f32.mxu1 %v9928_v52  ;;  %7700 = vmatpush3.msra.mxu0 %v12699_v44  ;;  %v2254_v43 = vmax.f32 %v2135_v33, 0.0  ;;  %v7454_v25 = vpop.f32.mrf.mxu0  ;;  %v12701_v49 = vld [vmem:[#allocation21_spill] sm:$0xff]  ;;  %v12267_v20 = vand.u32 4294901760, %v9926_v36 }
 0x184   : > { %7573 = vmatprep.mubr.f32.mxu0 %v2460_v10  ;;  %v2479_v14 = vsub.f32 %v9913_v46, %v12264_v41  ;;  %v2490_v31 = vand.u32 4294901760, %v2489_v17  ;;  %7701 = vmatprep.subr.mxu0 %v12701_v49  ;;  %v2257_v8 = vmax.f32 %v2153_v34, 0.0  ;;  %v2147_v1 = vadd.f32 %v2146_v62, %v1886_v30  ;;  %v2158_v10 = vpop.f32.mrf.mxu1 }
 0x185   : > { %12700 = vst [vmem:[#allocation71_spill] sm:$0xff] %v9941_v50  ;;  %v9952_v4 = vsub.f32 %v2255_v51, %v9941_v50  ;;  %v1904_v52 = vadd.f32 %v7454_v25, %v12702_v61  ;;  %7574 = vmatmul.mubr.f32.gmra.mxu0 %v2470_v0  ;;  %7660 = vmatmul.mubr.f32.gmra.mxu1 %v9915_v40  ;;  %v9956_v33 = vand.u32 4294901760, %v2254_v43  ;;  %v1897_v44 = vpop.f32.mrf.mxu0  ;;  %v12276_v17 = vand.u32 4294901760, %v9939_v48  ;;  %v12704_v51 = vld [vmem:[#allocation20_spill] sm:$0xff] }
 0x186   : > { %v2480_v41 = vand.u32 4294901760, %v2479_v14  ;;  %v2509_v32 = vsub.f32 %v9926_v36, %v12267_v20  ;;  %7702 = vmatpush3.msra.mxu0 %v12701_v49  ;;  %7781 = vmatprep.subr.mxu1 %v12704_v51  ;;  %v9964_v62 = vand.u32 4294901760, %v2257_v8  ;;  %v2256_v0 = vmax.f32 %v2147_v1, 0.0  ;;  %v7513_v25 = vpop.f32.mrf.mxu1  ;;  %v12706_v14 = vld [vmem:[#allocation24_spill] sm:$0xff] }
 0x187   : > { %12703 = vst [vmem:[#allocation73_spill] sm:$0xff] %v9956_v33  ;;  %v2165_v34 = vadd.f32 %v7510_v5, %v1904_v52  ;;  %v1898_v30 = vadd.f32 %v1897_v44, %v9761_v11  ;;  %7782 = vmatpush3.msra.mxu1 %v12704_v51  ;;  %7703 = vmatprep.subr.mxu0 %v12706_v14  ;;  %v7457_v49 = vpop.f32.mrf.mxu0  ;;  %v12277_v52 = vand.u32 4294901760, %v9952_v4 }
 0x188   : > { %12705 = vst [vmem:[#allocation58_spill] sm:$0xff] %v9964_v62  ;;  %v9970_v61 = vsub.f32 %v2254_v43, %v9956_v33  ;;  %7576 = vmatprep.mubr.f32.mxu0 %v2480_v41  ;;  %7662 = vmatprep.mubr.f32.mxu1 %v9956_v33  ;;  %v2499_v20 = vsub.f32 %v9939_v48, %v12276_v17  ;;  %v2510_v1 = vand.u32 4294901760, %v2509_v32  ;;  %v9980_v5 = vand.u32 4294901760, %v2256_v0  ;;  %v2170_v41 = vpop.f32.mrf.mxu1  ;;  %v12708_v43 = vld [vmem:[#allocation74_spill] sm:$0xff] }
 0x189   : > { %v9978_v11 = vsub.f32 %v2257_v8, %v9964_v62  ;;  %v2259_v44 = vmax.f32 %v2165_v34, 0.0  ;;  %v2159_v40 = vadd.f32 %v2158_v10, %v1898_v30  ;;  %7577 = vmatmul.mubr.f32.gmra.mxu0 %v2490_v31  ;;  %7663 = vmatmul.mubr.f32.gmra.mxu1 %v9941_v50  ;;  %v1916_v33 = vadd.f32 %v7457_v49, %v12708_v43  ;;  %v1909_v24 = vpop.f32.mrf.mxu0  ;;  %v12709_v8 = vld [vmem:[#allocation22_spill] sm:$0xff] }
 0x18a   : > { %12707 = vst [vmem:[#allocation77_spill] sm:$0xff] %v9980_v5  ;;  %v2500_v38 = vand.u32 4294901760, %v2499_v20  ;;  %v12284_v17 = vand.u32 4294901760, %v9970_v61  ;;  %v2529_v32 = vsub.f32 %v9952_v4, %v12277_v52  ;;  %7704 = vmatpush3.msra.mxu0 %v12706_v14  ;;  %7783 = vmatprep.subr.mxu1 %v12709_v8  ;;  %v9992_v31 = vsub.f32 %v2256_v0, %v9980_v5  ;;  %v7516_v20 = vpop.f32.mrf.mxu1  ;;  %v12711_v0 = vld [vmem:[#allocation27_spill] sm:$0xff] }
 0x18b   : > { %v9994_v34 = vand.u32 4294901760, %v2259_v44  ;;  %v2258_v30 = vmax.f32 %v2159_v40, 0.0  ;;  %7665 = vmatprep.mubr.f32.mxu1 %v9980_v5  ;;  %7784 = vmatpush3.msra.mxu1 %v12709_v8  ;;  %v2177_v49 = vadd.f32 %v7513_v25, %v1916_v33  ;;  %v1910_v43 = vadd.f32 %v1909_v24, %v9764_v37  ;;  %v7460_v14 = vpop.f32.mrf.mxu0  ;;  %v12714_v33 = vld [vmem:[#allocation75_spill] sm:$0xff] }
 0x18c   : > { %7579 = vmatprep.mubr.f32.mxu0 %v2500_v38  ;;  %v2519_v52 = vsub.f32 %v9970_v61, %v12284_v17  ;;  %v2530_v10 = vand.u32 4294901760, %v2529_v32  ;;  %7705 = vmatprep.subr.mxu0 %v12711_v0  ;;  %v12712_v50 = vand.u32 4294901760, %v9978_v11  ;;  %v1928_v37 = vadd.f32 %v7460_v14, %v12714_v33  ;;  %v2182_v38 = vpop.f32.mrf.mxu1 }
 0x18d   : > { %12710 = vst [vmem:[#allocation60_spill] sm:$0xff] %v9994_v34  ;;  %v10007_v5 = vsub.f32 %v2259_v44, %v9994_v34  ;;  %v10009_v47 = vand.u32 4294901760, %v2258_v30  ;;  %7580 = vmatmul.mubr.f32.gmra.mxu0 %v2510_v1  ;;  %7666 = vmatmul.mubr.f32.gmra.mxu1 %v9964_v62  ;;  %v2261_v24 = vmax.f32 %v2177_v49, 0.0  ;;  %v2171_v25 = vadd.f32 %v2170_v41, %v1910_v43  ;;  %v1921_v32 = vpop.f32.mrf.mxu0 }
 0x18e   : > { %v2549_v40 = vsub.f32 %v9978_v11, %v12712_v50  ;;  %v2520_v17 = vand.u32 4294901760, %v2519_v52  ;;  %v12293_v54 = vand.u32 4294901760, %v9992_v31  ;;  %7706 = vmatpush3.msra.mxu0 %v12711_v0  ;;  %v12715_v50 = vld [vmem:[#allocation25_spill] sm:$0xff]  ;;  %v2189_v14 = vadd.f32 %v7516_v20, %v1928_v37  ;;  %v7519_v49 = vpop.f32.mrf.mxu1 }
 0x18f   : > { %12713 = vst [vmem:[#allocation2_spill] sm:$0xff] %v10009_v47  ;;  %7785 = vmatprep.subr.mxu1 %v12715_v50  ;;  %v12296_v44 = vand.u32 4294901760, %v10007_v5  ;;  %v10018_v59 = vsub.f32 %v2258_v30, %v10009_v47  ;;  %v1922_v1 = vadd.f32 %v1921_v32, %v9774_v57  ;;  %7668 = vmatprep.mubr.f32.mxu1 %v10009_v47  ;;  %v10023_v52 = vand.u32 4294901760, %v2261_v24  ;;  %v7463_v43 = vpop.f32.mrf.mxu0  ;;  %v12717_v30 = vld [vmem:[#allocation30_spill] sm:$0xff]  ;;  %v12718_v32 = vld [vmem:[#allocation76_spill] sm:$0xff] }
 0x190   : > { %7786 = vmatpush3.msra.mxu1 %v12715_v50  ;;  %v2260_v41 = vmax.f32 %v2171_v25, 0.0  ;;  %7582 = vmatprep.mubr.f32.mxu0 %v2520_v17  ;;  %v2539_v0 = vsub.f32 %v9992_v31, %v12293_v54  ;;  %v2550_v33 = vand.u32 4294901760, %v2549_v40  ;;  %v2263_v20 = vmax.f32 %v2189_v14, 0.0  ;;  %v2194_v17 = vpop.f32.mrf.mxu1 }
 0x191   : > { %12716 = vst [vmem:[#allocation5_spill] sm:$0xff] %v10023_v52  ;;  %7707 = vmatprep.subr.mxu0 %v12717_v30  ;;  %v2569_v57 = vsub.f32 %v10007_v5, %v12296_v44  ;;  %v2183_v37 = vadd.f32 %v2182_v38, %v1922_v1  ;;  %v1940_v47 = vadd.f32 %v7463_v43, %v12718_v32  ;;  %v1933_v40 = vpop.f32.mrf.mxu0  ;;  %v12303_v2 = vand.u32 4294901760, %v10018_v59  ;;  %v12720_v44 = vld [vmem:[#allocation28_spill] sm:$0xff] }
 0x192   : > { %7583 = vmatmul.mubr.f32.gmra.mxu0 %v2530_v10  ;;  %7669 = vmatmul.mubr.f32.gmra.mxu1 %v9994_v34  ;;  %v10035_v25 = vsub.f32 %v2261_v24, %v10023_v52  ;;  %v10037_v62 = vand.u32 4294901760, %v2260_v41  ;;  %v2540_v54 = vand.u32 4294901760, %v2539_v0  ;;  %v10042_v38 = vand.u32 4294901760, %v2263_v20  ;;  %v7522_v43 = vpop.f32.mrf.mxu1  ;;  %v12722_v24 = vld [vmem:[#allocation34_spill] sm:$0xff] }
 0x193   : > { %7708 = vmatpush3.msra.mxu0 %v12717_v30  ;;  %7787 = vmatprep.subr.mxu1 %v12720_v44  ;;  %v2262_v14 = vmax.f32 %v2183_v37, 0.0  ;;  %v2201_v10 = vadd.f32 %v7519_v49, %v1940_v47  ;;  %v1934_v1 = vadd.f32 %v1933_v40, %v9777_v42  ;;  %v7466_v30 = vpop.f32.mrf.mxu0  ;;  %v2559_v47 = vsub.f32 %v10018_v59, %v12303_v2 }
 0x194   : > { %12719 = vst [vmem:[#allocation8_spill] sm:$0xff] %v10037_v62  ;;  %12721 = vst [vmem:[#allocation62_spill] sm:$0xff] %v10042_v38  ;;  %7788 = vmatpush3.msra.mxu1 %v12720_v44  ;;  %7709 = vmatprep.subr.mxu0 %v12722_v24  ;;  %v12304_v32 = vand.u32 4294901760, %v10035_v25  ;;  %v10049_v0 = vsub.f32 %v2260_v41, %v10037_v62  ;;  %v2570_v49 = vand.u32 4294901760, %v2569_v57  ;;  %v2206_v41 = vpop.f32.mrf.mxu1 }
 0x195   : > { %7585 = vmatprep.mubr.f32.mxu0 %v2540_v54  ;;  %7671 = vmatprep.mubr.f32.mxu1 %v10037_v62  ;;  %v10056_v42 = vsub.f32 %v2263_v20, %v10042_v38  ;;  %v10058_v37 = vand.u32 4294901760, %v2262_v14  ;;  %v2265_v40 = vmax.f32 %v2201_v10, 0.0  ;;  %v2195_v34 = vadd.f32 %v2194_v17, %v1934_v1  ;;  %v1945_v29 = vpop.f32.mrf.mxu0  ;;  %v12724_v20 = vld [vmem:[#allocation31_spill] sm:$0xff] }
 0x196   : > { %7586 = vmatmul.mubr.f32.gmra.mxu0 %v2550_v33  ;;  %7672 = vmatmul.mubr.f32.gmra.mxu1 %v10023_v52  ;;  %v2589_v54 = vsub.f32 %v10035_v25, %v12304_v32  ;;  %v1952_v62 = vadd.f32 %v7466_v30, %v9672_v9  ;;  %v2560_v2 = vand.u32 4294901760, %v2559_v47  ;;  %v12311_v57 = vand.u32 4294901760, %v10049_v0  ;;  %v7525_v32 = vpop.f32.mrf.mxu1 }
 0x197   : > { %12723 = vst [vmem:[#allocation11_spill] sm:$0xff] %v10058_v37  ;;  %7710 = vmatpush3.msra.mxu0 %v12722_v24  ;;  %7789 = vmatprep.subr.mxu1 %v12724_v20  ;;  %v10070_v33 = vsub.f32 %v2262_v14, %v10058_v37  ;;  %v10072_v10 = vand.u32 4294901760, %v2265_v40  ;;  %v2264_v1 = vmax.f32 %v2195_v34, 0.0  ;;  %v1946_v30 = vadd.f32 %v1945_v29, %v9788_v63  ;;  %v7469_v24 = vpop.f32.mrf.mxu0  ;;  %v12725_v14 = vld [vmem:[#allocation35_spill] sm:$0xff] }
 0x198   : > { %7674 = vmatprep.mubr.f32.mxu1 %v10058_v37  ;;  %7790 = vmatpush3.msra.mxu1 %v12724_v20  ;;  %v2213_v9 = vadd.f32 %v7522_v43, %v1952_v62  ;;  %v2579_v47 = vsub.f32 %v10049_v0, %v12311_v57  ;;  %v2590_v17 = vand.u32 4294901760, %v2589_v54  ;;  %v12726_v52 = vand.u32 4294901760, %v10056_v42 }
 0x199   : > { %7588 = vmatprep.mubr.f32.mxu0 %v2560_v2  ;;  %7711 = vmatprep.subr.mxu0 %v12725_v14  ;;  %v10085_v37 = vsub.f32 %v2265_v40, %v10072_v10  ;;  %v10087_v56 = vand.u32 4294901760, %v2264_v1  ;;  %v1964_v63 = vadd.f32 %v7469_v24, %v9699_v18  ;;  %v2218_v2 = vpop.f32.mrf.mxu1  ;;  %v2207_v62 = vadd.f32 %v2206_v41, %v1946_v30  ;;  %v1957_v43 = vpop.f32.mrf.mxu0 }
 0x19a   : > { %v2609_v34 = vsub.f32 %v10056_v42, %v12726_v52  ;;  %7589 = vmatmul.mubr.f32.gmra.mxu0 %v2570_v49  ;;  %7675 = vmatmul.mubr.f32.gmra.mxu1 %v10042_v38  ;;  %v2267_v29 = vmax.f32 %v2213_v9, 0.0  ;;  %v2580_v54 = vand.u32 4294901760, %v2579_v47  ;;  %v12314_v57 = vand.u32 4294901760, %v10070_v33  ;;  %v12728_v52 = vld [vmem:[#allocation33_spill] sm:$0xff]  ;;  %v12730_v38 = vld [vmem:[#allocation36_spill] sm:$0xff] }
 0x19b   : > { %12727 = vst [vmem:[#allocation64_spill] sm:$0xff] %v10087_v56  ;;  %7712 = vmatpush3.msra.mxu0 %v12725_v14  ;;  %7791 = vmatprep.subr.mxu1 %v12728_v52  ;;  %v12319_v40 = vand.u32 4294901760, %v10085_v37  ;;  %v10096_v53 = vsub.f32 %v2264_v1, %v10087_v56  ;;  %v2225_v18 = vadd.f32 %v7525_v32, %v1964_v63  ;;  %v2266_v9 = vmax.f32 %v2207_v62, 0.0  ;;  %v7472_v30 = vpop.f32.mrf.mxu0  ;;  %v7528_v24 = vpop.f32.mrf.mxu1  ;;  %v12729_v1 = vld [vmem:[#allocation39_spill] sm:$0xff] }
 0x19c   : > { %v1958_v49 = vadd.f32 %v1957_v43, %v9791_v13  ;;  %7677 = vmatprep.mubr.f32.mxu1 %v10087_v56  ;;  %7792 = vmatpush3.msra.mxu1 %v12728_v52  ;;  %v10101_v41 = vand.u32 4294901760, %v2267_v29  ;;  %v2599_v47 = vsub.f32 %v10070_v33, %v12314_v57  ;;  %v2610_v14 = vand.u32 4294901760, %v2609_v34 }
 0x19d   : > { %7591 = vmatprep.mubr.f32.mxu0 %v2580_v54  ;;  %7713 = vmatprep.subr.mxu0 %v12729_v1  ;;  %v2629_v13 = vsub.f32 %v10085_v37, %v12319_v40  ;;  %v2269_v32 = vmax.f32 %v2225_v18, 0.0  ;;  %v1976_v43 = vadd.f32 %v7472_v30, %v9722_v22  ;;  %v10115_v54 = vand.u32 4294901760, %v2266_v9  ;;  %v1969_v57 = vpop.f32.mrf.mxu0  ;;  %v12733_v40 = vld [vmem:[#allocation40_spill] sm:$0xff] }
 0x19e   : > { %v2219_v63 = vadd.f32 %v2218_v2, %v1958_v49  ;;  %7592 = vmatmul.mubr.f32.gmra.mxu0 %v2590_v17  ;;  %7678 = vmatmul.mubr.f32.gmra.mxu1 %v10072_v10  ;;  %v10113_v62 = vsub.f32 %v2267_v29, %v10101_v41  ;;  %v2600_v34 = vand.u32 4294901760, %v2599_v47  ;;  %v12320_v56 = vand.u32 4294901760, %v10096_v53  ;;  %v12731_v29 = vld [vmem:[#allocation42_spill] sm:$0xff]  ;;  %v2230_v47 = vpop.f32.mrf.mxu1 }
 0x19f   : > { %7714 = vmatpush3.msra.mxu0 %v12729_v1  ;;  %7793 = vmatprep.subr.mxu1 %v12730_v38  ;;  %v10120_v18 = vand.u32 4294901760, %v2269_v32  ;;  %v2237_v22 = vadd.f32 %v7528_v24, %v1976_v43  ;;  %v1970_v17 = vadd.f32 %v1969_v57, %v9805_v15  ;;  %v10127_v30 = vsub.f32 %v2266_v9, %v10115_v54 }
 0x1a0   : > { %v2268_v2 = vmax.f32 %v2219_v63, 0.0  ;;  %7794 = vmatpush3.msra.mxu1 %v12730_v38  ;;  %7715 = vmatprep.subr.mxu0 %v12731_v29  ;;  %v12321_v49 = vand.u32 4294901760, %v10113_v62  ;;  %v2619_v1 = vsub.f32 %v10096_v53, %v12320_v56 }
 0x1a1   : > { %7594 = vmatprep.mubr.f32.mxu0 %v2600_v34  ;;  %7680 = vmatprep.mubr.f32.mxu1 %v10115_v54  ;;  %v10134_v24 = vsub.f32 %v2269_v32, %v10120_v18  ;;  %v2271_v57 = vmax.f32 %v2237_v22, 0.0  ;;  %v2231_v63 = vadd.f32 %v2230_v47, %v1970_v17  ;;  %v2630_v34 = vand.u32 4294901760, %v2629_v13  ;;  %v12734_v47 = vld [vmem:[#allocation43_spill] sm:$0xff] }
 0x1a2   : > { %v10136_v15 = vand.u32 4294901760, %v2268_v2  ;;  %7595 = vmatmul.mubr.f32.gmra.mxu0 %v2610_v14  ;;  %7681 = vmatmul.mubr.f32.gmra.mxu1 %v10101_v41  ;;  %v2649_v9 = vsub.f32 %v10113_v62, %v12321_v49  ;;  %v2620_v43 = vand.u32 4294901760, %v2619_v1  ;;  %v12322_v56 = vand.u32 4294901760, %v10127_v30 }
 0x1a3   : > { %7795 = vmatprep.subr.mxu1 %v12733_v40  ;;  %7716 = vmatpush3.msra.mxu0 %v12731_v29  ;;  %v12325_v32 = vand.u32 4294901760, %v10134_v24  ;;  %v10149_v14 = vand.u32 4294901760, %v2271_v57  ;;  %v2270_v17 = vmax.f32 %v2231_v63, 0.0 }
 0x1a4   : > { %12732 = vst [vmem:[#allocation3_spill] sm:$0xff] %v10136_v15  ;;  %v10147_v22 = vsub.f32 %v2268_v2, %v10136_v15  ;;  %7683 = vmatprep.mubr.f32.mxu1 %v10136_v15  ;;  %7796 = vmatpush3.msra.mxu1 %v12733_v40  ;;  %v2639_v13 = vsub.f32 %v10127_v30, %v12322_v56  ;;  %v2650_v49 = vand.u32 4294901760, %v2649_v9 }
 0x1a5   : > { %7597 = vmatprep.mubr.f32.mxu0 %v2620_v43  ;;  %7797 = vmatprep.subr.mxu1 %v12734_v47  ;;  %v10158_v29 = vsub.f32 %v2271_v57, %v10149_v14  ;;  %v10160_v1 = vand.u32 4294901760, %v2270_v17  ;;  %v12736_v43 = vld [vmem:[#allocation45_spill] sm:$0xff]  ;;  %v2669_v56 = vsub.f32 %v10134_v24, %v12325_v32 }
 0x1a6   : > { %7598 = vmatmul.mubr.f32.gmra.mxu0 %v2630_v34  ;;  %7684 = vmatmul.mubr.f32.gmra.mxu1 %v10120_v18  ;;  %v12328_v2 = vand.u32 4294901760, %v10147_v22  ;;  %v2640_v63 = vand.u32 4294901760, %v2639_v13  ;;  %v12737_v34 = vld [vmem:[#allocation46_spill] sm:$0xff] }
 0x1a7   : > { %12735 = vst [vmem:[#allocation14_spill] sm:$0xff] %v10160_v1  ;;  %7798 = vmatpush3.msra.mxu1 %v12734_v47  ;;  %7717 = vmatprep.subr.mxu0 %v12736_v43  ;;  %v2688_v57 = vand.u32 4294901760, %v10158_v29  ;;  %v10171_v15 = vsub.f32 %v2270_v17, %v10160_v1  ;;  %v12738_v17 = vand.u32 4294901760, %v9782_v3 }
 0x1a8   : > { %7686 = vmatprep.mubr.f32.mxu1 %v10160_v1  ;;  %7799 = vmatprep.subr.mxu1 %v12737_v34  ;;  %v2659_v9 = vsub.f32 %v10147_v22, %v12328_v2  ;;  %v2670_v2 = vand.u32 4294901760, %v2669_v56 }
 0x1a9   : > { %7600 = vmatprep.mubr.f32.mxu0 %v2640_v63  ;;  %7800 = vmatpush3.msra.mxu1 %v12737_v34  ;;  %v2678_v32 = vand.u32 4294901760, %v10171_v15  ;;  %v2689_v1 = vsub.f32 %v10158_v29, %v2688_v57  ;;  %v12739_v63 = vld [vmem:[#allocation48_spill] sm:$0xff] }
 0x1aa   : > { %7601 = vmatmul.mubr.f32.gmra.mxu0 %v2650_v49  ;;  %7687 = vmatmul.mubr.f32.gmra.mxu1 %v10149_v14  ;;  %v2660_v13 = vand.u32 4294901760, %v2659_v9  ;;  %v12740_v9 = vand.u32 4294901760, %v9769_v45 }
 0x1ab   : > { %7801 = vmatprep.mubr.f32.mxu1 %v12738_v17  ;;  %7718 = vmatpush3.msra.mxu0 %v12736_v43  ;;  %v2679_v49 = vsub.f32 %v10171_v15, %v2678_v32  ;;  %v12741_v17 = vand.u32 4294901760, %v9810_v16  ;;  %v2690_v56 = vand.u32 4294901760, %v2689_v1  ;;  %v12745_v1 = vand.u32 4294901760, %v9827_v55 }
 0x1ac   : > { %7603 = vmatprep.mubr.f32.mxu0 %v2660_v13  ;;  %7719 = vmatprep.subr.mxu0 %v12739_v63  ;;  %v12742_v13 = vld [vmem:[#allocation4_spill] sm:$0xff] }
 0x1ad   : > { %7720 = vmatpush3.msra.mxu0 %v12739_v63  ;;  %7929 = vmatprep.subr.mxu1 %v12673_v26  ;;  %v2680_v43 = vand.u32 4294901760, %v2679_v49  ;;  %v12743_v63 = vand.u32 4294901760, %v9798_v7  ;;  %v12796_v49 = vld [vmem:[#allocation63_spill] sm:$0xff] }
 0x1ae   : > { %7604 = vmatmul.mubr.f32.gmra.mxu0 %v2670_v2  ;;  %7802 = vmatmul.mubr.f32.vlgmr.msra.gmra.mxu1 %v12740_v9  ;;  %v12744_v2 = vand.u32 4294901760, %v9840_v6  ;;  %v12797_v9 = vld [vmem:[#allocation69_spill] sm:$0xff] }
 0x1af   : > { %7804 = vmatprep.mubr.f32.mxu1 %v12741_v17  ;;  %7849 = vmatprep.subr.mxu0 %v12742_v13  ;;  %v12799_v17 = vld [vmem:[#allocation73_spill] sm:$0xff] }
 0x1b0   : > { %7606 = vmatprep.mubr.f32.mxu0 %v2680_v43  ;;  %7930 = vmatpush3.msra.mxu1 %v12673_v26  ;;  %v12746_v26 = vand.u32 4294901760, %v9861_v58  ;;  %v12798_v43 = vld [vmem:[#allocation67_spill] sm:$0xff] }
 0x1b1   : > { %7931 = vmatprep.subr.mxu1 %v12674_v39 }
 0x1b2   : > { %7607 = vmatmul.mubr.f32.gmra.mxu0 %v2690_v56  ;;  %7805 = vmatmul.mubr.f32.gmra.mxu1 %v12743_v63  ;;  %v12800_v56 = vld [vmem:[#allocation71_spill] sm:$0xff] }
 0x1b3   : > { %7721 = vmatprep.mubr.f32.mxu0 %v9782_v3  ;;  %7807 = vmatprep.mubr.f32.mxu1 %v12744_v2  ;;  %v12747_v3 = vld [vmem:[#allocation7_spill] sm:$0xff]  ;;  %v12802_v2 = vld [vmem:[#allocation77_spill] sm:$0xff] }
 0x1b4   : > { %7932 = vmatpush3.msra.mxu1 %v12674_v39  ;;  %v12749_v39 = vand.u32 4294901760, %v9887_v12 }
 0x1b5   : > { %7933 = vmatprep.subr.mxu1 %v12676_v21 }
 0x1b6   : > { %7722 = vmatmul.mubr.f32.vlgmr.msra.gmra.mxu0 %v9769_v45  ;;  %7808 = vmatmul.mubr.f32.gmra.mxu1 %v12745_v1  ;;  %v12748_v45 = vand.u32 4294901760, %v9848_v23 }
 0x1b7   : > { %7850 = vmatpush3.msra.mxu0 %v12742_v13  ;;  %7724 = vmatprep.mubr.f32.mxu0 %v9810_v16  ;;  %v12750_v16 = vld [vmem:[#allocation10_spill] sm:$0xff]  ;;  %v4316_v13 = vld [vmem:[%s12090_s5 + $0x78] sm:$0xff] }
 0x1b8   : > { %7810 = vmatprep.mubr.f32.mxu1 %v12746_v26  ;;  %7851 = vmatprep.subr.mxu0 %v12747_v3  ;;  %v10381_v63 = vand.u32 4294901760, %v4316_v13  ;;  %v4315_v26 = vld [vmem:[%s12090_s5 + $0x70] sm:$0xff] }
 0x1b9   : > { %7852 = vmatpush3.msra.mxu0 %v12747_v3  ;;  %7934 = vmatpush3.msra.mxu1 %v12676_v21  ;;  %v12752_v21 = vand.u32 4294901760, %v9913_v46  ;;  %v12804_v3 = vld [vmem:[#allocation58_spill] sm:$0xff] }
 0x1ba   : > { %7725 = vmatmul.mubr.f32.gmra.mxu0 %v9798_v7  ;;  %7811 = vmatmul.mubr.f32.gmra.mxu1 %v12748_v45  ;;  %v12751_v7 = vand.u32 4294901760, %v9874_v35  ;;  %12801 = vst [vmem:[#allocation6_spill] sm:$0xff] %v10381_v63  ;;  %v10387_v1 = vsub.f32 %v4316_v13, %v10381_v63 }
 0x1bb   : > { %7727 = vmatprep.mubr.f32.mxu0 %v9840_v6  ;;  %7813 = vmatprep.mubr.f32.mxu1 %v12749_v39  ;;  %v12753_v6 = vld [vmem:[#allocation13_spill] sm:$0xff]  ;;  %v10398_v39 = vand.u32 4294901760, %v4315_v26 }
 0x1bc   : > { %7853 = vmatprep.subr.mxu0 %v12750_v16  ;;  %7935 = vmatprep.subr.mxu1 %v12679_v28  ;;  %12803 = vst [vmem:[#allocation66_spill] sm:$0xff] %v10387_v1  ;;  %v10396_v45 = vand.u32 4294901760, %v10387_v1 }
 0x1bd   : > { %7854 = vmatpush3.msra.mxu0 %v12750_v16  ;;  %7936 = vmatpush3.msra.mxu1 %v12679_v28  ;;  %v12755_v28 = vand.u32 4294901760, %v9939_v48  ;;  %12806 = vst [vmem:[#allocation12_spill] sm:$0xff] %v10398_v39  ;;  %v12807_v16 = vld [vmem:[#allocation2_spill] sm:$0xff] }
 0x1be   : > { %7728 = vmatmul.mubr.f32.gmra.mxu0 %v9827_v55  ;;  %7814 = vmatmul.mubr.f32.gmra.mxu1 %v12751_v7  ;;  %v12754_v55 = vand.u32 4294901760, %v9904_v19  ;;  %12805 = vst [vmem:[#allocation9_spill] sm:$0xff] %v10396_v45  ;;  %v4729_v7 = vsub.f32 %v10387_v1, %v10396_v45 }
 0x1bf   : > { %7730 = vmatprep.mubr.f32.mxu0 %v9861_v58  ;;  %7816 = vmatprep.mubr.f32.mxu1 %v12752_v21  ;;  %v12756_v58 = vld [vmem:[#allocation16_spill] sm:$0xff]  ;;  %v10406_v21 = vsub.f32 %v4315_v26, %v10398_v39 }
 0x1c0   : > { %7855 = vmatprep.subr.mxu0 %v12753_v6  ;;  %7937 = vmatprep.subr.mxu1 %v12684_v60 }
 0x1c1   : > { %7856 = vmatpush3.msra.mxu0 %v12753_v6  ;;  %7938 = vmatpush3.msra.mxu1 %v12684_v60  ;;  %v12758_v60 = vand.u32 4294901760, %v9970_v61  ;;  %12808 = vst [vmem:[#allocation68_spill] sm:$0xff] %v10406_v21  ;;  %v4314_v6 = vld [vmem:[%s12090_s5 + $0x68] sm:$0xff] }
 0x1c2   : > { %7731 = vmatmul.mubr.f32.gmra.mxu0 %v9848_v23  ;;  %7817 = vmatmul.mubr.f32.gmra.mxu1 %v12754_v55  ;;  %v12757_v23 = vand.u32 4294901760, %v9926_v36  ;;  %v12809_v55 = vld [vmem:[#allocation60_spill] sm:$0xff] }
 0x1c3   : > { %7733 = vmatprep.mubr.f32.mxu0 %v9887_v12  ;;  %7819 = vmatprep.mubr.f32.mxu1 %v12755_v28  ;;  %v12759_v12 = vld [vmem:[#allocation19_spill] sm:$0xff]  ;;  %v4730_v28 = vand.u32 4294901760, %v4729_v7 }
 0x1c4   : > { %7857 = vmatprep.subr.mxu0 %v12756_v58  ;;  %7939 = vmatprep.subr.mxu1 %v12694_v27 }
 0x1c5   : > { %7858 = vmatpush3.msra.mxu0 %v12756_v58  ;;  %7940 = vmatpush3.msra.mxu1 %v12694_v27  ;;  %v12761_v27 = vand.u32 4294901760, %v9992_v31  ;;  %v10415_v58 = vand.u32 4294901760, %v10406_v21 }
 0x1c6   : > { %7734 = vmatmul.mubr.f32.gmra.mxu0 %v9874_v35  ;;  %7820 = vmatmul.mubr.f32.gmra.mxu1 %v12757_v23  ;;  %v12760_v35 = vand.u32 4294901760, %v9952_v4  ;;  %v10417_v23 = vand.u32 4294901760, %v4314_v6 }
 0x1c7   : > { %7736 = vmatprep.mubr.f32.mxu0 %v9913_v46  ;;  %7822 = vmatprep.mubr.f32.mxu1 %v12758_v60  ;;  %v12762_v46 = vld [vmem:[#allocation23_spill] sm:$0xff]  ;;  %12810 = vst [vmem:[#allocation17_spill] sm:$0xff] %v10415_v58  ;;  %v12812_v60 = vld [vmem:[#allocation8_spill] sm:$0xff] }
 0x1c8   : > { %7859 = vmatprep.subr.mxu0 %v12759_v12  ;;  %7941 = vmatprep.subr.mxu1 %v12704_v51  ;;  %12811 = vst [vmem:[#allocation15_spill] sm:$0xff] %v10417_v23 }
 0x1c9   : > { %7860 = vmatpush3.msra.mxu0 %v12759_v12  ;;  %7942 = vmatpush3.msra.mxu1 %v12704_v51  ;;  %v12765_v51 = vld [vmem:[#allocation26_spill] sm:$0xff]  ;;  %v4736_v12 = vsub.f32 %v10406_v21, %v10415_v58 }
 0x1ca   : > { %7737 = vmatmul.mubr.f32.gmra.mxu0 %v9904_v19  ;;  %7823 = vmatmul.mubr.f32.gmra.mxu1 %v12760_v35  ;;  %v12763_v19 = vand.u32 4294901760, %v9978_v11  ;;  %v10425_v35 = vsub.f32 %v4314_v6, %v10417_v23 }
 0x1cb   : > { %7739 = vmatprep.mubr.f32.mxu0 %v9939_v48  ;;  %7825 = vmatprep.mubr.f32.mxu1 %v12761_v27  ;;  %v12764_v48 = vand.u32 4294901760, %v10018_v59  ;;  %v4313_v27 = vld [vmem:[%s12090_s5 + $0x60] sm:$0xff] }
 0x1cc   : > { %7861 = vmatprep.subr.mxu0 %v12762_v46  ;;  %7943 = vmatprep.subr.mxu1 %v12709_v8  ;;  %12813 = vst [vmem:[#allocation70_spill] sm:$0xff] %v10425_v35 }
 0x1cd   : > { %7862 = vmatpush3.msra.mxu0 %v12762_v46  ;;  %7944 = vmatpush3.msra.mxu1 %v12709_v8  ;;  %v12768_v8 = vld [vmem:[#allocation29_spill] sm:$0xff] }
 0x1ce   : > { %7740 = vmatmul.mubr.f32.gmra.mxu0 %v9926_v36  ;;  %7826 = vmatmul.mubr.f32.gmra.mxu1 %v12763_v19  ;;  %v12766_v36 = vand.u32 4294901760, %v10007_v5  ;;  %v12814_v46 = vld [vmem:[#allocation5_spill] sm:$0xff]  ;;  %v4737_v19 = vand.u32 4294901760, %v4736_v12 }
 0x1cf   : > { %7742 = vmatprep.mubr.f32.mxu0 %v9970_v61  ;;  %7828 = vmatprep.mubr.f32.mxu1 %v12764_v48  ;;  %v12767_v61 = vand.u32 4294901760, %v10049_v0  ;;  %v10434_v48 = vand.u32 4294901760, %v10425_v35 }
 0x1d0   : > { %7863 = vmatprep.subr.mxu0 %v12765_v51  ;;  %7945 = vmatprep.subr.mxu1 %v12715_v50 }
 0x1d1   : > { %7864 = vmatpush3.msra.mxu0 %v12765_v51  ;;  %7946 = vmatpush3.msra.mxu1 %v12715_v50  ;;  %v12771_v50 = vld [vmem:[#allocation32_spill] sm:$0xff]  ;;  %12815 = vst [vmem:[#allocation18_spill] sm:$0xff] %v10434_v48  ;;  %v10436_v51 = vand.u32 4294901760, %v4313_v27 }
 0x1d2   : > { %7743 = vmatmul.mubr.f32.gmra.mxu0 %v9952_v4  ;;  %7829 = vmatmul.mubr.f32.gmra.mxu1 %v12766_v36  ;;  %v12769_v4 = vand.u32 4294901760, %v10035_v25  ;;  %v12817_v36 = vld [vmem:[#allocation11_spill] sm:$0xff] }
 0x1d3   : > { %7745 = vmatprep.mubr.f32.mxu0 %v9992_v31  ;;  %7831 = vmatprep.mubr.f32.mxu1 %v12767_v61  ;;  %v12770_v31 = vand.u32 4294901760, %v10070_v33  ;;  %12816 = vst [vmem:[#allocation21_spill] sm:$0xff] %v10436_v51  ;;  %v4743_v61 = vsub.f32 %v10425_v35, %v10434_v48 }
 0x1d4   : > { %7865 = vmatprep.subr.mxu0 %v12768_v8  ;;  %7947 = vmatprep.subr.mxu1 %v12720_v44 }
 0x1d5   : > { %7866 = vmatpush3.msra.mxu0 %v12768_v8  ;;  %7948 = vmatpush3.msra.mxu1 %v12720_v44  ;;  %v12774_v44 = vld [vmem:[#allocation37_spill] sm:$0xff]  ;;  %v10444_v8 = vsub.f32 %v4313_v27, %v10436_v51 }
 0x1d6   : > { %7746 = vmatmul.mubr.f32.gmra.mxu0 %v9978_v11  ;;  %7832 = vmatmul.mubr.f32.gmra.mxu1 %v12769_v4  ;;  %v12772_v11 = vand.u32 4294901760, %v10056_v42  ;;  %v4312_v4 = vld [vmem:[%s12090_s5 + $0x58] sm:$0xff] }
 0x1d7   : > { %7748 = vmatprep.mubr.f32.mxu0 %v10018_v59  ;;  %7834 = vmatprep.mubr.f32.mxu1 %v12770_v31  ;;  %v12773_v59 = vand.u32 4294901760, %v10096_v53  ;;  %12818 = vst [vmem:[#allocation72_spill] sm:$0xff] %v10444_v8  ;;  %v12819_v31 = vld [vmem:[#allocation62_spill] sm:$0xff] }
 0x1d8   : > { %7867 = vmatprep.subr.mxu0 %v12771_v50  ;;  %7949 = vmatprep.subr.mxu1 %v12724_v20 }
 0x1d9   : > { %7868 = vmatpush3.msra.mxu0 %v12771_v50  ;;  %7950 = vmatpush3.msra.mxu1 %v12724_v20  ;;  %v12777_v20 = vld [vmem:[#allocation38_spill] sm:$0xff]  ;;  %v4744_v50 = vand.u32 4294901760, %v4743_v61 }
 0x1da   : > { %7749 = vmatmul.mubr.f32.gmra.mxu0 %v10007_v5  ;;  %7835 = vmatmul.mubr.f32.gmra.mxu1 %v12772_v11  ;;  %v12775_v5 = vand.u32 4294901760, %v10085_v37  ;;  %v10453_v11 = vand.u32 4294901760, %v10444_v8 }
 0x1db   : > { %7751 = vmatprep.mubr.f32.mxu0 %v10049_v0  ;;  %7837 = vmatprep.mubr.f32.mxu1 %v12773_v59  ;;  %v12776_v0 = vand.u32 4294901760, %v10127_v30  ;;  %v10455_v59 = vand.u32 4294901760, %v4312_v4 }
 0x1dc   : > { %7869 = vmatprep.subr.mxu0 %v12774_v44  ;;  %7951 = vmatprep.subr.mxu1 %v12728_v52  ;;  %12820 = vst [vmem:[#allocation20_spill] sm:$0xff] %v10453_v11 }
 0x1dd   : > { %7870 = vmatpush3.msra.mxu0 %v12774_v44  ;;  %7952 = vmatpush3.msra.mxu1 %v12728_v52  ;;  %v12780_v52 = vld [vmem:[#allocation41_spill] sm:$0xff]  ;;  %12821 = vst [vmem:[#allocation24_spill] sm:$0xff] %v10455_v59  ;;  %v12822_v44 = vld [vmem:[#allocation64_spill] sm:$0xff] }
 0x1de   : > { %7752 = vmatmul.mubr.f32.gmra.mxu0 %v10035_v25  ;;  %7838 = vmatmul.mubr.f32.gmra.mxu1 %v12775_v5  ;;  %v12778_v25 = vand.u32 4294901760, %v10113_v62  ;;  %v4750_v5 = vsub.f32 %v10444_v8, %v10453_v11 }
 0x1df   : > { %7754 = vmatprep.mubr.f32.mxu0 %v10070_v33  ;;  %7840 = vmatprep.mubr.f32.mxu1 %v12776_v0  ;;  %v12779_v33 = vand.u32 4294901760, %v10147_v22  ;;  %v10463_v0 = vsub.f32 %v4312_v4, %v10455_v59 }
 0x1e0   : > { %7871 = vmatprep.subr.mxu0 %v12777_v20  ;;  %7953 = vmatprep.subr.mxu1 %v12730_v38 }
 0x1e1   : > { %7872 = vmatpush3.msra.mxu0 %v12777_v20  ;;  %7954 = vmatpush3.msra.mxu1 %v12730_v38  ;;  %v12781_v38 = vand.u32 4294901760, %v10134_v24  ;;  %12823 = vst [vmem:[#allocation74_spill] sm:$0xff] %v10463_v0  ;;  %v4311_v20 = vld [vmem:[%s12090_s5 + $0x50] sm:$0xff] }
 0x1e2   : > { %7755 = vmatmul.mubr.f32.gmra.mxu0 %v10056_v42  ;;  %7841 = vmatmul.mubr.f32.gmra.mxu1 %v12778_v25  ;;  %v12783_v42 = vld [vmem:[#allocation50_spill] sm:$0xff]  ;;  %v4751_v25 = vand.u32 4294901760, %v4750_v5 }
 0x1e3   : > { %7757 = vmatprep.mubr.f32.mxu0 %v10096_v53  ;;  %7843 = vmatprep.mubr.f32.mxu1 %v12779_v33  ;;  %v12782_v53 = vld [vmem:[#allocation44_spill] sm:$0xff]  ;;  %v10472_v33 = vand.u32 4294901760, %v10463_v0 }
 0x1e4   : > { %7873 = vmatprep.subr.mxu0 %v12780_v52  ;;  %7955 = vmatprep.subr.mxu1 %v12733_v40 }
 0x1e5   : > { %7874 = vmatpush3.msra.mxu0 %v12780_v52  ;;  %7956 = vmatpush3.msra.mxu1 %v12733_v40  ;;  %v12785_v40 = vld [vmem:[#allocation53_spill] sm:$0xff]  ;;  %12824 = vst [vmem:[#allocation22_spill] sm:$0xff] %v10472_v33  ;;  %v10474_v52 = vand.u32 4294901760, %v4311_v20 }
 0x1e6   : > { %7758 = vmatmul.mubr.f32.gmra.mxu0 %v10085_v37  ;;  %7844 = vmatmul.mubr.f32.gmra.mxu1 %v12781_v38  ;;  %v12784_v37 = vld [vmem:[#allocation47_spill] sm:$0xff]  ;;  %v4757_v38 = vsub.f32 %v10463_v0, %v10472_v33 }
 0x1e7   : > { %7760 = vmatprep.mubr.f32.mxu0 %v10127_v30  ;;  %7846 = vmatprep.mubr.f32.mxu1 %v2678_v32  ;;  %v12787_v30 = vld [vmem:[#allocation49_spill] sm:$0xff]  ;;  %v12788_v32 = vld [vmem:[#allocation51_spill] sm:$0xff]  ;;  %12825 = vst [vmem:[#allocation27_spill] sm:$0xff] %v10474_v52 }
 0x1e8   : > { %7875 = vmatprep.subr.mxu0 %v12782_v53  ;;  %7957 = vmatprep.subr.mxu1 %v12734_v47 }
 0x1e9   : > { %7876 = vmatpush3.msra.mxu0 %v12782_v53  ;;  %7958 = vmatpush3.msra.mxu1 %v12734_v47  ;;  %v12792_v47 = vld [vmem:[#allocation56_spill] sm:$0xff]  ;;  %v10482_v53 = vsub.f32 %v4311_v20, %v10474_v52 }
 0x1ea   : > { %7761 = vmatmul.mubr.f32.gmra.mxu0 %v10113_v62  ;;  %7847 = vmatmul.mubr.f32.gmra.mxu1 %v2688_v57  ;;  %v12786_v62 = vld [vmem:[#allocation52_spill] sm:$0xff]  ;;  %v12794_v57 = vld [vmem:[#allocation59_spill] sm:$0xff] }
 0x1eb   : > { %7763 = vmatprep.mubr.f32.mxu0 %v10147_v22  ;;  %7961 = vmatprep.mubr.f32.mxu1 %v12783_v42  ;;  %v12789_v22 = vld [vmem:[#allocation55_spill] sm:$0xff]  ;;  %12826 = vst [vmem:[#allocation75_spill] sm:$0xff] %v10482_v53 }
 0x1ec   : > { %7959 = vmatprep.subr.mxu1 %v12737_v34  ;;  %7877 = vmatprep.subr.mxu0 %v12784_v37 }
 0x1ed   : > { %7960 = vmatpush3.msra.mxu1 %v12737_v34  ;;  %7878 = vmatpush3.msra.mxu0 %v12784_v37  ;;  %v12795_v34 = vld [vmem:[#allocation65_spill] sm:$0xff]  ;;  %v4758_v37 = vand.u32 4294901760, %v4757_v38 }
 0x1ee   : > { %7764 = vmatmul.mubr.f32.gmra.mxu0 %v10134_v24  ;;  %7962 = vmatmul.mubr.f32.vlgmr.msra.gmra.mxu1 %v12785_v40  ;;  %v12790_v24 = vld [vmem:[#allocation54_spill] sm:$0xff] }
 0x1ef   : > { %7766 = vmatprep.mubr.f32.mxu0 %v10171_v15  ;;  %7964 = vmatprep.mubr.f32.mxu1 %v12786_v62  ;;  %v12791_v15 = vld [vmem:[#allocation57_spill] sm:$0xff] }
 0x1f0   : > { %7879 = vmatprep.subr.mxu0 %v12787_v30  ;;  %8089 = vmatprep.subr.mxu1 %v4730_v28 }
 0x1f1   : > { %7880 = vmatpush3.msra.mxu0 %v12787_v30  ;;  %8090 = vmatpush3.msra.mxu1 %v4730_v28  ;;  %v12829_v30 = vld [vmem:[#allocation3_spill] sm:$0xff] }
 0x1f2   : > { %7767 = vmatmul.mubr.f32.gmra.mxu0 %v10158_v29  ;;  %7965 = vmatmul.mubr.f32.gmra.mxu1 %v12788_v32  ;;  %v12793_v29 = vld [vmem:[#allocation61_spill] sm:$0xff] }
 0x1f3   : > { %7881 = vmatprep.mubr.f32.mxu0 %v12783_v42  ;;  %7967 = vmatprep.mubr.f32.mxu1 %v12789_v22  ;;  %v4310_v42 = vld [vmem:[%s12090_s5 + $0x48] sm:$0xff] }
 0x1f4   : > { %8009 = vmatprep.subr.mxu0 %v10381_v63  ;;  %8091 = vmatprep.subr.mxu1 %v4737_v19 }
 0x1f5   : > { %8092 = vmatpush3.msra.mxu1 %v4737_v19 }
 0x1f6   : > { %7882 = vmatmul.mubr.f32.vlgmr.msra.gmra.mxu0 %v12785_v40  ;;  %7968 = vmatmul.mubr.f32.gmra.mxu1 %v12790_v24  ;;  %v10491_v40 = vand.u32 4294901760, %v10482_v53 }
 0x1f7   : > { %7884 = vmatprep.mubr.f32.mxu0 %v12786_v62  ;;  %7970 = vmatprep.mubr.f32.mxu1 %v12791_v15  ;;  %v10493_v62 = vand.u32 4294901760, %v4310_v42 }
 0x1f8   : > { %8010 = vmatpush3.msra.mxu0 %v10381_v63  ;;  %8093 = vmatprep.subr.mxu1 %v4744_v50  ;;  %12827 = vst [vmem:[#allocation25_spill] sm:$0xff] %v10491_v40 }
 0x1f9   : > { %8011 = vmatprep.subr.mxu0 %v10398_v39  ;;  %8094 = vmatpush3.msra.mxu1 %v4744_v50  ;;  %12828 = vst [vmem:[#allocation30_spill] sm:$0xff] %v10493_v62 }
 0x1fa   : > { %7885 = vmatmul.mubr.f32.gmra.mxu0 %v12788_v32  ;;  %7971 = vmatmul.mubr.f32.gmra.mxu1 %v12792_v47  ;;  %v4764_v32 = vsub.f32 %v10482_v53, %v10491_v40 }
 0x1fb   : > { %7887 = vmatprep.mubr.f32.mxu0 %v12789_v22  ;;  %7973 = vmatprep.mubr.f32.mxu1 %v12793_v29  ;;  %v10501_v22 = vsub.f32 %v4310_v42, %v10493_v62  ;;  %v10613_v42 = vld [vmem:[%s12089_s4] ss:$0 sm:$0xff] }
 0x1fc   : > { %8012 = vmatpush3.msra.mxu0 %v10398_v39  ;;  %8095 = vmatprep.subr.mxu1 %v4751_v25 }
 0x1fd   : > { %8013 = vmatprep.subr.mxu0 %v10417_v23  ;;  %8096 = vmatpush3.msra.mxu1 %v4751_v25  ;;  %12830 = vst [vmem:[#allocation76_spill] sm:$0xff] %v10501_v22 }
 0x1fe   : > { %7888 = vmatmul.mubr.f32.gmra.mxu0 %v12790_v24  ;;  %7974 = vmatmul.mubr.f32.gmra.mxu1 %v12794_v57  ;;  %v4309_v24 = vld [vmem:[%s12090_s5 + $0x40] sm:$0xff] }
 0x1ff   : > { %7890 = vmatprep.mubr.f32.mxu0 %v12791_v15  ;;  %7976 = vmatprep.mubr.f32.mxu1 %v12795_v34  ;;  %v4765_v15 = vand.u32 4294901760, %v4764_v32 }
 0x200   : > { %8014 = vmatpush3.msra.mxu0 %v10417_v23  ;;  %8097 = vmatprep.subr.mxu1 %v4758_v37 }
 0x201   : > { %8015 = vmatprep.subr.mxu0 %v10436_v51  ;;  %8098 = vmatpush3.msra.mxu1 %v4758_v37 }
 0x202   : > { %7891 = vmatmul.mubr.f32.gmra.mxu0 %v12792_v47  ;;  %7977 = vmatmul.mubr.f32.gmra.mxu1 %v12796_v49  ;;  %v10510_v47 = vand.u32 4294901760, %v10501_v22 }
 0x203   : > { %7893 = vmatprep.mubr.f32.mxu0 %v12793_v29  ;;  %7979 = vmatprep.mubr.f32.mxu1 %v12797_v9  ;;  %v10512_v29 = vand.u32 4294901760, %v4309_v24 }
 0x204   : > { %8016 = vmatpush3.msra.mxu0 %v10436_v51  ;;  %12831 = vst [vmem:[#allocation28_spill] sm:$0xff] %v10510_v47  ;;  %8099 = vmatprep.subr.mxu1 %v4765_v15 }
 0x205   : > { %8017 = vmatprep.subr.mxu0 %v10455_v59  ;;  %12832 = vst [vmem:[#allocation34_spill] sm:$0xff] %v10512_v29  ;;  %8100 = vmatpush3.msra.mxu1 %v4765_v15 }
 0x206   : > { %7894 = vmatmul.mubr.f32.gmra.mxu0 %v12794_v57  ;;  %7980 = vmatmul.mubr.f32.gmra.mxu1 %v12798_v43  ;;  %v12833_v57 = vld [vmem:[#allocation14_spill] sm:$0xff] }
 0x207   : > { %7896 = vmatprep.mubr.f32.mxu0 %v12795_v34  ;;  %7982 = vmatprep.mubr.f32.mxu1 %v12799_v17  ;;  %v4771_v34 = vsub.f32 %v10501_v22, %v10510_v47 }
 0x208   : > { %8018 = vmatpush3.msra.mxu0 %v10455_v59 }
 0x209   : > { %8019 = vmatprep.subr.mxu0 %v10474_v52 }
 0x20a   : > { %7897 = vmatmul.mubr.f32.gmra.mxu0 %v12796_v49  ;;  %7983 = vmatmul.mubr.f32.gmra.mxu1 %v12800_v56  ;;  %v4308_v49 = vld [vmem:[%s12090_s5 + $0x38] sm:$0xff] }
 0x20b   : > { %7899 = vmatprep.mubr.f32.mxu0 %v12797_v9  ;;  %7985 = vmatprep.mubr.f32.mxu1 %v12802_v2  ;;  %v10526_v9 = vand.u32 4294901760, %v4308_v49 }
 0x20c   : > { %8020 = vmatpush3.msra.mxu0 %v10474_v52 }
 0x20d   : > { %8021 = vmatprep.subr.mxu0 %v10493_v62  ;;  %12835 = vst [vmem:[#allocation35_spill] sm:$0xff] %v10526_v9  ;;  %v10539_v13 = vsub.f32 %v4308_v49, %v10526_v9 }
 0x20e   : > { %7900 = vmatmul.mubr.f32.gmra.mxu0 %v12798_v43  ;;  %7986 = vmatmul.mubr.f32.gmra.mxu1 %v12804_v3 }
 0x20f   : > { %7902 = vmatprep.mubr.f32.mxu0 %v12799_v17  ;;  %7988 = vmatprep.mubr.f32.mxu1 %v12807_v16  ;;  %v4307_v17 = vld [vmem:[%s12090_s5 + $0x30] sm:$0xff]  ;;  %12837 = vst [vmem:[#allocation39_spill] sm:$0xff] %v10539_v13 }
 0x210   : > { %8022 = vmatpush3.msra.mxu0 %v10493_v62 }
 0x211   : > { %8023 = vmatprep.subr.mxu0 %v10512_v29 }
 0x212   : > { %7903 = vmatmul.mubr.f32.gmra.mxu0 %v12800_v56  ;;  %7989 = vmatmul.mubr.f32.gmra.mxu1 %v12809_v55  ;;  %v10541_v56 = vand.u32 4294901760, %v4307_v17 }
 0x213   : > { %7905 = vmatprep.mubr.f32.mxu0 %v12802_v2  ;;  %7991 = vmatprep.mubr.f32.mxu1 %v12812_v60  ;;  %v4306_v2 = vld [vmem:[%s12090_s5 + $0x28] sm:$0xff] }
 0x214   : > { %8024 = vmatpush3.msra.mxu0 %v10512_v29  ;;  %12838 = vst [vmem:[#allocation36_spill] sm:$0xff] %v10541_v56  ;;  %v10558_v7 = vand.u32 4294901760, %v4306_v2 }
 0x215   : > { %8025 = vmatprep.subr.mxu0 %v10526_v9 }
 0x216   : > { %7906 = vmatmul.mubr.f32.gmra.mxu0 %v12804_v3  ;;  %7992 = vmatmul.mubr.f32.gmra.mxu1 %v12814_v46  ;;  %v10552_v3 = vand.u32 4294901760, %v10539_v13  ;;  %12841 = vst [vmem:[#allocation43_spill] sm:$0xff] %v10558_v7  ;;  %v10574_v27 = vsub.f32 %v4306_v2, %v10558_v7 }
 0x217   : > { %7908 = vmatprep.mubr.f32.mxu0 %v12807_v16  ;;  %7994 = vmatprep.mubr.f32.mxu1 %v12817_v36  ;;  %v10556_v16 = vsub.f32 %v4307_v17, %v10541_v56  ;;  %v4301_v17 = vld [vmem:[%s12090_s5] sm:$0xff] }
 0x218   : > { %8026 = vmatpush3.msra.mxu0 %v10526_v9  ;;  %12839 = vst [vmem:[#allocation42_spill] sm:$0xff] %v10552_v3  ;;  %12843 = vst [vmem:[#allocation46_spill] sm:$0xff] %v10574_v27  ;;  %v10588_v4 = vand.u32 4294901760, %v10574_v27 }
 0x219   : > { %8027 = vmatprep.subr.mxu0 %v10541_v56  ;;  %12840 = vst [vmem:[#allocation40_spill] sm:$0xff] %v10556_v16  ;;  %v10571_v12 = vand.u32 4294901760, %v10556_v16 }
 0x21a   : > { %7909 = vmatmul.mubr.f32.gmra.mxu0 %v12809_v55  ;;  %7995 = vmatmul.mubr.f32.gmra.mxu1 %v12819_v31  ;;  %v4305_v55 = vld [vmem:[%s12090_s5 + $0x20] sm:$0xff]  ;;  %12845 = vst [vmem:[#allocation4_spill] sm:$0xff] %v10588_v4  ;;  %v4799_v25 = vsub.f32 %v10574_v27, %v10588_v4 }
 0x21b   : > { %7911 = vmatprep.mubr.f32.mxu0 %v12812_v60  ;;  %7997 = vmatprep.mubr.f32.mxu1 %v12822_v44  ;;  %v4785_v60 = vsub.f32 %v10539_v13, %v10552_v3  ;;  %12842 = vst [vmem:[#allocation45_spill] sm:$0xff] %v10571_v12  ;;  %v4792_v61 = vsub.f32 %v10556_v16, %v10571_v12 }
 0x21c   : > { %8028 = vmatpush3.msra.mxu0 %v10541_v56  ;;  %v4800_v32 = vand.u32 4294901760, %v4799_v25 }
 0x21d   : > { %8029 = vmatprep.subr.mxu0 %v10558_v7  ;;  %v4793_v20 = vand.u32 4294901760, %v4792_v61  ;;  %v10651_v61 = vand.u32 4294901760, %v4301_v17 }
 0x21e   : > { %7912 = vmatmul.mubr.f32.gmra.mxu0 %v12814_v46  ;;  %7998 = vmatmul.mubr.f32.gmra.mxu1 %v10072_v10  ;;  %v4304_v46 = vld [vmem:[%s12090_s5 + $0x18] sm:$0xff] }
 0x21f   : > { %7914 = vmatprep.mubr.f32.mxu0 %v12817_v36  ;;  %8000 = vmatprep.mubr.f32.mxu1 %v10115_v54  ;;  %v4786_v36 = vand.u32 4294901760, %v4785_v60  ;;  %v10595_v50 = vand.u32 4294901760, %v4304_v46  ;;  %12856 = vst [vmem:[#allocation38_spill] sm:$0xff] %v10651_v61 }
 0x220   : > { %8030 = vmatpush3.msra.mxu0 %v10558_v7 }
 0x221   : > { %12847 = vst [vmem:[#allocation10_spill] sm:$0xff] %v10595_v50  ;;  %v10617_v37 = vsub.f32 %v4304_v46, %v10595_v50 }
 0x222   : > { %7915 = vmatmul.mubr.f32.gmra.mxu0 %v12819_v31  ;;  %8001 = vmatmul.mubr.f32.gmra.mxu1 %v10101_v41 }
 0x223   : > { %7917 = vmatprep.mubr.f32.mxu0 %v12822_v44  ;;  %8003 = vmatprep.mubr.f32.mxu1 %v12829_v30  ;;  %v4303_v44 = vld [vmem:[%s12090_s5 + $0x10] sm:$0xff]  ;;  %12850 = vst [vmem:[#allocation19_spill] sm:$0xff] %v10617_v37 }
 0x226   : > { %7918 = vmatmul.mubr.f32.gmra.mxu0 %v10072_v10  ;;  %8004 = vmatmul.mubr.f32.gmra.mxu1 %v10120_v18  ;;  %v10520_v10 = vsub.f32 %v4309_v24, %v10512_v29 }
 0x227   : > { %7920 = vmatprep.mubr.f32.mxu0 %v10115_v54  ;;  %8006 = vmatprep.mubr.f32.mxu1 %v12833_v57  ;;  %v4772_v54 = vand.u32 4294901760, %v4771_v34 }
 0x228   : > { %12834 = vst [vmem:[#allocation31_spill] sm:$0xff] %v10520_v10  ;;  %v10531_v43 = vand.u32 4294901760, %v10520_v10 }
 0x229   : > { %8101 = vmatprep.subr.mxu1 %v4772_v54 }
 0x22a   : > { %7921 = vmatmul.mubr.f32.gmra.mxu0 %v10101_v41  ;;  %8007 = vmatmul.mubr.f32.gmra.mxu1 %v10149_v14  ;;  %12836 = vst [vmem:[#allocation33_spill] sm:$0xff] %v10531_v43  ;;  %v4778_v41 = vsub.f32 %v10520_v10, %v10531_v43 }
 0x22b   : > { %7923 = vmatprep.mubr.f32.mxu0 %v12829_v30  ;;  %v10549_v26 = vpop.f32.mrf.mxu1  ;;  %8102 = vmatpush3.msra.mxu1 %v4772_v54  ;;  %v4302_v30 = vld [vmem:[%s12090_s5 + $0x8] sm:$0xff]  ;;  %v10631_v54 = vand.u32 4294901760, %v10617_v37 }
 0x22c   : > { %v4779_v6 = vand.u32 4294901760, %v4778_v41 }
 0x22d   : > { %v10565_v28 = vpop.f32.mrf.mxu1  ;;  %12853 = vst [vmem:[#allocation29_spill] sm:$0xff] %v10631_v54 }
 0x22e   : > { %7924 = vmatmul.mubr.f32.gmra.mxu0 %v10120_v18  ;;  %v10576_v18 = vand.u32 4294901760, %v4305_v55  ;;  %8103 = vmatprep.subr.mxu1 %v4779_v6 }
 0x22f   : > { %7926 = vmatprep.mubr.f32.mxu0 %v12833_v57  ;;  %8104 = vmatpush3.msra.mxu1 %v4779_v6  ;;  %v10628_v57 = vand.u32 4294901760, %v4302_v30 }
 0x230   : > { %12844 = vst [vmem:[#allocation48_spill] sm:$0xff] %v10576_v18  ;;  %v10582_v19 = vpop.f32.mrf.mxu1  ;;  %v10591_v31 = vsub.f32 %v4305_v55, %v10576_v18  ;;  %8031 = vmatprep.subr.mxu0 %v10576_v18  ;;  %8105 = vmatprep.subr.mxu1 %v4786_v36 }
 0x231   : > { %8032 = vmatpush3.msra.mxu0 %v10576_v18  ;;  %8106 = vmatpush3.msra.mxu1 %v4786_v36  ;;  %12852 = vst [vmem:[#allocation26_spill] sm:$0xff] %v10628_v57  ;;  %v10643_v55 = vsub.f32 %v4302_v30, %v10628_v57  ;;  %v4813_v36 = vsub.f32 %v10617_v37, %v10631_v54 }
 0x232   : > { %12846 = vst [vmem:[#allocation7_spill] sm:$0xff] %v10591_v31  ;;  %7927 = vmatmul.mubr.f32.gmra.mxu0 %v10149_v14  ;;  %v10600_v5 = vpop.f32.mrf.mxu1  ;;  %v10606_v38 = vand.u32 4294901760, %v10591_v31  ;;  %v10608_v14 = vand.u32 4294901760, %v4303_v44  ;;  %8033 = vmatprep.subr.mxu0 %v10595_v50 }
 0x233   : > { %8107 = vmatprep.subr.mxu1 %v4793_v20  ;;  %8034 = vmatpush3.msra.mxu0 %v10595_v50  ;;  %12855 = vst [vmem:[#allocation37_spill] sm:$0xff] %v10643_v55  ;;  %v10660_v25 = vand.u32 4294901760, %v10643_v55 }
 0x234   : > { %12848 = vst [vmem:[#allocation13_spill] sm:$0xff] %v10606_v38  ;;  %12849 = vst [vmem:[#allocation16_spill] sm:$0xff] %v10608_v14  ;;  %v4806_v24 = vsub.f32 %v10591_v31, %v10606_v38  ;;  %v10626_v15 = vsub.f32 %v4303_v44, %v10608_v14  ;;  %v7563_v34 = vpop.f32.mrf.mxu0  ;;  %8108 = vmatpush3.msra.mxu1 %v4793_v20  ;;  %8035 = vmatprep.subr.mxu0 %v10608_v14 }
 0x235   : > { %v7649_v49 = vpop.f32.mrf.mxu1  ;;  %v2393_v41 = vadd.f32 %v7563_v34, %v10613_v42  ;;  %8109 = vmatprep.subr.mxu1 %v4800_v32  ;;  %8036 = vmatpush3.msra.mxu0 %v10608_v14  ;;  %12857 = vst [vmem:[#allocation41_spill] sm:$0xff] %v10660_v25  ;;  %v10664_v34 = vsub.f32 %v4301_v17, %v10651_v61 }
 0x236   : > { %12851 = vst [vmem:[#allocation23_spill] sm:$0xff] %v10626_v15  ;;  %v4807_v2 = vand.u32 4294901760, %v4806_v24  ;;  %v10639_v6 = vand.u32 4294901760, %v10626_v15  ;;  %v10645_v60 = vpop.f32.mrf.mxu0  ;;  %8110 = vmatpush3.msra.mxu1 %v4800_v32  ;;  %8037 = vmatprep.subr.mxu0 %v10628_v57  ;;  %v4814_v24 = vand.u32 4294901760, %v4813_v36 }
 0x237   : > { %v10647_v46 = vpop.f32.mrf.mxu1  ;;  %v10655_v44 = vadd.f32 %v10549_v26, %v2393_v41  ;;  %8038 = vmatpush3.msra.mxu0 %v10628_v57  ;;  %12858 = vst [vmem:[#allocation44_spill] sm:$0xff] %v10664_v34 }
 0x238   : > { %12854 = vst [vmem:[#allocation32_spill] sm:$0xff] %v10639_v6  ;;  %8111 = vmatprep.subr.mxu1 %v4807_v2  ;;  %v4820_v20 = vsub.f32 %v10626_v15, %v10639_v6  ;;  %8039 = vmatprep.subr.mxu0 %v10651_v61  ;;  %v4827_v6 = vsub.f32 %v10643_v55, %v10660_v25 }
 0x239   : > { %v7566_v30 = vpop.f32.mrf.mxu0  ;;  %v7652_v32 = vpop.f32.mrf.mxu1  ;;  %8112 = vmatpush3.msra.mxu1 %v4807_v2  ;;  %8040 = vmatpush3.msra.mxu0 %v10651_v61  ;;  %v10676_v2 = vand.u32 4294901760, %v10664_v34 }
 0x23a   : > { %v2413_v26 = vadd.f32 %v7566_v30, %v10613_v42  ;;  %v4821_v41 = vand.u32 4294901760, %v4820_v20  ;;  %8113 = vmatprep.subr.mxu1 %v4814_v24  ;;  %8169 = vmatprep.subr.mxu0 %v10387_v1  ;;  %v4828_v36 = vand.u32 4294901760, %v4827_v6 }
 0x23b   : > { %v10671_v54 = vpop.f32.mrf.mxu0  ;;  %v10673_v38 = vpop.f32.mrf.mxu1  ;;  %12859 = vst [vmem:[#allocation50_spill] sm:$0xff] %v10676_v2  ;;  %8114 = vmatpush3.msra.mxu1 %v4814_v24  ;;  %v4834_v25 = vsub.f32 %v10664_v34, %v10676_v2 }
 0x23c   : > { %v10680_v17 = vadd.f32 %v10582_v19, %v2413_v26  ;;  %8115 = vmatprep.subr.mxu1 %v4821_v41 }
 0x23d   : > { %v7569_v20 = vpop.f32.mrf.mxu0  ;;  %v7655_v30 = vpop.f32.mrf.mxu1  ;;  %8116 = vmatpush3.msra.mxu1 %v4821_v41  ;;  %v4835_v43 = vand.u32 4294901760, %v4834_v25 }
 0x23e   : > { %v2433_v4 = vadd.f32 %v7569_v20, %v10613_v42  ;;  %8117 = vmatprep.subr.mxu1 %v4828_v36 }
 0x23f   : > { %v10685_v12 = vpop.f32.mrf.mxu0  ;;  %v10687_v3 = vpop.f32.mrf.mxu1  ;;  %8118 = vmatpush3.msra.mxu1 %v4828_v36 }
 0x240   : > { %v10689_v47 = vadd.f32 %v7649_v49, %v2433_v4  ;;  %8119 = vmatprep.subr.mxu1 %v4835_v43 }
 0x241   : > { %v7572_v19 = vpop.f32.mrf.mxu0  ;;  %v7658_v6 = vpop.f32.mrf.mxu1  ;;  %8120 = vmatpush3.msra.mxu1 %v4835_v43 }
 0x242   : > { %v2453_v24 = vadd.f32 %v7572_v19, %v10613_v42  ;;  %8249 = vmatprep.subr.mxu1 %v10381_v63 }
 0x243   : > { %v10692_v26 = vpop.f32.mrf.mxu0  ;;  %v10694_v2 = vpop.f32.mrf.mxu1 }
 0x244   : > { %v10697_v41 = vadd.f32 %v7652_v32, %v2453_v24 }
 0x245   : > { %v7575_v20 = vpop.f32.mrf.mxu0  ;;  %v7661_v40 = vpop.f32.mrf.mxu1 }
 0x246   : > { %v2473_v4 = vadd.f32 %v7575_v20, %v10613_v42 }
 0x247   : > { %v10700_v49 = vpop.f32.mrf.mxu0  ;;  %v10702_v25 = vpop.f32.mrf.mxu1 }
 0x248   : > { %v10704_v36 = vadd.f32 %v7655_v30, %v2473_v4 }
 0x249   : > { %v7578_v19 = vpop.f32.mrf.mxu0  ;;  %v7664_v43 = vpop.f32.mrf.mxu1 }
 0x24a   : > { %v2493_v33 = vadd.f32 %v7578_v19, %v10613_v42 }
 0x24b   : > { %v10707_v11 = vpop.f32.mrf.mxu0  ;;  %v10709_v48 = vpop.f32.mrf.mxu1 }
 0x24c   : > { %v10711_v32 = vadd.f32 %v7658_v6, %v2493_v33 }
 0x24d   : > { %v7581_v24 = vpop.f32.mrf.mxu0  ;;  %v7667_v58 = vpop.f32.mrf.mxu1 }
 0x24e   : > { %v2513_v20 = vadd.f32 %v7581_v24, %v10613_v42 }
 0x24f   : > { %v10714_v45 = vpop.f32.mrf.mxu0  ;;  %v10716_v34 = vpop.f32.mrf.mxu1 }
 0x250   : > { %v10718_v30 = vadd.f32 %v7661_v40, %v2513_v20 }
 0x252   : > { %v7584_v4 = vpop.f32.mrf.mxu0  ;;  %v7670_v61 = vpop.f32.mrf.mxu1 }
 0x253   : > { %v2533_v19 = vadd.f32 %v7584_v4, %v10613_v42 }
 0x254   : > { %v10721_v55 = vpop.f32.mrf.mxu0  ;;  %v10723_v57 = vpop.f32.mrf.mxu1 }
 0x255   : > { %v10725_v33 = vadd.f32 %v7664_v43, %v2533_v19 }
 0x256   : > { %v7587_v6 = vpop.f32.mrf.mxu0  ;;  %v7673_v15 = vpop.f32.mrf.mxu1 }
 0x257   : > { %v2553_v24 = vadd.f32 %v7587_v6, %v10613_v42 }
 0x258   : > { %v10728_v14 = vpop.f32.mrf.mxu0  ;;  %v10730_v37 = vpop.f32.mrf.mxu1 }
 0x259   : > { %v10732_v40 = vadd.f32 %v7667_v58, %v2553_v24 }
 0x25a   : > { %v7590_v20 = vpop.f32.mrf.mxu0  ;;  %v7676_v50 = vpop.f32.mrf.mxu1 }
 0x25b   : > { %v2573_v4 = vadd.f32 %v7590_v20, %v10613_v42 }
 0x25c   : > { %v10735_v31 = vpop.f32.mrf.mxu0  ;;  %v10737_v18 = vpop.f32.mrf.mxu1 }
 0x25d   : > { %12860 = vst [vmem:[#allocation47_spill] sm:$0xff] %v10737_v18  ;;  %v10739_v43 = vadd.f32 %v7670_v61, %v2573_v4 }
 0x25e   : > { %v7593_v19 = vpop.f32.mrf.mxu0  ;;  %v7679_v27 = vpop.f32.mrf.mxu1 }
 0x25f   : > { %v2593_v6 = vadd.f32 %v7593_v19, %v10613_v42 }
 0x260   : > { %v10742_v16 = vpop.f32.mrf.mxu0  ;;  %v10744_v7 = vpop.f32.mrf.mxu1 }
 0x261   : > { %12861 = vst [vmem:[#allocation53_spill] sm:$0xff] %v10744_v7  ;;  %v10746_v58 = vadd.f32 %v7673_v15, %v2593_v6 }
 0x262   : > { %v7596_v24 = vpop.f32.mrf.mxu0  ;;  %v7682_v13 = vpop.f32.mrf.mxu1 }
 0x263   : > { %v2613_v20 = vadd.f32 %v7596_v24, %v10613_v42 }
 0x264   : > { %v10749_v56 = vpop.f32.mrf.mxu0  ;;  %v10751_v10 = vpop.f32.mrf.mxu1 }
 0x265   : > { %12862 = vst [vmem:[#allocation52_spill] sm:$0xff] %v10751_v10  ;;  %v10753_v61 = vadd.f32 %v7676_v50, %v2613_v20 }
 0x266   : > { %v7599_v4 = vpop.f32.mrf.mxu0  ;;  %v7685_v9 = vpop.f32.mrf.mxu1 }
 0x267   : > { %v2633_v19 = vadd.f32 %v7599_v4, %v10613_v42 }
 0x268   : > { %v10756_v22 = vpop.f32.mrf.mxu0  ;;  %v10758_v53 = vpop.f32.mrf.mxu1 }
 0x269   : > { %12863 = vst [vmem:[#allocation49_spill] sm:$0xff] %v10758_v53  ;;  %v10760_v15 = vadd.f32 %v7679_v27, %v2633_v19 }
 0x26a   : > { %v7602_v6 = vpop.f32.mrf.mxu0  ;;  %v7688_v29 = vpop.f32.mrf.mxu1 }
 0x26b   : > { %v2653_v24 = vadd.f32 %v7602_v6, %v10613_v42 }
 0x26c   : > { %v10763_v0 = vpop.f32.mrf.mxu0  ;;  %v10765_v62 = vpop.f32.mrf.mxu1 }
 0x26d   : > { %12864 = vst [vmem:[#allocation51_spill] sm:$0xff] %v10765_v62  ;;  %v10767_v50 = vadd.f32 %v7682_v13, %v2653_v24 }
 0x26e   : > { %v7605_v20 = vpop.f32.mrf.mxu0  ;;  %v10769_v8 = vpop.f32.mrf.mxu1 }
 0x26f   : > { %12865 = vst [vmem:[#allocation55_spill] sm:$0xff] %v10769_v8  ;;  %v2673_v4 = vadd.f32 %v7605_v20, %v10613_v42 }
 0x270   : > { %v10772_v35 = vpop.f32.mrf.mxu0  ;;  %v10774_v52 = vpop.f32.mrf.mxu1 }
 0x271   : > { %12866 = vst [vmem:[#allocation54_spill] sm:$0xff] %v10774_v52  ;;  %v10776_v27 = vadd.f32 %v7685_v9, %v2673_v4 }
 0x272   : > { %v7608_v19 = vpop.f32.mrf.mxu0  ;;  %v10778_v21 = vpop.f32.mrf.mxu1 }
 0x273   : > { %12867 = vst [vmem:[#allocation57_spill] sm:$0xff] %v10778_v21  ;;  %v2693_v6 = vadd.f32 %v7608_v19, %v10613_v42 }
 0x274   : > { %v10781_v59 = vpop.f32.mrf.mxu0  ;;  %v10783_v13 = vpop.f32.mrf.mxu1 }
 0x275   : > { %12868 = vst [vmem:[#allocation56_spill] sm:$0xff] %v10783_v13  ;;  %v10785_v24 = vadd.f32 %v7688_v29, %v2693_v6 }
 0x276   : > { %v10787_v1 = vpop.f32.mrf.mxu0  ;;  %v7809_v20 = vpop.f32.mrf.mxu1 }
 0x278   : > { %v10789_v51 = vpop.f32.mrf.mxu0  ;;  %v10791_v23 = vpop.f32.mrf.mxu1 }
 0x279   : > { %12869 = vst [vmem:[#allocation61_spill] sm:$0xff] %v10791_v23 }
 0x27a   : > { %v10793_v9 = vpop.f32.mrf.mxu0  ;;  %v7812_v4 = vpop.f32.mrf.mxu1 }
 0x27c   : > { %v10795_v39 = vpop.f32.mrf.mxu0  ;;  %v10797_v63 = vpop.f32.mrf.mxu1 }
 0x27d   : > { %12870 = vst [vmem:[#allocation59_spill] sm:$0xff] %v10797_v63 }
 0x27e   : > { %v7729_v19 = vpop.f32.mrf.mxu0  ;;  %v7815_v21 = vpop.f32.mrf.mxu1 }
 0x27f   : > { %v3169_v13 = vadd.f32 %v7729_v19, %v10689_v47 }
 0x280   : > { %v10800_v29 = vpop.f32.mrf.mxu0  ;;  %v10802_v6 = vpop.f32.mrf.mxu1 }
 0x281   : > { %12871 = vst [vmem:[#allocation65_spill] sm:$0xff] %v10800_v29  ;;  %12872 = vst [vmem:[#allocation63_spill] sm:$0xff] %v10802_v6  ;;  %v10804_v52 = vadd.f32 %v7809_v20, %v3169_v13 }
 0x282   : > { %v7732_v62 = vpop.f32.mrf.mxu0  ;;  %v7818_v53 = vpop.f32.mrf.mxu1 }
 0x283   : > { %12873 = vst [vmem:[#allocation69_spill] sm:$0xff] %v10804_v52  ;;  %v3183_v23 = vadd.f32 %v7732_v62, %v10697_v41 }
 0x284   : > { %v10807_v10 = vpop.f32.mrf.mxu0  ;;  %v10809_v8 = vpop.f32.mrf.mxu1 }
 0x285   : > { %12874 = vst [vmem:[#allocation67_spill] sm:$0xff] %v10809_v8  ;;  %v10811_v7 = vadd.f32 %v7812_v4, %v3183_v23 }
 0x286   : > { %v7735_v63 = vpop.f32.mrf.mxu0  ;;  %v7821_v18 = vpop.f32.mrf.mxu1 }
 0x287   : > { %12875 = vst [vmem:[#allocation73_spill] sm:$0xff] %v10811_v7  ;;  %v3197_v47 = vadd.f32 %v7735_v63, %v10704_v36 }
 0x288   : > { %v10814_v19 = vpop.f32.mrf.mxu0  ;;  %v10816_v29 = vpop.f32.mrf.mxu1 }
 0x289   : > { %12876 = vst [vmem:[#allocation71_spill] sm:$0xff] %v10816_v29  ;;  %v10818_v13 = vadd.f32 %v7815_v21, %v3197_v47 }
 0x28a   : > { %v7738_v20 = vpop.f32.mrf.mxu0  ;;  %v7824_v52 = vpop.f32.mrf.mxu1 }
 0x28b   : > { %12877 = vst [vmem:[#allocation77_spill] sm:$0xff] %v10818_v13  ;;  %v3211_v62 = vadd.f32 %v7738_v20, %v10711_v32 }
 0x28c   : > { %v10821_v41 = vpop.f32.mrf.mxu0  ;;  %v10823_v6 = vpop.f32.mrf.mxu1 }
 0x28d   : > { %12878 = vst [vmem:[#allocation58_spill] sm:$0xff] %v10823_v6  ;;  %v10825_v23 = vadd.f32 %v7818_v53, %v3211_v62 }
 0x28e   : > { %v7741_v4 = vpop.f32.mrf.mxu0  ;;  %v7827_v7 = vpop.f32.mrf.mxu1 }
 0x28f   : > { %12879 = vst [vmem:[#allocation2_spill] sm:$0xff] %v10825_v23  ;;  %v3225_v63 = vadd.f32 %v7741_v4, %v10718_v30 }
 0x290   : > { %v10828_v36 = vpop.f32.mrf.mxu0  ;;  %v10830_v8 = vpop.f32.mrf.mxu1 }
 0x291   : > { %12880 = vst [vmem:[#allocation60_spill] sm:$0xff] %v10830_v8  ;;  %v10832_v21 = vadd.f32 %v7821_v18, %v3225_v63 }
 0x292   : > { %v7744_v47 = vpop.f32.mrf.mxu0  ;;  %v7830_v13 = vpop.f32.mrf.mxu1 }
 0x293   : > { %12881 = vst [vmem:[#allocation8_spill] sm:$0xff] %v10832_v21  ;;  %v3239_v32 = vadd.f32 %v7744_v47, %v10725_v33 }
 0x294   : > { %v10835_v20 = vpop.f32.mrf.mxu0  ;;  %v10837_v29 = vpop.f32.mrf.mxu1 }
 0x295   : > { %12882 = vst [vmem:[#allocation5_spill] sm:$0xff] %v10837_v29  ;;  %v10839_v53 = vadd.f32 %v7824_v52, %v3239_v32 }
 0x296   : > { %v7747_v62 = vpop.f32.mrf.mxu0  ;;  %v7833_v23 = vpop.f32.mrf.mxu1 }
 0x297   : > { %12883 = vst [vmem:[#allocation11_spill] sm:$0xff] %v10839_v53  ;;  %v3253_v30 = vadd.f32 %v7747_v62, %v10732_v40 }
 0x298   : > { %v10842_v4 = vpop.f32.mrf.mxu0  ;;  %v10844_v6 = vpop.f32.mrf.mxu1 }
 0x299   : > { %12884 = vst [vmem:[#allocation62_spill] sm:$0xff] %v10844_v6  ;;  %v10846_v18 = vadd.f32 %v7827_v7, %v3253_v30 }
 0x29a   : > { %v7750_v63 = vpop.f32.mrf.mxu0  ;;  %v7836_v21 = vpop.f32.mrf.mxu1 }
 0x29b   : > { %12885 = vst [vmem:[#allocation64_spill] sm:$0xff] %v10846_v18  ;;  %v3267_v33 = vadd.f32 %v7750_v63, %v10739_v43 }
 0x29c   : > { %v10849_v47 = vpop.f32.mrf.mxu0  ;;  %v10851_v8 = vpop.f32.mrf.mxu1 }
 0x29d   : > { %12886 = vst [vmem:[#allocation3_spill] sm:$0xff] %v10851_v8  ;;  %v10853_v52 = vadd.f32 %v7830_v13, %v3267_v33 }
 0x29e   : > { %v7753_v32 = vpop.f32.mrf.mxu0  ;;  %v7839_v53 = vpop.f32.mrf.mxu1 }
 0x29f   : > { %12887 = vst [vmem:[#allocation14_spill] sm:$0xff] %v10853_v52  ;;  %v3281_v40 = vadd.f32 %v7753_v32, %v10746_v58 }
 0x2a0   : > { %v10856_v62 = vpop.f32.mrf.mxu0  ;;  %v10858_v29 = vpop.f32.mrf.mxu1 }
 0x2a1   : > { %v10860_v7 = vadd.f32 %v7833_v23, %v3281_v40  ;;  %v2383_v40 = vadd.f32 %v10613_v42, %v10645_v60 }
 0x2a2   : > { %v7756_v30 = vpop.f32.mrf.mxu0  ;;  %v7842_v18 = vpop.f32.mrf.mxu1 }
 0x2a3   : > { %12888 = vst [vmem:[#allocation78_spill] sm:$0xff] %v10860_v7  ;;  %v3295_v43 = vadd.f32 %v7756_v30, %v10753_v61  ;;  %v2403_v61 = vadd.f32 %v10613_v42, %v10671_v54  ;;  %v2503_v54 = vadd.f32 %v10613_v42, %v10714_v45  ;;  %v2583_v45 = vadd.f32 %v10613_v42, %v10742_v16 }
 0x2a4   : > { %v10863_v63 = vpop.f32.mrf.mxu0  ;;  %v10865_v6 = vpop.f32.mrf.mxu1  ;;  %v3141_v16 = vadd.f32 %v10787_v1, %v10655_v44  ;;  %v2683_v1 = vadd.f32 %v10613_v42, %v10781_v59 }
 0x2a5   : > { %v10867_v13 = vadd.f32 %v7836_v21, %v3295_v43  ;;  %v2423_v21 = vadd.f32 %v10613_v42, %v10685_v12  ;;  %v2523_v12 = vadd.f32 %v10613_v42, %v10721_v55 }
 0x2a6   : > { %v7759_v33 = vpop.f32.mrf.mxu0  ;;  %v7845_v52 = vpop.f32.mrf.mxu1 }
 0x2a7   : > { %12889 = vst [vmem:[#allocation79_spill] sm:$0xff] %v10867_v13  ;;  %v3309_v58 = vadd.f32 %v7759_v33, %v10760_v15  ;;  %v2443_v15 = vadd.f32 %v10613_v42, %v10692_v26  ;;  %v2483_v33 = vadd.f32 %v10613_v42, %v10707_v11  ;;  %v2543_v26 = vadd.f32 %v10613_v42, %v10728_v14 }
 0x2a8   : > { %v10870_v32 = vpop.f32.mrf.mxu0  ;;  %v10872_v8 = vpop.f32.mrf.mxu1  ;;  %v2844_v11 = vadd.f32 %v10565_v28, %v2383_v40  ;;  %v2603_v14 = vadd.f32 %v10613_v42, %v10749_v56  ;;  %v2643_v56 = vadd.f32 %v10613_v42, %v10763_v0  ;;  %v3155_v0 = vadd.f32 %v10793_v9, %v10680_v17  ;;  %v12896_v9 = vld [vmem:[#allocation52_spill] sm:$0xff] }
 0x2a9   : > { %v10874_v23 = vadd.f32 %v7839_v53, %v3309_v58  ;;  %v2463_v53 = vadd.f32 %v10613_v42, %v10700_v49  ;;  %v2563_v49 = vadd.f32 %v10613_v42, %v10735_v31  ;;  %v2880_v55 = vadd.f32 %v10673_v38, %v2443_v15 }
 0x2aa   : > { %v7762_v30 = vpop.f32.mrf.mxu0  ;;  %v7848_v7 = vpop.f32.mrf.mxu1  ;;  %v2623_v31 = vadd.f32 %v10613_v42, %v10756_v22  ;;  %v2916_v38 = vadd.f32 %v10702_v25, %v2503_v54  ;;  %v2663_v22 = vadd.f32 %v10613_v42, %v10772_v35  ;;  %v3134_v44 = vadd.f32 %v10789_v51, %v2844_v11  ;;  %v12894_v54 = vld [vmem:[#allocation65_spill] sm:$0xff]  ;;  %v12895_v51 = vld [vmem:[#allocation55_spill] sm:$0xff] }
 0x2ab   : > { %12890 = vst [vmem:[#allocation80_spill] sm:$0xff] %v10874_v23  ;;  %v3323_v43 = vadd.f32 %v7762_v30, %v10767_v50  ;;  %v2856_v50 = vadd.f32 %v10600_v5, %v2403_v61  ;;  %v2892_v28 = vadd.f32 %v10687_v3, %v2463_v53  ;;  %v2904_v5 = vadd.f32 %v10694_v2, %v2483_v33 }
 0x2ac   : > { %v10889_v60 = vpop.f32.mrf.mxu0  ;;  %v10891_v58 = vpop.f32.mrf.mxu1  ;;  %v2940_v3 = vadd.f32 %v10716_v34, %v2543_v26  ;;  %v2952_v2 = vadd.f32 %v10723_v57, %v2563_v49  ;;  %v3176_v59 = vadd.f32 %v10807_v10, %v2880_v55  ;;  %v3448_v42 = vadd.f32 %v12895_v51, %v3141_v16  ;;  %v12897_v26 = vld [vmem:[#allocation49_spill] sm:$0xff]  ;;  %v12899_v10 = vld [vmem:[#allocation54_spill] sm:$0xff] }
 0x2ad   : > { %12891 = vst [vmem:[#allocation81_spill] sm:$0xff] %v10891_v58  ;;  %v10897_v23 = vadd.f32 %v7842_v18, %v3323_v43  ;;  %v2868_v58 = vadd.f32 %v10647_v46, %v2423_v21  ;;  %v2928_v46 = vadd.f32 %v10709_v48, %v2523_v12  ;;  %v2964_v48 = vadd.f32 %v10730_v37, %v2583_v45  ;;  %v12893_v43 = vld [vmem:[#allocation53_spill] sm:$0xff]  ;;  %v12898_v45 = vld [vmem:[#allocation51_spill] sm:$0xff] }
 0x2ae   : > { %v7765_v30 = vpop.f32.mrf.mxu0  ;;  %v7963_v13 = vpop.f32.mrf.mxu1  ;;  %v3148_v35 = vadd.f32 %v10795_v39, %v2856_v50  ;;  %v2988_v57 = vadd.f32 %v12893_v43, %v2623_v31  ;;  %v3204_v17 = vadd.f32 %v10821_v41, %v2904_v5  ;;  %v3000_v39 = vadd.f32 %v12896_v9, %v2643_v56  ;;  %v12900_v41 = vld [vmem:[#allocation57_spill] sm:$0xff]  ;;  %v12901_v5 = vld [vmem:[#allocation56_spill] sm:$0xff] }
 0x2af   : > { %v3337_v18 = vadd.f32 %v7765_v30, %v10776_v27  ;;  %v3162_v12 = vadd.f32 %v12894_v54, %v2868_v58  ;;  %v3012_v49 = vadd.f32 %v12897_v26, %v2663_v22  ;;  %v3218_v30 = vadd.f32 %v10828_v36, %v2916_v38  ;;  %v12903_v36 = vld [vmem:[#allocation59_spill] sm:$0xff] }
 0x2b0   : > { %v10916_v40 = vpop.f32.mrf.mxu0  ;;  %v4079_v61 = vpop.f32.mrf.mxu1  ;;  %v3024_v58 = vadd.f32 %v12898_v45, %v2683_v1  ;;  %v3440_v55 = vadd.f32 %v12899_v10, %v3134_v44  ;;  %v3456_v16 = vadd.f32 %v12901_v5, %v3148_v35  ;;  %v10958_v38 = vadd.f32 %v12903_v36, %v3176_v59  ;;  %v12906_v54 = vld [vmem:[#allocation71_spill] sm:$0xff]  ;;  %v12911_v45 = vld [vmem:[#allocation62_spill] sm:$0xff] }
 0x2b1   : > { %v10922_v27 = vadd.f32 %v7845_v52, %v3337_v18  ;;  %v12892_v52 = vld [vmem:[#allocation47_spill] sm:$0xff]  ;;  %v3260_v1 = vadd.f32 %v10849_v47, %v2952_v2  ;;  %v3274_v44 = vadd.f32 %v10856_v62, %v2964_v48  ;;  %v3302_v47 = vadd.f32 %v10870_v32, %v2988_v57  ;;  %v12907_v48 = vld [vmem:[#allocation58_spill] sm:$0xff]  ;;  %v12910_v57 = vld [vmem:[#allocation5_spill] sm:$0xff] }
 0x2b2   : > { %v7768_v21 = vpop.f32.mrf.mxu0  ;;  %v7966_v15 = vpop.f32.mrf.mxu1  ;;  %v2976_v34 = vadd.f32 %v12892_v52, %v2603_v14  ;;  %v3246_v14 = vadd.f32 %v10842_v4, %v2940_v3  ;;  %v12904_v4 = vld [vmem:[#allocation63_spill] sm:$0xff] }
 0x2b3   : > { %v3351_v25 = vadd.f32 %v7768_v21, %v10785_v24  ;;  %v3190_v24 = vadd.f32 %v10814_v19, %v2892_v28  ;;  %v3464_v28 = vadd.f32 %v12900_v41, %v3155_v0  ;;  %v12902_v21 = vld [vmem:[#allocation61_spill] sm:$0xff]  ;;  %v12905_v52 = vld [vmem:[#allocation67_spill] sm:$0xff] }
 0x2b4   : > { %v3343_v53 = vpop.f32.mrf.mxu0  ;;  %v4091_v33 = vpop.f32.mrf.mxu1  ;;  %v10966_v0 = vadd.f32 %v12905_v52, %v3204_v17  ;;  %v3288_v59 = vadd.f32 %v10863_v63, %v2976_v34  ;;  %v3330_v63 = vadd.f32 %v10916_v40, %v3012_v49 }
 0x2b5   : > { %v10943_v37 = vadd.f32 %v7848_v7, %v3351_v25  ;;  %v3232_v7 = vadd.f32 %v10835_v20, %v2928_v46  ;;  %v3472_v25 = vadd.f32 %v12902_v21, %v3162_v12  ;;  %v10963_v3 = vadd.f32 %v12904_v4, %v3190_v24  ;;  %v12918_v4 = vld [vmem:[#allocation6_spill] sm:$0xff] }
 0x2b6   : > { %v7883_v11 = vpop.f32.mrf.mxu0  ;;  %v7969_v50 = vpop.f32.mrf.mxu1  ;;  %v10969_v12 = vadd.f32 %v12906_v54, %v3218_v30  ;;  %v10988_v30 = vadd.f32 %v12910_v57, %v3260_v1  ;;  %v11021_v36 = vadd.f32 %v10872_v8, %v3330_v63  ;;  %v12920_v54 = vld [vmem:[#allocation81_spill] sm:$0xff] }
 0x2b7   : > { %v3813_v18 = vadd.f32 %v7883_v11, %v3448_v42  ;;  %v10976_v51 = vadd.f32 %v12907_v48, %v3232_v7  ;;  %v12908_v42 = vld [vmem:[#allocation60_spill] sm:$0xff]  ;;  %v3316_v11 = vadd.f32 %v10889_v60, %v3000_v39  ;;  %v12913_v60 = vld [vmem:[#allocation69_spill] sm:$0xff] }
 0x2b8   : > { %v3806_v19 = vpop.f32.mrf.mxu0  ;;  %v4103_v31 = vpop.f32.mrf.mxu1  ;;  %v10979_v24 = vadd.f32 %v12908_v42, %v3246_v14  ;;  %v3344_v14 = vadd.f32 %v3343_v53, %v3024_v58  ;;  %v12923_v57 = vld [vmem:[#allocation77_spill] sm:$0xff] }
 0x2b9   : > { %v4086_v56 = vadd.f32 %v7963_v13, %v3813_v18  ;;  %v3807_v22 = vadd.f32 %v3806_v19, %v3440_v55  ;;  %v10991_v18 = vadd.f32 %v12911_v45, %v3274_v44  ;;  %v12914_v19 = vld [vmem:[#allocation3_spill] sm:$0xff] }
 0x2ba   : > { %v7886_v20 = vpop.f32.mrf.mxu0  ;;  %v7972_v46 = vpop.f32.mrf.mxu1  ;;  %v11002_v41 = vadd.f32 %v12914_v19, %v3288_v59  ;;  %v11038_v59 = vadd.f32 %v12920_v54, %v3344_v14 }
 0x2bb   : > { %v4270_v35 = vmax.f32 %v4086_v56, 0.0  ;;  %v4080_v13 = vadd.f32 %v4079_v61, %v3807_v22  ;;  %v3825_v43 = vadd.f32 %v7886_v20, %v3464_v28  ;;  %v11005_v28 = vadd.f32 %v10858_v29, %v3302_v47 }
 0x2bc   : > { %v3818_v2 = vpop.f32.mrf.mxu0  ;;  %v10973_v62 = vpop.f32.mrf.mxu1  ;;  %v11018_v29 = vadd.f32 %v10865_v6, %v3316_v11 }
 0x2bd   : > { %v10981_v17 = vand.u32 4294901760, %v4270_v35  ;;  %v4269_v61 = vmax.f32 %v4080_v13, 0.0  ;;  %v4098_v9 = vadd.f32 %v7966_v15, %v3825_v43  ;;  %v3819_v26 = vadd.f32 %v3818_v2, %v3456_v16  ;;  %v12919_v43 = vld [vmem:[#allocation12_spill] sm:$0xff] }
 0x2be   : > { %v7889_v34 = vpop.f32.mrf.mxu0  ;;  %v10985_v32 = vpop.f32.mrf.mxu1 }
 0x2bf   : > { %12909 = vst [vmem:[#allocation47_spill] sm:$0xff] %v10981_v17  ;;  %v10994_v10 = vsub.f32 %v4270_v35, %v10981_v17  ;;  %v10996_v55 = vand.u32 4294901760, %v4269_v61  ;;  %v4272_v15 = vmax.f32 %v4098_v9, 0.0  ;;  %v4092_v7 = vadd.f32 %v4091_v33, %v3819_v26 }
 0x2c0   : > { %v3837_v39 = vadd.f32 %v7889_v34, %v12913_v60  ;;  %v3830_v40 = vpop.f32.mrf.mxu0  ;;  %v10999_v49 = vpop.f32.mrf.mxu1  ;;  %v12922_v34 = vld [vmem:[#allocation15_spill] sm:$0xff] }
 0x2c1   : > { %12912 = vst [vmem:[#allocation53_spill] sm:$0xff] %v10996_v55  ;;  %v12429_v5 = vand.u32 4294901760, %v10994_v10  ;;  %v11009_v16 = vsub.f32 %v4269_v61, %v10996_v55  ;;  %v11011_v56 = vand.u32 4294901760, %v4272_v15  ;;  %v4271_v33 = vmax.f32 %v4092_v7, 0.0  ;;  %8121 = vmatprep.mubr.f32.mxu1 %v10996_v55 }
 0x2c2   : > { %v4110_v53 = vadd.f32 %v7969_v50, %v3837_v39  ;;  %v3831_v58 = vadd.f32 %v3830_v40, %v3472_v25  ;;  %v7892_v22 = vpop.f32.mrf.mxu0  ;;  %v11014_v21 = vpop.f32.mrf.mxu1  ;;  %8122 = vmatmul.mubr.f32.vlgmr.msra.gmra.mxu1 %v10981_v17  ;;  %v12917_v25 = vld [vmem:[#allocation73_spill] sm:$0xff] }
 0x2c3   : > { %12915 = vst [vmem:[#allocation65_spill] sm:$0xff] %v11011_v56  ;;  %v4418_v1 = vsub.f32 %v10994_v10, %v12429_v5  ;;  %v11027_v44 = vsub.f32 %v4272_v15, %v11011_v56  ;;  %v11029_v50 = vand.u32 4294901760, %v4271_v33  ;;  %v3849_v20 = vadd.f32 %v7892_v22, %v12917_v25  ;;  %8250 = vmatpush3.msra.mxu1 %v12918_v4 }
 0x2c4   : > { %v4274_v52 = vmax.f32 %v4110_v53, 0.0  ;;  %v4104_v35 = vadd.f32 %v4103_v31, %v3831_v58  ;;  %v3842_v6 = vpop.f32.mrf.mxu0  ;;  %v11033_v13 = vpop.f32.mrf.mxu1  ;;  %v12430_v8 = vand.u32 4294901760, %v11009_v16  ;;  %8251 = vmatprep.subr.mxu1 %v12919_v43 }
 0x2c5   : > { %12916 = vst [vmem:[#allocation55_spill] sm:$0xff] %v11029_v50  ;;  %v4419_v47 = vand.u32 4294901760, %v4418_v1  ;;  %v12425_v2 = vand.u32 4294901760, %v11027_v44  ;;  %v11042_v48 = vsub.f32 %v4271_v33, %v11029_v50  ;;  %v4122_v42 = vadd.f32 %v7972_v46, %v3849_v20  ;;  %8124 = vmatprep.mubr.f32.mxu1 %v11029_v50  ;;  %8252 = vmatpush3.msra.mxu1 %v12919_v43  ;;  %v12925_v33 = vld [vmem:[#allocation21_spill] sm:$0xff] }
 0x2c6   : > { %v11046_v31 = vand.u32 4294901760, %v4274_v52  ;;  %v4273_v61 = vmax.f32 %v4104_v35, 0.0  ;;  %v3843_v9 = vadd.f32 %v3842_v6, %v10958_v38  ;;  %v7895_v26 = vpop.f32.mrf.mxu0  ;;  %v11049_v11 = vpop.f32.mrf.mxu1  ;;  %8125 = vmatmul.mubr.f32.gmra.mxu1 %v11011_v56  ;;  %v4408_v63 = vsub.f32 %v11009_v16, %v12430_v8  ;;  %8253 = vmatprep.subr.mxu1 %v12922_v34  ;;  %v12938_v8 = vld [vmem:[#allocation11_spill] sm:$0xff] }
 0x2c7   : > { %v4276_v46 = vmax.f32 %v4122_v42, 0.0  ;;  %v3861_v45 = vadd.f32 %v7895_v26, %v12923_v57  ;;  %v12428_v15 = vand.u32 4294901760, %v11042_v48  ;;  %v4438_v38 = vsub.f32 %v11027_v44, %v12425_v2  ;;  %8254 = vmatpush3.msra.mxu1 %v12922_v34  ;;  %v12927_v42 = vld [vmem:[#allocation2_spill] sm:$0xff] }
 0x2c8   : > { %12921 = vst [vmem:[#allocation52_spill] sm:$0xff] %v11046_v31  ;;  %v11063_v7 = vsub.f32 %v4274_v52, %v11046_v31  ;;  %v11065_v14 = vand.u32 4294901760, %v4273_v61  ;;  %v4116_v60 = vadd.f32 %v10973_v62, %v3843_v9  ;;  %v3854_v39 = vpop.f32.mrf.mxu0  ;;  %v11068_v40 = vpop.f32.mrf.mxu1  ;;  %v4409_v19 = vand.u32 4294901760, %v4408_v63  ;;  %8255 = vmatprep.subr.mxu1 %v12925_v33  ;;  %v12929_v26 = vld [vmem:[#allocation66_spill] sm:$0xff] }
 0x2c9   : > { %v11071_v53 = vand.u32 4294901760, %v4276_v46  ;;  %v4134_v58 = vadd.f32 %v10985_v32, %v3861_v45  ;;  %v3855_v22 = vadd.f32 %v3854_v39, %v10963_v3  ;;  %v4428_v1 = vsub.f32 %v11042_v48, %v12428_v15  ;;  %8256 = vmatpush3.msra.mxu1 %v12925_v33 }
 0x2ca   : > { %12924 = vst [vmem:[#allocation49_spill] sm:$0xff] %v11065_v14  ;;  %v12424_v62 = vand.u32 4294901760, %v11063_v7  ;;  %v11081_v25 = vsub.f32 %v4273_v61, %v11065_v14  ;;  %v4275_v20 = vmax.f32 %v4116_v60, 0.0  ;;  %8041 = vmatprep.mubr.f32.mxu0 %v4409_v19  ;;  %8127 = vmatprep.mubr.f32.mxu1 %v11065_v14  ;;  %v7898_v52 = vpop.f32.mrf.mxu0  ;;  %v11084_v35 = vpop.f32.mrf.mxu1  ;;  %v4439_v32 = vand.u32 4294901760, %v4438_v38  ;;  %v12954_v14 = vld [vmem:[#allocation75_spill] sm:$0xff] }
 0x2cb   : > { %12926 = vst [vmem:[#allocation51_spill] sm:$0xff] %v11071_v53  ;;  %v11087_v3 = vsub.f32 %v4276_v46, %v11071_v53  ;;  %v4278_v6 = vmax.f32 %v4134_v58, 0.0  ;;  %v4128_v54 = vadd.f32 %v10999_v49, %v3855_v22  ;;  %v3873_v9 = vadd.f32 %v7898_v52, %v12927_v42  ;;  %8042 = vmatmul.mubr.f32.vlgmr.msra.gmra.mxu0 %v4419_v47  ;;  %v12930_v49 = vld [vmem:[#allocation24_spill] sm:$0xff] }
 0x2cc   : > { %8128 = vmatmul.mubr.f32.gmra.mxu1 %v11046_v31  ;;  %v11092_v61 = vand.u32 4294901760, %v4275_v20  ;;  %8170 = vmatpush3.msra.mxu0 %v12929_v26  ;;  %v3866_v63 = vpop.f32.mrf.mxu0  ;;  %v11095_v57 = vpop.f32.mrf.mxu1  ;;  %v4429_v45 = vand.u32 4294901760, %v4428_v1  ;;  %v12426_v38 = vand.u32 4294901760, %v11081_v25  ;;  %v4458_v46 = vsub.f32 %v11063_v7, %v12424_v62  ;;  %v12932_v58 = vld [vmem:[#allocation68_spill] sm:$0xff] }
 0x2cd   : > { %8257 = vmatprep.subr.mxu1 %v12930_v49  ;;  %v12427_v47 = vand.u32 4294901760, %v11087_v3  ;;  %v11103_v60 = vand.u32 4294901760, %v4278_v6  ;;  %v4277_v39 = vmax.f32 %v4128_v54, 0.0  ;;  %v4146_v19 = vadd.f32 %v11014_v21, %v3873_v9  ;;  %8171 = vmatprep.subr.mxu0 %v12932_v58  ;;  %v12934_v62 = vld [vmem:[#allocation8_spill] sm:$0xff] }
 0x2ce   : > { %12928 = vst [vmem:[#allocation54_spill] sm:$0xff] %v11092_v61  ;;  %8258 = vmatpush3.msra.mxu1 %v12930_v49  ;;  %v11109_v22 = vsub.f32 %v4275_v20, %v11092_v61  ;;  %v3867_v1 = vadd.f32 %v3866_v63, %v10966_v0  ;;  %8044 = vmatprep.mubr.f32.mxu0 %v4429_v45  ;;  %v7901_v52 = vpop.f32.mrf.mxu0  ;;  %v11113_v42 = vpop.f32.mrf.mxu1  ;;  %v4459_v21 = vand.u32 4294901760, %v4458_v46 }
 0x2cf   : > { %12931 = vst [vmem:[#allocation57_spill] sm:$0xff] %v11103_v60  ;;  %8130 = vmatprep.mubr.f32.mxu1 %v11092_v61  ;;  %v4448_v54 = vsub.f32 %v11081_v25, %v12426_v38  ;;  %v11119_v9 = vsub.f32 %v4278_v6, %v11103_v60  ;;  %v11121_v26 = vand.u32 4294901760, %v4277_v39  ;;  %v4280_v20 = vmax.f32 %v4146_v19, 0.0  ;;  %8045 = vmatmul.mubr.f32.gmra.mxu0 %v4439_v32  ;;  %v12935_v19 = vld [vmem:[#allocation27_spill] sm:$0xff]  ;;  %v12947_v61 = vld [vmem:[#allocation74_spill] sm:$0xff] }
 0x2d0   : > { %v3885_v2 = vadd.f32 %v7901_v52, %v12934_v62  ;;  %8131 = vmatmul.mubr.f32.gmra.mxu1 %v11071_v53  ;;  %v4140_v0 = vadd.f32 %v11033_v13, %v3867_v1  ;;  %8172 = vmatpush3.msra.mxu0 %v12932_v58  ;;  %v3878_v63 = vpop.f32.mrf.mxu0  ;;  %v11127_v45 = vpop.f32.mrf.mxu1  ;;  %v12431_v46 = vand.u32 4294901760, %v11109_v22  ;;  %v4478_v6 = vsub.f32 %v11087_v3, %v12427_v47  ;;  %v12937_v1 = vld [vmem:[#allocation70_spill] sm:$0xff] }
 0x2d1   : > { %12933 = vst [vmem:[#allocation56_spill] sm:$0xff] %v11121_v26  ;;  %v4449_v38 = vand.u32 4294901760, %v4448_v54  ;;  %8259 = vmatprep.subr.mxu1 %v12935_v19  ;;  %v11136_v32 = vsub.f32 %v4277_v39, %v11121_v26  ;;  %v11138_v13 = vand.u32 4294901760, %v4280_v20  ;;  %8133 = vmatprep.mubr.f32.mxu1 %v11121_v26  ;;  %v3879_v54 = vadd.f32 %v3878_v63, %v10969_v12 }
 0x2d2   : > { %v4158_v58 = vadd.f32 %v11049_v11, %v3885_v2  ;;  %8173 = vmatprep.subr.mxu0 %v12937_v1  ;;  %v4279_v52 = vmax.f32 %v4140_v0, 0.0  ;;  %v7904_v47 = vpop.f32.mrf.mxu0  ;;  %v11144_v15 = vpop.f32.mrf.mxu1  ;;  %v4468_v39 = vsub.f32 %v11109_v22, %v12431_v46  ;;  %v4479_v5 = vand.u32 4294901760, %v4478_v6  ;;  %v12940_v6 = vld [vmem:[#allocation72_spill] sm:$0xff]  ;;  %8260 = vmatpush3.msra.mxu1 %v12935_v19 }
 0x2d3   : > { %12936 = vst [vmem:[#allocation61_spill] sm:$0xff] %v11138_v13  ;;  %8047 = vmatprep.mubr.f32.mxu0 %v4449_v38  ;;  %8174 = vmatpush3.msra.mxu0 %v12937_v1  ;;  %v11151_v2 = vsub.f32 %v4280_v20, %v11138_v13  ;;  %v3897_v62 = vadd.f32 %v7904_v47, %v12938_v8  ;;  %v12941_v20 = vand.u32 4294901760, %v11119_v9  ;;  %v12944_v8 = vand.u32 4294901760, %v11136_v32 }
 0x2d4   : > { %v4282_v11 = vmax.f32 %v4158_v58, 0.0  ;;  %8048 = vmatmul.mubr.f32.gmra.mxu0 %v4459_v21  ;;  %8134 = vmatmul.mubr.f32.gmra.mxu1 %v11103_v60  ;;  %v11156_v38 = vand.u32 4294901760, %v4279_v52  ;;  %v4152_v0 = vadd.f32 %v11068_v40, %v3879_v54  ;;  %v3890_v63 = vpop.f32.mrf.mxu0  ;;  %v11159_v1 = vpop.f32.mrf.mxu1  ;;  %v4469_v46 = vand.u32 4294901760, %v4468_v39  ;;  %v12943_v54 = vld [vmem:[#allocation30_spill] sm:$0xff] }
 0x2d5   : > { %8175 = vmatprep.subr.mxu0 %v12940_v6  ;;  %v4498_v58 = vsub.f32 %v11119_v9, %v12941_v20  ;;  %v4170_v21 = vadd.f32 %v11084_v35, %v3897_v62  ;;  %v3891_v40 = vadd.f32 %v3890_v63, %v10976_v51  ;;  %8261 = vmatprep.subr.mxu1 %v12943_v54 }
 0x2d6   : > { %12939 = vst [vmem:[#allocation59_spill] sm:$0xff] %v11156_v38  ;;  %v11167_v47 = vand.u32 4294901760, %v4282_v11  ;;  %8176 = vmatpush3.msra.mxu0 %v12940_v6  ;;  %v11174_v39 = vsub.f32 %v4279_v52, %v11156_v38  ;;  %v4281_v12 = vmax.f32 %v4152_v0, 0.0  ;;  %8050 = vmatprep.mubr.f32.mxu0 %v4469_v46  ;;  %v7907_v20 = vpop.f32.mrf.mxu0  ;;  %v11177_v60 = vpop.f32.mrf.mxu1  ;;  %v4488_v35 = vsub.f32 %v11136_v32, %v12944_v8  ;;  %v12945_v52 = vld [vmem:[#allocation64_spill] sm:$0xff] }
 0x2d7   : > { %8136 = vmatprep.mubr.f32.mxu1 %v11156_v38  ;;  %v4499_v62 = vand.u32 4294901760, %v4498_v58  ;;  %v4284_v63 = vmax.f32 %v4170_v21, 0.0  ;;  %v4164_v6 = vadd.f32 %v11095_v57, %v3891_v40  ;;  %v3909_v26 = vadd.f32 %v7907_v20, %v12945_v52  ;;  %8177 = vmatprep.subr.mxu0 %v12947_v61  ;;  %v12950_v20 = vld [vmem:[#allocation34_spill] sm:$0xff] }
 0x2d8   : > { %12942 = vst [vmem:[#allocation63_spill] sm:$0xff] %v11167_v47  ;;  %v11183_v51 = vsub.f32 %v4282_v11, %v11167_v47  ;;  %8051 = vmatmul.mubr.f32.gmra.mxu0 %v4479_v5  ;;  %8137 = vmatmul.mubr.f32.gmra.mxu1 %v11138_v13  ;;  %v11188_v46 = vand.u32 4294901760, %v4281_v12  ;;  %v3902_v0 = vpop.f32.mrf.mxu0  ;;  %v11190_v38 = vpop.f32.mrf.mxu1  ;;  %v4489_v53 = vand.u32 4294901760, %v4488_v35  ;;  %v12948_v11 = vand.u32 4294901760, %v11151_v2  ;;  %v12953_v13 = vld [vmem:[#allocation14_spill] sm:$0xff] }
 0x2d9   : > { %8262 = vmatpush3.msra.mxu1 %v12943_v54  ;;  %v11199_v57 = vand.u32 4294901760, %v4284_v63  ;;  %v4283_v21 = vmax.f32 %v4164_v6, 0.0  ;;  %v4182_v40 = vadd.f32 %v11113_v42, %v3909_v26  ;;  %8178 = vmatpush3.msra.mxu0 %v12947_v61  ;;  %v3903_v52 = vadd.f32 %v3902_v0, %v10979_v24 }
 0x2da   : > { %12946 = vst [vmem:[#allocation67_spill] sm:$0xff] %v11188_v46  ;;  %v4518_v8 = vsub.f32 %v11151_v2, %v12948_v11  ;;  %8263 = vmatprep.subr.mxu1 %v12950_v20  ;;  %v11205_v35 = vsub.f32 %v4281_v12, %v11188_v46  ;;  %8053 = vmatprep.mubr.f32.mxu0 %v4489_v53  ;;  %v7910_v11 = vpop.f32.mrf.mxu0  ;;  %v11209_v58 = vpop.f32.mrf.mxu1  ;;  %v12951_v5 = vand.u32 4294901760, %v11174_v39 }
 0x2db   : > { %12949 = vst [vmem:[#allocation71_spill] sm:$0xff] %v11199_v57  ;;  %8139 = vmatprep.mubr.f32.mxu1 %v11188_v46  ;;  %v11215_v61 = vsub.f32 %v4284_v63, %v11199_v57  ;;  %v11217_v26 = vand.u32 4294901760, %v4283_v21  ;;  %v4286_v12 = vmax.f32 %v4182_v40, 0.0  ;;  %v3921_v31 = vadd.f32 %v7910_v11, %v12953_v13  ;;  %8179 = vmatprep.subr.mxu0 %v12954_v14  ;;  %v12957_v13 = vld [vmem:[#allocation76_spill] sm:$0xff] }
 0x2dc   : > { %v4508_v6 = vsub.f32 %v11174_v39, %v12951_v5  ;;  %v4519_v42 = vand.u32 4294901760, %v4518_v8  ;;  %8054 = vmatmul.mubr.f32.gmra.mxu0 %v4499_v62  ;;  %8140 = vmatmul.mubr.f32.gmra.mxu1 %v11167_v47  ;;  %v4176_v24 = vadd.f32 %v11127_v45, %v3903_v52  ;;  %v3914_v53 = vpop.f32.mrf.mxu0  ;;  %v11222_v0 = vpop.f32.mrf.mxu1  ;;  %v12454_v8 = vand.u32 4294901760, %v11205_v35 }
 0x2dd   : > { %12952 = vst [vmem:[#allocation58_spill] sm:$0xff] %v11217_v26  ;;  %v12955_v63 = vand.u32 4294901760, %v11183_v51  ;;  %8264 = vmatpush3.msra.mxu1 %v12950_v20  ;;  %v11232_v62 = vsub.f32 %v4283_v21, %v11217_v26  ;;  %v11234_v45 = vand.u32 4294901760, %v4286_v12  ;;  %v4194_v40 = vadd.f32 %v11144_v15, %v3921_v31  ;;  %8142 = vmatprep.mubr.f32.mxu1 %v11217_v26  ;;  %v12958_v26 = vld [vmem:[#allocation78_spill] sm:$0xff] }
 0x2de   : > { %v4509_v46 = vand.u32 4294901760, %v4508_v6  ;;  %8180 = vmatpush3.msra.mxu0 %v12954_v14  ;;  %v4285_v52 = vmax.f32 %v4176_v24, 0.0  ;;  %v3915_v11 = vadd.f32 %v3914_v53, %v10988_v30  ;;  %v7913_v6 = vpop.f32.mrf.mxu0  ;;  %v4528_v21 = vsub.f32 %v11205_v35, %v12454_v8 }
 0x2df   : > { %v4538_v5 = vsub.f32 %v11183_v51, %v12955_v63  ;;  %12956 = vst [vmem:[#allocation60_spill] sm:$0xff] %v11234_v45  ;;  %v11240_v63 = vpop.f32.mrf.mxu1  ;;  %8181 = vmatprep.subr.mxu0 %v12957_v13  ;;  %v11247_v31 = vsub.f32 %v4286_v12, %v11234_v45  ;;  %v4288_v15 = vmax.f32 %v4194_v40, 0.0  ;;  %v3933_v14 = vadd.f32 %v7913_v6, %v12958_v26  ;;  %v12961_v26 = vld [vmem:[#allocation35_spill] sm:$0xff] }
 0x2e0   : > { %8056 = vmatprep.mubr.f32.mxu0 %v4509_v46  ;;  %8143 = vmatmul.mubr.f32.gmra.mxu1 %v11199_v57  ;;  %v12463_v30 = vand.u32 4294901760, %v11232_v62  ;;  %v11252_v46 = vand.u32 4294901760, %v4285_v52  ;;  %v4188_v24 = vadd.f32 %v11159_v1, %v3915_v11  ;;  %v3926_v53 = vpop.f32.mrf.mxu0  ;;  %v4529_v56 = vand.u32 4294901760, %v4528_v21  ;;  %v12963_v11 = vld [vmem:[#allocation31_spill] sm:$0xff] }
 0x2e1   : > { %v4539_v47 = vand.u32 4294901760, %v4538_v5  ;;  %8057 = vmatmul.mubr.f32.gmra.mxu0 %v4519_v42  ;;  %v11255_v8 = vpop.f32.mrf.mxu1  ;;  %v12960_v12 = vand.u32 4294901760, %v11215_v61  ;;  %8265 = vmatprep.subr.mxu1 %v12961_v26  ;;  %v11263_v40 = vand.u32 4294901760, %v4288_v15  ;;  %v4206_v6 = vadd.f32 %v11177_v60, %v3933_v14 }
 0x2e2   : > { %12959 = vst [vmem:[#allocation5_spill] sm:$0xff] %v11252_v46  ;;  %8182 = vmatpush3.msra.mxu0 %v12957_v13  ;;  %v3927_v1 = vadd.f32 %v3926_v53, %v10991_v18  ;;  %8266 = vmatpush3.msra.mxu1 %v12961_v26  ;;  %v11270_v13 = vsub.f32 %v4285_v52, %v11252_v46  ;;  %v4287_v21 = vmax.f32 %v4188_v24, 0.0  ;;  %v12964_v53 = vld [vmem:[#allocation79_spill] sm:$0xff] }
 0x2e3   : > { %v4558_v5 = vsub.f32 %v11215_v61, %v12960_v12  ;;  %12962 = vst [vmem:[#allocation62_spill] sm:$0xff] %v11263_v40  ;;  %8183 = vmatprep.subr.mxu0 %v12963_v11  ;;  %8059 = vmatprep.mubr.f32.mxu0 %v4529_v56  ;;  %v7916_v12 = vpop.f32.mrf.mxu0  ;;  %v4548_v42 = vsub.f32 %v11232_v62, %v12463_v30  ;;  %v4290_v18 = vmax.f32 %v4206_v6, 0.0  ;;  %v11281_v52 = vpop.f32.mrf.mxu1  ;;  %v12969_v30 = vld [vmem:[#allocation39_spill] sm:$0xff] }
 0x2e4   : > { %8145 = vmatprep.mubr.f32.mxu1 %v11252_v46  ;;  %v11277_v60 = vsub.f32 %v4288_v15, %v11263_v40  ;;  %v4200_v14 = vadd.f32 %v11190_v38, %v3927_v1  ;;  %v3945_v50 = vadd.f32 %v7916_v12, %v12964_v53  ;;  %v11284_v56 = vand.u32 4294901760, %v4287_v21  ;;  %8184 = vmatpush3.msra.mxu0 %v12963_v11  ;;  %v12967_v38 = vld [vmem:[#allocation36_spill] sm:$0xff] }
 0x2e5   : > { %v4559_v57 = vand.u32 4294901760, %v4558_v5  ;;  %8060 = vmatmul.mubr.f32.gmra.mxu0 %v4539_v47  ;;  %8146 = vmatmul.mubr.f32.gmra.mxu1 %v11234_v45  ;;  %v3938_v24 = vpop.f32.mrf.mxu0  ;;  %v4549_v46 = vand.u32 4294901760, %v4548_v42  ;;  %v12470_v5 = vand.u32 4294901760, %v11270_v13  ;;  %v12966_v15 = vand.u32 4294901760, %v11247_v31  ;;  %v4235_v17 = vpop.f32.mrf.mxu1 }
 0x2e6   : > { %12965 = vst [vmem:[#allocation69_spill] sm:$0xff] %v11284_v56  ;;  %8267 = vmatprep.subr.mxu1 %v12967_v38  ;;  %v11293_v12 = vand.u32 4294901760, %v4290_v18  ;;  %v4289_v47 = vmax.f32 %v4200_v14, 0.0  ;;  %v4218_v53 = vadd.f32 %v11209_v58, %v3945_v50  ;;  %8185 = vmatprep.subr.mxu0 %v12969_v30  ;;  %v11299_v42 = vsub.f32 %v4287_v21, %v11284_v56  ;;  %v12971_v21 = vld [vmem:[#allocation80_spill] sm:$0xff] }
 0x2e7   : > { %v4578_v6 = vsub.f32 %v11247_v31, %v12966_v15  ;;  %8268 = vmatpush3.msra.mxu1 %v12967_v38  ;;  %v3939_v11 = vadd.f32 %v3938_v24, %v11002_v41  ;;  %8062 = vmatprep.mubr.f32.mxu0 %v4549_v46  ;;  %v7919_v15 = vpop.f32.mrf.mxu0  ;;  %v4568_v1 = vsub.f32 %v11270_v13, %v12470_v5 }
 0x2e8   : > { %12968 = vst [vmem:[#allocation3_spill] sm:$0xff] %v11293_v12  ;;  %8148 = vmatprep.mubr.f32.mxu1 %v11284_v56  ;;  %v11307_v50 = vsub.f32 %v4290_v18, %v11293_v12  ;;  %v11309_v58 = vand.u32 4294901760, %v4289_v47  ;;  %v4292_v45 = vmax.f32 %v4218_v53, 0.0  ;;  %v3957_v55 = vadd.f32 %v7919_v15, %v12971_v21  ;;  %8186 = vmatpush3.msra.mxu0 %v12969_v30  ;;  %v12973_v56 = vld [vmem:[#allocation43_spill] sm:$0xff]  ;;  %v12975_v30 = vld [vmem:[#allocation40_spill] sm:$0xff] }
 0x2e9   : > { %v4579_v14 = vand.u32 4294901760, %v4578_v6  ;;  %8063 = vmatmul.mubr.f32.gmra.mxu0 %v4559_v57  ;;  %8149 = vmatmul.mubr.f32.gmra.mxu1 %v11263_v40  ;;  %v4212_v41 = vadd.f32 %v11222_v0, %v3939_v11  ;;  %v3950_v46 = vpop.f32.mrf.mxu0  ;;  %v4569_v24 = vand.u32 4294901760, %v4568_v1  ;;  %v12475_v6 = vand.u32 4294901760, %v11299_v42  ;;  %v12981_v40 = vld [vmem:[#allocation7_spill] sm:$0xff] }
 0x2ea   : > { %12970 = vst [vmem:[#allocation73_spill] sm:$0xff] %v11309_v58  ;;  %v12972_v18 = vand.u32 4294901760, %v11277_v60  ;;  %8269 = vmatprep.subr.mxu1 %v12973_v56  ;;  %v11322_v57 = vsub.f32 %v4289_v47, %v11309_v58  ;;  %v11324_v15 = vand.u32 4294901760, %v4292_v45  ;;  %v4230_v0 = vadd.f32 %v11240_v63, %v3957_v55  ;;  %8151 = vmatprep.mubr.f32.mxu1 %v11309_v58  ;;  %v8005_v63 = vpop.f32.mrf.mxu1 }
 0x2eb   : > { %8187 = vmatprep.subr.mxu0 %v12975_v30  ;;  %v4291_v1 = vmax.f32 %v4212_v41, 0.0  ;;  %v3951_v11 = vadd.f32 %v3950_v46, %v11005_v28  ;;  %8065 = vmatprep.mubr.f32.mxu0 %v4569_v24  ;;  %v7922_v21 = vpop.f32.mrf.mxu0 }
 0x2ec   : > { %v4598_v5 = vsub.f32 %v11277_v60, %v12972_v18  ;;  %12974 = vst [vmem:[#allocation6_spill] sm:$0xff] %v11324_v15  ;;  %v4588_v18 = vsub.f32 %v11299_v42, %v12475_v6  ;;  %8188 = vmatpush3.msra.mxu0 %v12975_v30  ;;  %v11335_v47 = vsub.f32 %v4292_v45, %v11324_v15  ;;  %v4294_v55 = vmax.f32 %v4230_v0, 0.0  ;;  %v12977_v6 = vld [vmem:[#allocation46_spill] sm:$0xff] }
 0x2ed   : > { %v3969_v58 = vadd.f32 %v7922_v21, %v10897_v23  ;;  %8066 = vmatmul.mubr.f32.gmra.mxu0 %v4579_v14  ;;  %8152 = vmatmul.mubr.f32.gmra.mxu1 %v11293_v12  ;;  %v12482_v28 = vand.u32 4294901760, %v11322_v57  ;;  %v11340_v41 = vand.u32 4294901760, %v4291_v1  ;;  %v4224_v46 = vadd.f32 %v11255_v8, %v3951_v11  ;;  %v3962_v24 = vpop.f32.mrf.mxu0  ;;  %v12979_v8 = vld [vmem:[#allocation48_spill] sm:$0xff] }
 0x2ee   : > { %v4599_v53 = vand.u32 4294901760, %v4598_v5  ;;  %v4589_v5 = vand.u32 4294901760, %v4588_v18  ;;  %8189 = vmatprep.subr.mxu0 %v12977_v6  ;;  %v12978_v45 = vand.u32 4294901760, %v11307_v50  ;;  %8270 = vmatpush3.msra.mxu1 %v12973_v56  ;;  %v11349_v14 = vand.u32 4294901760, %v4294_v55 }
 0x2ef   : > { %12976 = vst [vmem:[#allocation12_spill] sm:$0xff] %v11340_v41  ;;  %v4242_v30 = vadd.f32 %v11281_v52, %v3969_v58  ;;  %v3963_v21 = vadd.f32 %v3962_v24, %v11018_v29  ;;  %8190 = vmatpush3.msra.mxu0 %v12977_v6  ;;  %8271 = vmatprep.subr.mxu1 %v12979_v8  ;;  %v4293_v18 = vmax.f32 %v4224_v46, 0.0  ;;  %v4247_v29 = vpop.f32.mrf.mxu1 }
 0x2f0   : > { %v4618_v0 = vsub.f32 %v11307_v50, %v12978_v45  ;;  %v11356_v11 = vsub.f32 %v4291_v1, %v11340_v41  ;;  %8068 = vmatprep.mubr.f32.mxu0 %v4589_v5  ;;  %8154 = vmatprep.mubr.f32.mxu1 %v11340_v41  ;;  %v7925_v45 = vpop.f32.mrf.mxu0  ;;  %v4608_v23 = vsub.f32 %v11322_v57, %v12482_v28 }
 0x2f1   : > { %v11363_v52 = vsub.f32 %v4294_v55, %v11349_v14  ;;  %v4296_v58 = vmax.f32 %v4242_v30, 0.0  ;;  %v4236_v6 = vadd.f32 %v4235_v17, %v3963_v21  ;;  %v3981_v24 = vadd.f32 %v7925_v45, %v10922_v27  ;;  %8069 = vmatmul.mubr.f32.gmra.mxu0 %v4599_v53  ;;  %8155 = vmatmul.mubr.f32.gmra.mxu1 %v11324_v15  ;;  %v12983_v21 = vld [vmem:[#allocation10_spill] sm:$0xff]  ;;  %v12984_v15 = vld [vmem:[#allocation19_spill] sm:$0xff] }
 0x2f2   : > { %v4619_v12 = vand.u32 4294901760, %v4618_v0  ;;  %v11367_v1 = vand.u32 4294901760, %v4293_v18  ;;  %v3974_v46 = vpop.f32.mrf.mxu0  ;;  %v4609_v5 = vand.u32 4294901760, %v4608_v23  ;;  %v12487_v41 = vand.u32 4294901760, %v11356_v11  ;;  %8191 = vmatprep.subr.mxu0 %v12981_v40  ;;  %8272 = vmatpush3.msra.mxu1 %v12979_v8 }
 0x2f3   : > { %v12982_v0 = vand.u32 4294901760, %v11335_v47  ;;  %v11376_v27 = vand.u32 4294901760, %v4296_v58  ;;  %v4295_v53 = vmax.f32 %v4236_v6, 0.0  ;;  %v4254_v30 = vadd.f32 %v8005_v63, %v3981_v24  ;;  %8192 = vmatpush3.msra.mxu0 %v12981_v40  ;;  %8273 = vmatprep.subr.mxu1 %v12983_v21  ;;  %v8008_v40 = vpop.f32.mrf.mxu1 }
 0x2f4   : > { %12980 = vst [vmem:[#allocation81_spill] sm:$0xff] %v11367_v1  ;;  %v11381_v23 = vsub.f32 %v4293_v18, %v11367_v1  ;;  %v3975_v45 = vadd.f32 %v3974_v46, %v11021_v36  ;;  %8071 = vmatprep.mubr.f32.mxu0 %v4609_v5  ;;  %8157 = vmatprep.mubr.f32.mxu1 %v11367_v1 }
 0x2f5   : > { %v4638_v55 = vsub.f32 %v11335_v47, %v12982_v0  ;;  %v7928_v0 = vpop.f32.mrf.mxu0  ;;  %v4628_v28 = vsub.f32 %v11356_v11, %v12487_v41  ;;  %v11389_v63 = vsub.f32 %v4296_v58, %v11376_v27  ;;  %v11391_v6 = vand.u32 4294901760, %v4295_v53  ;;  %8072 = vmatmul.mubr.f32.gmra.mxu0 %v4619_v12  ;;  %8158 = vmatmul.mubr.f32.gmra.mxu1 %v11349_v14  ;;  %v4259_v41 = vpop.f32.mrf.mxu1 }
 0x2f6   : > { %v4298_v24 = vmax.f32 %v4254_v30, 0.0  ;;  %v3993_v18 = vadd.f32 %v7928_v0, %v10943_v37  ;;  %v4248_v36 = vadd.f32 %v4247_v29, %v3975_v45  ;;  %v12488_v1 = vand.u32 4294901760, %v11381_v23  ;;  %8193 = vmatprep.subr.mxu0 %v12984_v15  ;;  %8274 = vmatpush3.msra.mxu1 %v12983_v21 }
 0x2f7   : > { %v4639_v17 = vand.u32 4294901760, %v4638_v55  ;;  %v3986_v46 = vpop.f32.mrf.mxu0  ;;  %v4629_v5 = vand.u32 4294901760, %v4628_v28  ;;  %v12985_v55 = vand.u32 4294901760, %v11363_v52  ;;  %v11403_v37 = vsub.f32 %v4295_v53, %v11391_v6  ;;  %8160 = vmatprep.mubr.f32.mxu1 %v11391_v6  ;;  %8194 = vmatpush3.msra.mxu0 %v12984_v15 }
 0x2f8   : > { %v11405_v12 = vand.u32 4294901760, %v4298_v24  ;;  %v4266_v29 = vadd.f32 %v8008_v40, %v3993_v18  ;;  %v4297_v28 = vmax.f32 %v4248_v36, 0.0  ;;  %v3987_v45 = vadd.f32 %v3986_v46, %v11038_v59  ;;  %v12988_v46 = vld [vmem:[#allocation23_spill] sm:$0xff] }
 0x2f9   : > { %v4658_v58 = vsub.f32 %v11363_v52, %v12985_v55  ;;  %8074 = vmatprep.mubr.f32.mxu0 %v4629_v5  ;;  %v4648_v0 = vsub.f32 %v11381_v23, %v12488_v1  ;;  %v12987_v55 = vld [vmem:[#allocation16_spill] sm:$0xff]  ;;  %8161 = vmatmul.mubr.f32.gmra.mxu1 %v11376_v27  ;;  %v12489_v15 = vand.u32 4294901760, %v11403_v37 }
 0x2fa   : > { %12986 = vst [vmem:[#allocation15_spill] sm:$0xff] %v11405_v12  ;;  %8275 = vmatprep.subr.mxu1 %v12987_v55  ;;  %v11415_v53 = vsub.f32 %v4298_v24, %v11405_v12  ;;  %v4300_v30 = vmax.f32 %v4266_v29, 0.0  ;;  %8075 = vmatmul.mubr.f32.gmra.mxu0 %v4639_v17  ;;  %v11419_v40 = vand.u32 4294901760, %v4297_v28  ;;  %v4260_v59 = vadd.f32 %v4259_v41, %v3987_v45  ;;  %v12990_v41 = vld [vmem:[#allocation26_spill] sm:$0xff] }
 0x2fb   : > { %v4649_v18 = vand.u32 4294901760, %v4648_v0  ;;  %v4659_v36 = vand.u32 4294901760, %v4658_v58  ;;  %8195 = vmatprep.subr.mxu0 %v12988_v46  ;;  %8276 = vmatpush3.msra.mxu1 %v12987_v55  ;;  %v4668_v17 = vsub.f32 %v11403_v37, %v12489_v15  ;;  %v12989_v24 = vand.u32 4294901760, %v11389_v63 }
 0x2fc   : > { %v11424_v1 = vand.u32 4294901760, %v4300_v30  ;;  %8196 = vmatpush3.msra.mxu0 %v12988_v46  ;;  %8277 = vmatprep.subr.mxu1 %v12990_v41  ;;  %v11435_v58 = vsub.f32 %v4297_v28, %v11419_v40  ;;  %v4299_v45 = vmax.f32 %v4260_v59, 0.0  ;;  %v12996_v28 = vld [vmem:[#allocation44_spill] sm:$0xff] }
 0x2fd   : > { %v4678_v29 = vsub.f32 %v11389_v63, %v12989_v24  ;;  %8077 = vmatprep.mubr.f32.mxu0 %v4649_v18  ;;  %8163 = vmatprep.mubr.f32.mxu1 %v11419_v40  ;;  %v4669_v15 = vand.u32 4294901760, %v4668_v17  ;;  %v12992_v24 = vld [vmem:[#allocation37_spill] sm:$0xff]  ;;  %v12993_v18 = vld [vmem:[#allocation38_spill] sm:$0xff] }
 0x2fe   : > { %v11439_v0 = vsub.f32 %v4300_v30, %v11424_v1  ;;  %8078 = vmatmul.mubr.f32.gmra.mxu0 %v4659_v36  ;;  %8164 = vmatmul.mubr.f32.gmra.mxu1 %v11405_v12  ;;  %v11442_v5 = vand.u32 4294901760, %v4299_v45  ;;  %v12494_v46 = vand.u32 4294901760, %v11435_v58  ;;  %v12994_v30 = vand.u32 4294901760, %v11415_v53 }
 0x2ff   : > { %8278 = vmatpush3.msra.mxu1 %v12990_v41  ;;  %8197 = vmatprep.subr.mxu0 %v12992_v24  ;;  %v4679_v59 = vand.u32 4294901760, %v4678_v29 }
 0x300   : > { %12991 = vst [vmem:[#allocation77_spill] sm:$0xff] %v11442_v5  ;;  %8080 = vmatprep.mubr.f32.mxu0 %v4669_v15  ;;  %8279 = vmatprep.subr.mxu1 %v12993_v18  ;;  %v4698_v36 = vsub.f32 %v11415_v53, %v12994_v30  ;;  %v11453_v17 = vsub.f32 %v4299_v45, %v11442_v5  ;;  %v12995_v15 = vand.u32 4294901760, %v11009_v16 }
 0x301   : > { %8166 = vmatprep.mubr.f32.mxu1 %v11442_v5  ;;  %v4688_v12 = vsub.f32 %v11435_v58, %v12494_v46  ;;  %8280 = vmatpush3.msra.mxu1 %v12993_v18  ;;  %v12997_v5 = vand.u32 4294901760, %v11439_v0 }
 0x302   : > { %8081 = vmatmul.mubr.f32.gmra.mxu0 %v4679_v59  ;;  %8167 = vmatmul.mubr.f32.gmra.mxu1 %v11424_v1  ;;  %v4707_v45 = vand.u32 4294901760, %v11453_v17  ;;  %v4699_v30 = vand.u32 4294901760, %v4698_v36 }
 0x303   : > { %8281 = vmatprep.mubr.f32.mxu1 %v12995_v15  ;;  %v4689_v29 = vand.u32 4294901760, %v4688_v12  ;;  %8198 = vmatpush3.msra.mxu0 %v12992_v24  ;;  %v4718_v46 = vsub.f32 %v11439_v0, %v12997_v5  ;;  %v12998_v12 = vand.u32 4294901760, %v10994_v10  ;;  %v12999_v24 = vand.u32 4294901760, %v11042_v48  ;;  %v13000_v15 = vld [vmem:[#allocation9_spill] sm:$0xff] }
 0x304   : > { %8199 = vmatprep.subr.mxu0 %v12996_v28  ;;  %8409 = vmatprep.subr.mxu1 %v12918_v4  ;;  %v4708_v59 = vsub.f32 %v11453_v17, %v4707_v45 }
 0x305   : > { %8083 = vmatprep.mubr.f32.mxu0 %v4689_v29  ;;  %8200 = vmatpush3.msra.mxu0 %v12996_v28  ;;  %v4719_v5 = vand.u32 4294901760, %v4718_v46  ;;  %v13001_v29 = vand.u32 4294901760, %v11027_v44  ;;  %v13002_v28 = vand.u32 4294901760, %v11081_v25  ;;  %v13004_v46 = vand.u32 4294901760, %v11109_v22 }
 0x306   : > { %8084 = vmatmul.mubr.f32.gmra.mxu0 %v4699_v30  ;;  %8282 = vmatmul.mubr.f32.vlgmr.msra.gmra.mxu1 %v12998_v12  ;;  %v4709_v36 = vand.u32 4294901760, %v4708_v59  ;;  %v13053_v30 = vld [vmem:[#allocation57_spill] sm:$0xff]  ;;  %v13054_v59 = vld [vmem:[#allocation59_spill] sm:$0xff] }
 0x307   : > { %8284 = vmatprep.mubr.f32.mxu1 %v12999_v24  ;;  %8329 = vmatprep.subr.mxu0 %v13000_v15  ;;  %v13055_v12 = vld [vmem:[#allocation61_spill] sm:$0xff]  ;;  %v13056_v24 = vld [vmem:[#allocation67_spill] sm:$0xff] }
 0x308   : > { %8410 = vmatpush3.msra.mxu1 %v12918_v4  ;;  %8086 = vmatprep.mubr.f32.mxu0 %v4709_v36  ;;  %v13003_v4 = vand.u32 4294901760, %v11063_v7  ;;  %v13057_v36 = vld [vmem:[#allocation63_spill] sm:$0xff] }
 0x309   : > { %8411 = vmatprep.subr.mxu1 %v12919_v43 }
 0x30a   : > { %8087 = vmatmul.mubr.f32.gmra.mxu0 %v4719_v5  ;;  %8285 = vmatmul.mubr.f32.gmra.mxu1 %v13001_v29  ;;  %v13059_v5 = vld [vmem:[#allocation71_spill] sm:$0xff]  ;;  %v13060_v29 = vld [vmem:[#allocation5_spill] sm:$0xff] }
 0x30b   : > { %8201 = vmatprep.mubr.f32.mxu0 %v11009_v16  ;;  %8287 = vmatprep.mubr.f32.mxu1 %v13002_v28  ;;  %v13005_v16 = vld [vmem:[#allocation17_spill] sm:$0xff]  ;;  %v13061_v28 = vld [vmem:[#allocation60_spill] sm:$0xff] }
 0x30c   : > { %8412 = vmatpush3.msra.mxu1 %v12919_v43  ;;  %v13007_v43 = vand.u32 4294901760, %v11136_v32 }
 0x30d   : > { %8413 = vmatprep.subr.mxu1 %v12922_v34 }
 0x30e   : > { %8202 = vmatmul.mubr.f32.vlgmr.msra.gmra.mxu0 %v10994_v10  ;;  %8288 = vmatmul.mubr.f32.gmra.mxu1 %v13003_v4  ;;  %v13006_v10 = vand.u32 4294901760, %v11087_v3  ;;  %v13062_v4 = vld [vmem:[#allocation69_spill] sm:$0xff] }
 0x30f   : > { %8330 = vmatpush3.msra.mxu0 %v13000_v15  ;;  %8204 = vmatprep.mubr.f32.mxu0 %v11042_v48  ;;  %v13008_v48 = vld [vmem:[#allocation18_spill] sm:$0xff] }
 0x310   : > { %8290 = vmatprep.mubr.f32.mxu1 %v13004_v46  ;;  %8331 = vmatprep.subr.mxu0 %v13005_v16  ;;  %v13058_v15 = vld [vmem:[#allocation58_spill] sm:$0xff] }
 0x311   : > { %8332 = vmatpush3.msra.mxu0 %v13005_v16  ;;  %8414 = vmatpush3.msra.mxu1 %v12922_v34  ;;  %v13010_v34 = vand.u32 4294901760, %v11174_v39  ;;  %v13063_v46 = vld [vmem:[#allocation62_spill] sm:$0xff]  ;;  %v13064_v16 = vld [vmem:[#allocation73_spill] sm:$0xff] }
 0x312   : > { %8205 = vmatmul.mubr.f32.gmra.mxu0 %v11027_v44  ;;  %8291 = vmatmul.mubr.f32.gmra.mxu1 %v13006_v10  ;;  %v13009_v44 = vand.u32 4294901760, %v11119_v9  ;;  %v13065_v10 = vld [vmem:[#allocation3_spill] sm:$0xff] }
 0x313   : > { %8207 = vmatprep.mubr.f32.mxu0 %v11081_v25  ;;  %8293 = vmatprep.mubr.f32.mxu1 %v13007_v43  ;;  %v13011_v25 = vld [vmem:[#allocation20_spill] sm:$0xff] }
 0x314   : > { %8333 = vmatprep.subr.mxu0 %v13008_v48  ;;  %8415 = vmatprep.subr.mxu1 %v12925_v33  ;;  %v13066_v43 = vld [vmem:[#allocation12_spill] sm:$0xff] }
 0x315   : > { %8334 = vmatpush3.msra.mxu0 %v13008_v48  ;;  %8416 = vmatpush3.msra.mxu1 %v12925_v33  ;;  %v13013_v33 = vand.u32 4294901760, %v11205_v35  ;;  %v13067_v48 = vld [vmem:[#allocation6_spill] sm:$0xff] }
 0x316   : > { %8208 = vmatmul.mubr.f32.gmra.mxu0 %v11063_v7  ;;  %8294 = vmatmul.mubr.f32.gmra.mxu1 %v13009_v44  ;;  %v13012_v7 = vand.u32 4294901760, %v11151_v2  ;;  %v13068_v44 = vld [vmem:[#allocation81_spill] sm:$0xff] }
 0x317   : > { %8210 = vmatprep.mubr.f32.mxu0 %v11109_v22  ;;  %8296 = vmatprep.mubr.f32.mxu1 %v13010_v34  ;;  %v13014_v22 = vld [vmem:[#allocation22_spill] sm:$0xff]  ;;  %v13069_v34 = vld [vmem:[#allocation15_spill] sm:$0xff] }
 0x318   : > { %8335 = vmatprep.subr.mxu0 %v13011_v25  ;;  %8417 = vmatprep.subr.mxu1 %v12930_v49 }
 0x319   : > { %8336 = vmatpush3.msra.mxu0 %v13011_v25  ;;  %8418 = vmatpush3.msra.mxu1 %v12930_v49  ;;  %v13016_v49 = vand.u32 4294901760, %v11232_v62  ;;  %v13070_v25 = vld [vmem:[#allocation77_spill] sm:$0xff] }
 0x31a   : > { %8211 = vmatmul.mubr.f32.gmra.mxu0 %v11087_v3  ;;  %8297 = vmatmul.mubr.f32.gmra.mxu1 %v13012_v7  ;;  %v13015_v3 = vand.u32 4294901760, %v11183_v51 }
 0x31b   : > { %8213 = vmatprep.mubr.f32.mxu0 %v11136_v32  ;;  %8299 = vmatprep.mubr.f32.mxu1 %v13013_v33  ;;  %v13017_v32 = vld [vmem:[#allocation25_spill] sm:$0xff] }
 0x31c   : > { %8337 = vmatprep.subr.mxu0 %v13014_v22  ;;  %8419 = vmatprep.subr.mxu1 %v12935_v19 }
 0x31d   : > { %8338 = vmatpush3.msra.mxu0 %v13014_v22  ;;  %8420 = vmatpush3.msra.mxu1 %v12935_v19  ;;  %v13019_v19 = vand.u32 4294901760, %v11270_v13 }
 0x31e   : > { %8214 = vmatmul.mubr.f32.gmra.mxu0 %v11119_v9  ;;  %8300 = vmatmul.mubr.f32.gmra.mxu1 %v13015_v3  ;;  %v13018_v9 = vand.u32 4294901760, %v11215_v61 }
 0x31f   : > { %8216 = vmatprep.mubr.f32.mxu0 %v11174_v39  ;;  %8302 = vmatprep.mubr.f32.mxu1 %v13016_v49  ;;  %v13020_v39 = vld [vmem:[#allocation28_spill] sm:$0xff] }
 0x320   : > { %8339 = vmatprep.subr.mxu0 %v13017_v32  ;;  %8421 = vmatprep.subr.mxu1 %v12943_v54 }
 0x321   : > { %8340 = vmatpush3.msra.mxu0 %v13017_v32  ;;  %8422 = vmatpush3.msra.mxu1 %v12943_v54  ;;  %v13022_v54 = vand.u32 4294901760, %v11299_v42 }
 0x322   : > { %8217 = vmatmul.mubr.f32.gmra.mxu0 %v11151_v2  ;;  %8303 = vmatmul.mubr.f32.gmra.mxu1 %v13018_v9  ;;  %v13021_v2 = vand.u32 4294901760, %v11247_v31 }
 0x323   : > { %8219 = vmatprep.mubr.f32.mxu0 %v11205_v35  ;;  %8305 = vmatprep.mubr.f32.mxu1 %v13019_v19  ;;  %v13023_v35 = vld [vmem:[#allocation33_spill] sm:$0xff] }
 0x324   : > { %8341 = vmatprep.subr.mxu0 %v13020_v39  ;;  %8423 = vmatprep.subr.mxu1 %v12950_v20 }
 0x325   : > { %8342 = vmatpush3.msra.mxu0 %v13020_v39  ;;  %8424 = vmatpush3.msra.mxu1 %v12950_v20  ;;  %v13025_v20 = vand.u32 4294901760, %v11322_v57 }
 0x326   : > { %8220 = vmatmul.mubr.f32.gmra.mxu0 %v11183_v51  ;;  %8306 = vmatmul.mubr.f32.gmra.mxu1 %v13021_v2  ;;  %v13024_v51 = vand.u32 4294901760, %v11277_v60 }
 0x327   : > { %8222 = vmatprep.mubr.f32.mxu0 %v11232_v62  ;;  %8308 = vmatprep.mubr.f32.mxu1 %v13022_v54  ;;  %v13026_v62 = vld [vmem:[#allocation42_spill] sm:$0xff] }
 0x328   : > { %8343 = vmatprep.subr.mxu0 %v13023_v35  ;;  %8425 = vmatprep.subr.mxu1 %v12961_v26 }
 0x329   : > { %8344 = vmatpush3.msra.mxu0 %v13023_v35  ;;  %8426 = vmatpush3.msra.mxu1 %v12961_v26  ;;  %v13028_v26 = vand.u32 4294901760, %v11356_v11 }
 0x32a   : > { %8223 = vmatmul.mubr.f32.gmra.mxu0 %v11215_v61  ;;  %8309 = vmatmul.mubr.f32.gmra.mxu1 %v13024_v51  ;;  %v13027_v61 = vand.u32 4294901760, %v11307_v50 }
 0x32b   : > { %8225 = vmatprep.mubr.f32.mxu0 %v11270_v13  ;;  %8311 = vmatprep.mubr.f32.mxu1 %v13025_v20  ;;  %v13029_v13 = vld [vmem:[#allocation45_spill] sm:$0xff] }
 0x32c   : > { %8345 = vmatprep.subr.mxu0 %v13026_v62  ;;  %8427 = vmatprep.subr.mxu1 %v12967_v38 }
 0x32d   : > { %8346 = vmatpush3.msra.mxu0 %v13026_v62  ;;  %8428 = vmatpush3.msra.mxu1 %v12967_v38  ;;  %v13031_v38 = vand.u32 4294901760, %v11381_v23 }
 0x32e   : > { %8226 = vmatmul.mubr.f32.gmra.mxu0 %v11247_v31  ;;  %8312 = vmatmul.mubr.f32.gmra.mxu1 %v13027_v61  ;;  %v13030_v31 = vand.u32 4294901760, %v11335_v47 }
 0x32f   : > { %8228 = vmatprep.mubr.f32.mxu0 %v11299_v42  ;;  %8314 = vmatprep.mubr.f32.mxu1 %v13028_v26  ;;  %v13032_v42 = vld [vmem:[#allocation4_spill] sm:$0xff] }
 0x330   : > { %8347 = vmatprep.subr.mxu0 %v13029_v13  ;;  %8429 = vmatprep.subr.mxu1 %v12973_v56 }
 0x331   : > { %8348 = vmatpush3.msra.mxu0 %v13029_v13  ;;  %8430 = vmatpush3.msra.mxu1 %v12973_v56  ;;  %v13034_v56 = vand.u32 4294901760, %v11403_v37 }
 0x332   : > { %8229 = vmatmul.mubr.f32.gmra.mxu0 %v11277_v60  ;;  %8315 = vmatmul.mubr.f32.gmra.mxu1 %v13030_v31  ;;  %v13033_v60 = vand.u32 4294901760, %v11363_v52 }
 0x333   : > { %8231 = vmatprep.mubr.f32.mxu0 %v11322_v57  ;;  %8317 = vmatprep.mubr.f32.mxu1 %v13031_v38  ;;  %v13035_v57 = vld [vmem:[#allocation13_spill] sm:$0xff] }
 0x334   : > { %8349 = vmatprep.subr.mxu0 %v13032_v42  ;;  %8431 = vmatprep.subr.mxu1 %v12979_v8 }
 0x335   : > { %8350 = vmatpush3.msra.mxu0 %v13032_v42  ;;  %8432 = vmatpush3.msra.mxu1 %v12979_v8  ;;  %v13037_v8 = vand.u32 4294901760, %v11435_v58 }
 0x336   : > { %8232 = vmatmul.mubr.f32.gmra.mxu0 %v11307_v50  ;;  %8318 = vmatmul.mubr.f32.gmra.mxu1 %v13033_v60  ;;  %v13036_v50 = vand.u32 4294901760, %v11389_v63 }
 0x337   : > { %8234 = vmatprep.mubr.f32.mxu0 %v11356_v11  ;;  %8320 = vmatprep.mubr.f32.mxu1 %v13034_v56  ;;  %v13038_v11 = vld [vmem:[#allocation29_spill] sm:$0xff] }
 0x338   : > { %8351 = vmatprep.subr.mxu0 %v13035_v57  ;;  %8433 = vmatprep.subr.mxu1 %v12983_v21 }
 0x339   : > { %8352 = vmatpush3.msra.mxu0 %v13035_v57  ;;  %8434 = vmatpush3.msra.mxu1 %v12983_v21  ;;  %v13040_v21 = vld [vmem:[#allocation32_spill] sm:$0xff] }
 0x33a   : > { %8235 = vmatmul.mubr.f32.gmra.mxu0 %v11335_v47  ;;  %8321 = vmatmul.mubr.f32.gmra.mxu1 %v13036_v50  ;;  %v13039_v47 = vand.u32 4294901760, %v11415_v53 }
 0x33b   : > { %8237 = vmatprep.mubr.f32.mxu0 %v11381_v23  ;;  %8323 = vmatprep.mubr.f32.mxu1 %v13037_v8  ;;  %v13042_v23 = vld [vmem:[#allocation53_spill] sm:$0xff] }
 0x33c   : > { %8353 = vmatprep.subr.mxu0 %v13038_v11  ;;  %8435 = vmatprep.subr.mxu1 %v12987_v55 }
 0x33d   : > { %8354 = vmatpush3.msra.mxu0 %v13038_v11  ;;  %8436 = vmatpush3.msra.mxu1 %v12987_v55  ;;  %v13044_v55 = vld [vmem:[#allocation47_spill] sm:$0xff] }
 0x33e   : > { %8238 = vmatmul.mubr.f32.gmra.mxu0 %v11363_v52  ;;  %8324 = vmatmul.mubr.f32.gmra.mxu1 %v13039_v47  ;;  %v13041_v52 = vand.u32 4294901760, %v11439_v0 }
 0x33f   : > { %8240 = vmatprep.mubr.f32.mxu0 %v11403_v37  ;;  %8326 = vmatprep.mubr.f32.mxu1 %v4707_v45  ;;  %v13043_v37 = vld [vmem:[#allocation41_spill] sm:$0xff]  ;;  %v13051_v45 = vld [vmem:[#allocation51_spill] sm:$0xff] }
 0x340   : > { %8355 = vmatprep.subr.mxu0 %v13040_v21  ;;  %8437 = vmatprep.subr.mxu1 %v12990_v41 }
 0x341   : > { %8356 = vmatpush3.msra.mxu0 %v13040_v21  ;;  %8438 = vmatpush3.msra.mxu1 %v12990_v41  ;;  %v13046_v41 = vld [vmem:[#allocation50_spill] sm:$0xff] }
 0x342   : > { %8241 = vmatmul.mubr.f32.gmra.mxu0 %v11389_v63  ;;  %8327 = vmatmul.mubr.f32.gmra.mxu1 %v13041_v52  ;;  %v13045_v63 = vld [vmem:[#allocation55_spill] sm:$0xff] }
 0x343   : > { %8243 = vmatprep.mubr.f32.mxu0 %v11435_v58  ;;  %8441 = vmatprep.mubr.f32.mxu1 %v13042_v23  ;;  %v13047_v58 = vld [vmem:[#allocation65_spill] sm:$0xff] }
 0x344   : > { %8439 = vmatprep.subr.mxu1 %v12993_v18  ;;  %8357 = vmatprep.subr.mxu0 %v13043_v37 }
 0x345   : > { %8440 = vmatpush3.msra.mxu1 %v12993_v18  ;;  %8358 = vmatpush3.msra.mxu0 %v13043_v37  ;;  %v13048_v18 = vld [vmem:[#allocation49_spill] sm:$0xff] }
 0x346   : > { %8244 = vmatmul.mubr.f32.gmra.mxu0 %v11415_v53  ;;  %8442 = vmatmul.mubr.f32.vlgmr.msra.gmra.mxu1 %v13044_v55  ;;  %v13049_v53 = vld [vmem:[#allocation52_spill] sm:$0xff] }
 0x347   : > { %8246 = vmatprep.mubr.f32.mxu0 %v11453_v17  ;;  %8444 = vmatprep.mubr.f32.mxu1 %v13045_v63  ;;  %v13050_v17 = vld [vmem:[#allocation54_spill] sm:$0xff] }
 0x348   : > { %8359 = vmatprep.subr.mxu0 %v13046_v41 }
 0x349   : > { %8360 = vmatpush3.msra.mxu0 %v13046_v41 }
 0x34a   : > { %8247 = vmatmul.mubr.f32.gmra.mxu0 %v11439_v0  ;;  %8445 = vmatmul.mubr.f32.gmra.mxu1 %v13047_v58  ;;  %v13052_v0 = vld [vmem:[#allocation56_spill] sm:$0xff] }
 0x34b   : > { %8361 = vmatprep.mubr.f32.mxu0 %v13042_v23  ;;  %8447 = vmatprep.mubr.f32.mxu1 %v13048_v18 }
 0x34e   : > { %8362 = vmatmul.mubr.f32.vlgmr.msra.gmra.mxu0 %v13044_v55  ;;  %8448 = vmatmul.mubr.f32.gmra.mxu1 %v13049_v53 }
 0x34f   : > { %8364 = vmatprep.mubr.f32.mxu0 %v13045_v63  ;;  %8450 = vmatprep.mubr.f32.mxu1 %v13050_v17 }
 0x352   : > { %8365 = vmatmul.mubr.f32.gmra.mxu0 %v13047_v58  ;;  %8451 = vmatmul.mubr.f32.gmra.mxu1 %v13051_v45 }
 0x353   : > { %8367 = vmatprep.mubr.f32.mxu0 %v13048_v18  ;;  %8453 = vmatprep.mubr.f32.mxu1 %v13052_v0 }
 0x356   : > { %8368 = vmatmul.mubr.f32.gmra.mxu0 %v13049_v53  ;;  %8454 = vmatmul.mubr.f32.gmra.mxu1 %v13053_v30 }
 0x357   : > { %8370 = vmatprep.mubr.f32.mxu0 %v13050_v17  ;;  %8456 = vmatprep.mubr.f32.mxu1 %v13054_v59 }
 0x35a   : > { %8371 = vmatmul.mubr.f32.gmra.mxu0 %v13051_v45  ;;  %8457 = vmatmul.mubr.f32.gmra.mxu1 %v13055_v12 }
 0x35b   : > { %8373 = vmatprep.mubr.f32.mxu0 %v13052_v0  ;;  %8459 = vmatprep.mubr.f32.mxu1 %v13056_v24 }
 0x35e   : > { %8374 = vmatmul.mubr.f32.gmra.mxu0 %v13053_v30  ;;  %8460 = vmatmul.mubr.f32.gmra.mxu1 %v13057_v36 }
 0x35f   : > { %8376 = vmatprep.mubr.f32.mxu0 %v13054_v59  ;;  %8462 = vmatprep.mubr.f32.mxu1 %v13058_v15 }
 0x362   : > { %8377 = vmatmul.mubr.f32.gmra.mxu0 %v13055_v12  ;;  %8463 = vmatmul.mubr.f32.gmra.mxu1 %v13059_v5 }
 0x363   : > { %8379 = vmatprep.mubr.f32.mxu0 %v13056_v24  ;;  %8465 = vmatprep.mubr.f32.mxu1 %v13060_v29 }
 0x366   : > { %8380 = vmatmul.mubr.f32.gmra.mxu0 %v13057_v36  ;;  %8466 = vmatmul.mubr.f32.gmra.mxu1 %v13061_v28 }
 0x367   : > { %8382 = vmatprep.mubr.f32.mxu0 %v13058_v15  ;;  %8468 = vmatprep.mubr.f32.mxu1 %v13062_v4 }
 0x36a   : > { %8383 = vmatmul.mubr.f32.gmra.mxu0 %v13059_v5  ;;  %8469 = vmatmul.mubr.f32.gmra.mxu1 %v13063_v46 }
 0x36b   : > { %8385 = vmatprep.mubr.f32.mxu0 %v13060_v29  ;;  %8471 = vmatprep.mubr.f32.mxu1 %v13064_v16 }
 0x36e   : > { %8386 = vmatmul.mubr.f32.gmra.mxu0 %v13061_v28  ;;  %8472 = vmatmul.mubr.f32.gmra.mxu1 %v13065_v10 }
 0x36f   : > { %8388 = vmatprep.mubr.f32.mxu0 %v13062_v4  ;;  %8474 = vmatprep.mubr.f32.mxu1 %v13066_v43 }
 0x372   : > { %8389 = vmatmul.mubr.f32.gmra.mxu0 %v13063_v46  ;;  %8475 = vmatmul.mubr.f32.gmra.mxu1 %v13067_v48 }
 0x373   : > { %8391 = vmatprep.mubr.f32.mxu0 %v13064_v16  ;;  %8477 = vmatprep.mubr.f32.mxu1 %v13068_v44 }
 0x376   : > { %8392 = vmatmul.mubr.f32.gmra.mxu0 %v13065_v10  ;;  %8478 = vmatmul.mubr.f32.gmra.mxu1 %v11349_v14 }
 0x377   : > { %8394 = vmatprep.mubr.f32.mxu0 %v13066_v43  ;;  %8480 = vmatprep.mubr.f32.mxu1 %v11391_v6 }
 0x37a   : > { %8395 = vmatmul.mubr.f32.gmra.mxu0 %v13067_v48  ;;  %8481 = vmatmul.mubr.f32.gmra.mxu1 %v11376_v27 }
 0x37b   : > { %8397 = vmatprep.mubr.f32.mxu0 %v13068_v44  ;;  %8483 = vmatprep.mubr.f32.mxu1 %v11419_v40 }
 0x37e   : > { %8398 = vmatmul.mubr.f32.gmra.mxu0 %v11349_v14  ;;  %8484 = vmatmul.mubr.f32.gmra.mxu1 %v13069_v34 }
 0x37f   : > { %8400 = vmatprep.mubr.f32.mxu0 %v11391_v6  ;;  %8486 = vmatprep.mubr.f32.mxu1 %v13070_v25  ;;  %v11698_v6 = vld [vmem:[%s12091_s6] ss:$0 sm:$0xff] }
 0x382   : > { %8401 = vmatmul.mubr.f32.gmra.mxu0 %v11376_v27  ;;  %8487 = vmatmul.mubr.f32.gmra.mxu1 %v11424_v1  ;;  %v8123_v7 = vpop.f32.mrf.mxu1 }
 0x383   : > { %8403 = vmatprep.mubr.f32.mxu0 %v11419_v40 }
 0x384   : > { %v4872_v33 = vpop.f32.mrf.mxu1 }
 0x386   : > { %8404 = vmatmul.mubr.f32.gmra.mxu0 %v13069_v34  ;;  %v8126_v22 = vpop.f32.mrf.mxu1 }
 0x387   : > { %8406 = vmatprep.mubr.f32.mxu0 %v13070_v25 }
 0x388   : > { %v4884_v14 = vpop.f32.mrf.mxu1 }
 0x38a   : > { %8407 = vmatmul.mubr.f32.gmra.mxu0 %v11424_v1 }
 0x38b   : > { %v8043_v27 = vpop.f32.mrf.mxu0 }
 0x38c   : > { %v8129_v3 = vpop.f32.mrf.mxu1  ;;  %v4422_v49 = vadd.f32 %v8043_v27, %v11698_v6 }
 0x38d   : > { %v4411_v40 = vpop.f32.mrf.mxu0 }
 0x38e   : > { %v4896_v32 = vpop.f32.mrf.mxu1  ;;  %v4412_v9 = vadd.f32 %v11698_v6, %v4411_v40  ;;  %v11702_v19 = vadd.f32 %v8123_v7, %v4422_v49 }
 0x38f   : > { %v8046_v39 = vpop.f32.mrf.mxu0 }
 0x390   : > { %v8132_v2 = vpop.f32.mrf.mxu1  ;;  %v4442_v1 = vadd.f32 %v8046_v39, %v11698_v6  ;;  %v11705_v54 = vadd.f32 %v4872_v33, %v4412_v9 }
 0x391   : > { %v4431_v35 = vpop.f32.mrf.mxu0 }
 0x392   : > { %v4908_v51 = vpop.f32.mrf.mxu1  ;;  %v4432_v20 = vadd.f32 %v11698_v6, %v4431_v35  ;;  %v11708_v62 = vadd.f32 %v8126_v22, %v4442_v1 }
 0x394   : > { %v8049_v61 = vpop.f32.mrf.mxu0  ;;  %v8135_v26 = vpop.f32.mrf.mxu1  ;;  %v11711_v31 = vadd.f32 %v4884_v14, %v4432_v20 }
 0x395   : > { %v4462_v13 = vadd.f32 %v8049_v61, %v11698_v6 }
 0x396   : > { %v4451_v38 = vpop.f32.mrf.mxu0  ;;  %v4920_v42 = vpop.f32.mrf.mxu1 }
 0x397   : > { %v4452_v60 = vadd.f32 %v11698_v6, %v4451_v38  ;;  %v11714_v56 = vadd.f32 %v8129_v3, %v4462_v13 }
 0x398   : > { %v8052_v57 = vpop.f32.mrf.mxu0  ;;  %v8138_v50 = vpop.f32.mrf.mxu1 }
 0x399   : > { %v4482_v8 = vadd.f32 %v8052_v57, %v11698_v6  ;;  %v11717_v11 = vadd.f32 %v4896_v32, %v4452_v60 }
 0x39a   : > { %v4471_v47 = vpop.f32.mrf.mxu0  ;;  %v4932_v21 = vpop.f32.mrf.mxu1 }
 0x39b   : > { %v4472_v52 = vadd.f32 %v11698_v6, %v4471_v47  ;;  %v11720_v23 = vadd.f32 %v8132_v2, %v4482_v8 }
 0x39c   : > { %v8055_v37 = vpop.f32.mrf.mxu0  ;;  %v8141_v55 = vpop.f32.mrf.mxu1 }
 0x39d   : > { %v4502_v63 = vadd.f32 %v8055_v37, %v11698_v6  ;;  %v11723_v41 = vadd.f32 %v4908_v51, %v4472_v52 }
 0x39e   : > { %v4491_v58 = vpop.f32.mrf.mxu0  ;;  %v4944_v18 = vpop.f32.mrf.mxu1 }
 0x39f   : > { %v4492_v53 = vadd.f32 %v11698_v6, %v4491_v58  ;;  %v11726_v17 = vadd.f32 %v8135_v26, %v4502_v63 }
 0x3a0   : > { %v8144_v0 = vpop.f32.mrf.mxu1 }
 0x3a1   : > { %v8058_v45 = vpop.f32.mrf.mxu0  ;;  %v11729_v59 = vadd.f32 %v4920_v42, %v4492_v53 }
 0x3a2   : > { %v4522_v30 = vadd.f32 %v8058_v45, %v11698_v6  ;;  %v4956_v24 = vpop.f32.mrf.mxu1 }
 0x3a3   : > { %v4511_v12 = vpop.f32.mrf.mxu0 }
 0x3a4   : > { %v4512_v36 = vadd.f32 %v11698_v6, %v4511_v12  ;;  %v11732_v15 = vadd.f32 %v8138_v50, %v4522_v30 }
 0x3a5   : > { %v8061_v5 = vpop.f32.mrf.mxu0  ;;  %v8147_v29 = vpop.f32.mrf.mxu1 }
 0x3a6   : > { %v4542_v28 = vadd.f32 %v8061_v5, %v11698_v6  ;;  %v11735_v4 = vadd.f32 %v4932_v21, %v4512_v36 }
 0x3a7   : > { %v4531_v46 = vpop.f32.mrf.mxu0  ;;  %v4968_v16 = vpop.f32.mrf.mxu1 }
 0x3a8   : > { %v4532_v10 = vadd.f32 %v11698_v6, %v4531_v46  ;;  %v11738_v43 = vadd.f32 %v8141_v55, %v4542_v28 }
 0x3a9   : > { %v8064_v48 = vpop.f32.mrf.mxu0  ;;  %v8150_v44 = vpop.f32.mrf.mxu1 }
 0x3aa   : > { %v4562_v34 = vadd.f32 %v8064_v48, %v11698_v6  ;;  %v11741_v25 = vadd.f32 %v4944_v18, %v4532_v10 }
 0x3ab   : > { %v4551_v7 = vpop.f32.mrf.mxu0  ;;  %v4980_v33 = vpop.f32.mrf.mxu1 }
 0x3ac   : > { %v4552_v22 = vadd.f32 %v11698_v6, %v4551_v7  ;;  %v11744_v14 = vadd.f32 %v8144_v0, %v4562_v34 }
 0x3ad   : > { %v8067_v27 = vpop.f32.mrf.mxu0  ;;  %v8153_v3 = vpop.f32.mrf.mxu1 }
 0x3ae   : > { %v4582_v49 = vadd.f32 %v8067_v27, %v11698_v6  ;;  %v11747_v40 = vadd.f32 %v4956_v24, %v4552_v22 }
 0x3af   : > { %v4571_v32 = vpop.f32.mrf.mxu0  ;;  %v4992_v9 = vpop.f32.mrf.mxu1 }
 0x3b0   : > { %v4572_v39 = vadd.f32 %v11698_v6, %v4571_v32  ;;  %v11750_v2 = vadd.f32 %v8147_v29, %v4582_v49 }
 0x3b1   : > { %v8070_v1 = vpop.f32.mrf.mxu0  ;;  %v8156_v35 = vpop.f32.mrf.mxu1 }
 0x3b2   : > { %v4602_v51 = vadd.f32 %v8070_v1, %v11698_v6  ;;  %v11753_v20 = vadd.f32 %v4968_v16, %v4572_v39 }
 0x3b3   : > { %v4591_v61 = vpop.f32.mrf.mxu0  ;;  %v5004_v26 = vpop.f32.mrf.mxu1 }
 0x3b4   : > { %v4592_v13 = vadd.f32 %v11698_v6, %v4591_v61  ;;  %v11756_v38 = vadd.f32 %v8150_v44, %v4602_v51 }
 0x3b5   : > { %v8073_v42 = vpop.f32.mrf.mxu0  ;;  %v8159_v60 = vpop.f32.mrf.mxu1 }
 0x3b6   : > { %13071 = vst [vmem:[#allocation21_spill] sm:$0xff] %v11756_v38  ;;  %v4622_v57 = vadd.f32 %v8073_v42, %v11698_v6  ;;  %v11759_v50 = vadd.f32 %v4980_v33, %v4592_v13 }
 0x3b7   : > { %v4611_v8 = vpop.f32.mrf.mxu0  ;;  %v5016_v47 = vpop.f32.mrf.mxu1 }
 0x3b8   : > { %13072 = vst [vmem:[#allocation2_spill] sm:$0xff] %v11759_v50  ;;  %v4612_v21 = vadd.f32 %v11698_v6, %v4611_v8  ;;  %v11762_v52 = vadd.f32 %v8153_v3, %v4622_v57 }
 0x3b9   : > { %v8162_v55 = vpop.f32.mrf.mxu1 }
 0x3ba   : > { %13073 = vst [vmem:[#allocation66_spill] sm:$0xff] %v11762_v52  ;;  %v8076_v37 = vpop.f32.mrf.mxu0  ;;  %v11765_v58 = vadd.f32 %v4992_v9, %v4612_v21 }
 0x3bb   : > { %v4642_v63 = vadd.f32 %v8076_v37, %v11698_v6  ;;  %v5028_v53 = vpop.f32.mrf.mxu1 }
 0x3bc   : > { %13074 = vst [vmem:[#allocation24_spill] sm:$0xff] %v11765_v58  ;;  %v4631_v18 = vpop.f32.mrf.mxu0 }
 0x3bd   : > { %v4632_v45 = vadd.f32 %v11698_v6, %v4631_v18  ;;  %v11768_v0 = vadd.f32 %v8156_v35, %v4642_v63 }
 0x3be   : > { %v8079_v30 = vpop.f32.mrf.mxu0  ;;  %v8165_v12 = vpop.f32.mrf.mxu1 }
 0x3bf   : > { %13075 = vst [vmem:[#allocation68_spill] sm:$0xff] %v11768_v0  ;;  %v4662_v24 = vadd.f32 %v8079_v30, %v11698_v6  ;;  %v11771_v36 = vadd.f32 %v5004_v26, %v4632_v45 }
 0x3c0   : > { %v4651_v5 = vpop.f32.mrf.mxu0  ;;  %v5040_v29 = vpop.f32.mrf.mxu1 }
 0x3c1   : > { %13076 = vst [vmem:[#allocation8_spill] sm:$0xff] %v11771_v36  ;;  %v4652_v28 = vadd.f32 %v11698_v6, %v4651_v5  ;;  %v11774_v46 = vadd.f32 %v8159_v60, %v4662_v24 }
 0x3c2   : > { %v8082_v16 = vpop.f32.mrf.mxu0  ;;  %v8168_v10 = vpop.f32.mrf.mxu1 }
 0x3c3   : > { %13077 = vst [vmem:[#allocation27_spill] sm:$0xff] %v11774_v46  ;;  %v4682_v48 = vadd.f32 %v8082_v16, %v11698_v6  ;;  %v11777_v44 = vadd.f32 %v5016_v47, %v4652_v28 }
 0x3c4   : > { %v4671_v34 = vpop.f32.mrf.mxu0  ;;  %v5052_v7 = vpop.f32.mrf.mxu1 }
 0x3c5   : > { %13078 = vst [vmem:[#allocation70_spill] sm:$0xff] %v11777_v44  ;;  %v4672_v33 = vadd.f32 %v11698_v6, %v4671_v34  ;;  %v11780_v22 = vadd.f32 %v8162_v55, %v4682_v48 }
 0x3c6   : > { %v8085_v27 = vpop.f32.mrf.mxu0  ;;  %v11782_v3 = vpop.f32.mrf.mxu1 }
 0x3c7   : > { %13079 = vst [vmem:[#allocation11_spill] sm:$0xff] %v11780_v22  ;;  %v4702_v49 = vadd.f32 %v8085_v27, %v11698_v6  ;;  %v11785_v32 = vadd.f32 %v5028_v53, %v4672_v33 }
 0x3c8   : > { %v4691_v9 = vpop.f32.mrf.mxu0  ;;  %v11787_v39 = vpop.f32.mrf.mxu1 }
 0x3c9   : > { %13080 = vst [vmem:[#allocation72_spill] sm:$0xff] %v11785_v32  ;;  %v4692_v1 = vadd.f32 %v11698_v6, %v4691_v9  ;;  %v11790_v35 = vadd.f32 %v8165_v12, %v4702_v49 }
 0x3ca   : > { %v8088_v51 = vpop.f32.mrf.mxu0  ;;  %v11792_v61 = vpop.f32.mrf.mxu1 }
 0x3cb   : > { %13081 = vst [vmem:[#allocation30_spill] sm:$0xff] %v11790_v35  ;;  %v4722_v26 = vadd.f32 %v8088_v51, %v11698_v6  ;;  %v11795_v13 = vadd.f32 %v5040_v29, %v4692_v1 }
 0x3cc   : > { %v4711_v42 = vpop.f32.mrf.mxu0  ;;  %v11797_v60 = vpop.f32.mrf.mxu1 }
 0x3cd   : > { %13082 = vst [vmem:[#allocation64_spill] sm:$0xff] %v11795_v13  ;;  %v4712_v57 = vadd.f32 %v11698_v6, %v4711_v42  ;;  %v11800_v8 = vadd.f32 %v8168_v10, %v4722_v26 }
 0x3ce   : > { %v8203_v47 = vpop.f32.mrf.mxu0  ;;  %v11802_v21 = vpop.f32.mrf.mxu1 }
 0x3cf   : > { %13083 = vst [vmem:[#allocation74_spill] sm:$0xff] %v11800_v8  ;;  %v11804_v37 = vadd.f32 %v5052_v7, %v4712_v57 }
 0x3d0   : > { %v5162_v55 = vpop.f32.mrf.mxu0  ;;  %v11806_v63 = vpop.f32.mrf.mxu1 }
 0x3d1   : > { %13084 = vst [vmem:[#allocation34_spill] sm:$0xff] %v11804_v37 }
 0x3d2   : > { %v8206_v18 = vpop.f32.mrf.mxu0  ;;  %v11808_v53 = vpop.f32.mrf.mxu1 }
 0x3d4   : > { %v11810_v45 = vpop.f32.mrf.mxu0  ;;  %v11812_v30 = vpop.f32.mrf.mxu1 }
 0x3d6   : > { %v11814_v12 = vpop.f32.mrf.mxu0  ;;  %v11816_v6 = vpop.f32.mrf.mxu1 }
 0x3d8   : > { %v11818_v24 = vpop.f32.mrf.mxu0  ;;  %v11820_v5 = vpop.f32.mrf.mxu1 }
 0x3da   : > { %v11822_v29 = vpop.f32.mrf.mxu0  ;;  %v11824_v28 = vpop.f32.mrf.mxu1 }
 0x3dc   : > { %v11826_v16 = vpop.f32.mrf.mxu0  ;;  %v11828_v10 = vpop.f32.mrf.mxu1 }
 0x3de   : > { %v11830_v48 = vpop.f32.mrf.mxu0  ;;  %v11832_v34 = vpop.f32.mrf.mxu1 }
 0x3e0   : > { %v11834_v7 = vpop.f32.mrf.mxu0  ;;  %v11836_v33 = vpop.f32.mrf.mxu1 }
 0x3e2   : > { %v11838_v27 = vpop.f32.mrf.mxu0  ;;  %v11840_v49 = vpop.f32.mrf.mxu1 }
 0x3e4   : > { %v11842_v9 = vpop.f32.mrf.mxu0  ;;  %v11844_v1 = vpop.f32.mrf.mxu1 }
 0x3e5   : > { %13085 = vst [vmem:[#allocation14_spill] sm:$0xff] %v11844_v1 }
 0x3e6   : > { %v11846_v51 = vpop.f32.mrf.mxu0  ;;  %v11848_v26 = vpop.f32.mrf.mxu1 }
 0x3e7   : > { %13086 = vst [vmem:[#allocation75_spill] sm:$0xff] %v11848_v26 }
 0x3e8   : > { %v11850_v42 = vpop.f32.mrf.mxu0  ;;  %v11852_v57 = vpop.f32.mrf.mxu1 }
 0x3e9   : > { %13087 = vst [vmem:[#allocation76_spill] sm:$0xff] %v11852_v57 }
 0x3ea   : > { %v11854_v37 = vpop.f32.mrf.mxu0  ;;  %v11856_v8 = vpop.f32.mrf.mxu1 }
 0x3eb   : > { %13088 = vst [vmem:[#allocation78_spill] sm:$0xff] %v11856_v8 }
 0x3ec   : > { %v11858_v13 = vpop.f32.mrf.mxu0  ;;  %v11860_v35 = vpop.f32.mrf.mxu1 }
 0x3ed   : > { %13089 = vst [vmem:[#allocation35_spill] sm:$0xff] %v11860_v35 }
 0x3ee   : > { %v11862_v32 = vpop.f32.mrf.mxu0  ;;  %v11864_v22 = vpop.f32.mrf.mxu1 }
 0x3ef   : > { %13090 = vst [vmem:[#allocation31_spill] sm:$0xff] %v11864_v22 }
 0x3f0   : > { %v11866_v44 = vpop.f32.mrf.mxu0  ;;  %v11868_v46 = vpop.f32.mrf.mxu1 }
 0x3f1   : > { %13091 = vst [vmem:[#allocation79_spill] sm:$0xff] %v11866_v44  ;;  %13092 = vst [vmem:[#allocation36_spill] sm:$0xff] %v11868_v46 }
 0x3f2   : > { %v11870_v36 = vpop.f32.mrf.mxu0  ;;  %v11872_v0 = vpop.f32.mrf.mxu1 }
 0x3f3   : > { %13093 = vst [vmem:[#allocation39_spill] sm:$0xff] %v11870_v36  ;;  %13094 = vst [vmem:[#allocation80_spill] sm:$0xff] %v11872_v0 }
 0x3f4   : > { %v11874_v58 = vpop.f32.mrf.mxu0  ;;  %v11876_v52 = vpop.f32.mrf.mxu1 }
 0x3f5   : > { %13095 = vst [vmem:[#allocation43_spill] sm:$0xff] %v11874_v58  ;;  %13096 = vst [vmem:[#allocation40_spill] sm:$0xff] %v11876_v52 }
 0x3f6   : > { %v11878_v8 = vpop.f32.mrf.mxu0  ;;  %v11880_v57 = vpop.f32.mrf.mxu1 }
 0x3f7   : > { %13097 = vst [vmem:[#allocation46_spill] sm:$0xff] %v11878_v8  ;;  %13098 = vst [vmem:[#allocation48_spill] sm:$0xff] %v11880_v57 }
 0x3f8   : > { %v11882_v35 = vpop.f32.mrf.mxu0  ;;  %v11884_v50 = vpop.f32.mrf.mxu1 }
 0x3f9   : > { %13099 = vst [vmem:[#allocation7_spill] sm:$0xff] %v11882_v35  ;;  %13100 = vst [vmem:[#allocation10_spill] sm:$0xff] %v11884_v50 }
 0x3fa   : > { %v11886_v22 = vpop.f32.mrf.mxu0  ;;  %v11888_v26 = vpop.f32.mrf.mxu1 }
 0x3fb   : > { %13101 = vst [vmem:[#allocation19_spill] sm:$0xff] %v11886_v22  ;;  %13102 = vst [vmem:[#allocation16_spill] sm:$0xff] %v11888_v26 }
 0x3fc   : > { %v11890_v46 = vpop.f32.mrf.mxu0  ;;  %v11892_v36 = vpop.f32.mrf.mxu1 }
 0x3fd   : > { %13103 = vst [vmem:[#allocation23_spill] sm:$0xff] %v11890_v46  ;;  %13104 = vst [vmem:[#allocation26_spill] sm:$0xff] %v11892_v36 }
 0x3fe   : > { %v11894_v0 = vpop.f32.mrf.mxu0  ;;  %v11896_v58 = vpop.f32.mrf.mxu1 }
 0x3ff   : > { %13105 = vst [vmem:[#allocation37_spill] sm:$0xff] %v11894_v0  ;;  %13106 = vst [vmem:[#allocation38_spill] sm:$0xff] %v11896_v58  ;;  %v5170_v58 = vadd.f32 %v8203_v47, %v11702_v19 }
 0x400   : > { %v11898_v52 = vpop.f32.mrf.mxu0  ;;  %v11900_v8 = vpop.f32.mrf.mxu1 }
 0x401   : > { %13107 = vst [vmem:[#allocation44_spill] sm:$0xff] %v11898_v52  ;;  %13108 = vst [vmem:[#allocation9_spill] sm:$0xff] %v11900_v8 }
 0x402   : > { %v11902_v57 = vpop.f32.mrf.mxu0  ;;  %v11904_v35 = vpop.f32.mrf.mxu1 }
 0x403   : > { %13109 = vst [vmem:[#allocation17_spill] sm:$0xff] %v11902_v57  ;;  %13110 = vst [vmem:[#allocation18_spill] sm:$0xff] %v11904_v35  ;;  %v5163_v57 = vadd.f32 %v5162_v55, %v11705_v54  ;;  %v5191_v55 = vadd.f32 %v11818_v24, %v11717_v11 }
 0x404   : > { %v11906_v50 = vpop.f32.mrf.mxu0  ;;  %v11908_v22 = vpop.f32.mrf.mxu1 }
 0x405   : > { %13111 = vst [vmem:[#allocation20_spill] sm:$0xff] %v11906_v50  ;;  %13112 = vst [vmem:[#allocation22_spill] sm:$0xff] %v11908_v22  ;;  %v5184_v50 = vadd.f32 %v8206_v18, %v11708_v62  ;;  %v5477_v22 = vadd.f32 %v11782_v3, %v5170_v58  ;;  %v5469_v19 = vadd.f32 %v11787_v39, %v5163_v57 }
 0x406   : > { %v11910_v26 = vpop.f32.mrf.mxu0  ;;  %v8443_v46 = vpop.f32.mrf.mxu1  ;;  %v5198_v58 = vadd.f32 %v11814_v12, %v11714_v56  ;;  %v5212_v56 = vadd.f32 %v11822_v29, %v11720_v23  ;;  %v5501_v12 = vadd.f32 %v11806_v63, %v5191_v55 }
 0x407   : > { %13113 = vst [vmem:[#allocation25_spill] sm:$0xff] %v11910_v26 }
 0x408   : > { %v11912_v36 = vpop.f32.mrf.mxu0  ;;  %v6108_v0 = vpop.f32.mrf.mxu1 }
 0x409   : > { %13114 = vst [vmem:[#allocation28_spill] sm:$0xff] %v11912_v36  ;;  %v5177_v36 = vadd.f32 %v11810_v45, %v11711_v31  ;;  %v5493_v31 = vadd.f32 %v11792_v61, %v5184_v50 }
 0x40a   : > { %v11915_v52 = vpop.f32.mrf.mxu0  ;;  %v8446_v8 = vpop.f32.mrf.mxu1 }
 0x40c   : > { %v11918_v38 = vpop.f32.mrf.mxu0  ;;  %v6120_v35 = vpop.f32.mrf.mxu1 }
 0x40d   : > { %13115 = vst [vmem:[#allocation33_spill] sm:$0xff] %v11918_v38 }
 0x40e   : > { %v8363_v26 = vpop.f32.mrf.mxu0  ;;  %v8449_v1 = vpop.f32.mrf.mxu1 }
 0x40f   : > { %v5842_v44 = vadd.f32 %v8363_v26, %v5477_v22  ;;  %v5485_v26 = vadd.f32 %v11797_v60, %v5177_v36 }
 0x410   : > { %v5835_v54 = vpop.f32.mrf.mxu0  ;;  %v6132_v62 = vpop.f32.mrf.mxu1 }
 0x411   : > { %v6115_v3 = vadd.f32 %v8443_v46, %v5842_v44  ;;  %v5836_v47 = vadd.f32 %v5835_v54, %v5469_v19  ;;  %v5509_v44 = vadd.f32 %v11802_v21, %v5198_v58  ;;  %v5525_v19 = vadd.f32 %v11808_v53, %v5212_v56 }
 0x412   : > { %v8366_v22 = vpop.f32.mrf.mxu0  ;;  %v8452_v39 = vpop.f32.mrf.mxu1 }
 0x413   : > { %6300 = vst.msk [vmem:[%s11930_s29 + $0x8] sm:$0xff] %vm6298_vm1, %v6115_v3  ;;  %v6109_v18 = vadd.f32 %v6108_v0, %v5836_v47  ;;  %v5854_v45 = vadd.f32 %v8366_v22, %v5493_v31  ;;  %v5205_v0 = vadd.f32 %v11826_v16, %v11723_v41 }
 0x414   : > { %v5847_v57 = vpop.f32.mrf.mxu0  ;;  %v6144_v38 = vpop.f32.mrf.mxu1 }
 0x415   : > { %6299 = vst.msk [vmem:[%s11930_s29] sm:$0xff] %vm6298_vm1, %v6109_v18  ;;  %v6127_v50 = vadd.f32 %v8446_v8, %v5854_v45  ;;  %v5848_v46 = vadd.f32 %v5847_v57, %v5485_v26  ;;  %v5226_v8 = vadd.f32 %v11830_v48, %v11726_v17  ;;  %v5517_v58 = vadd.f32 %v11812_v30, %v5205_v0 }
 0x416   : > { %v8369_v61 = vpop.f32.mrf.mxu0  ;;  %v8455_v11 = vpop.f32.mrf.mxu1  ;;  %v5240_v48 = vadd.f32 %v11838_v27, %v11732_v15  ;;  %v5254_v27 = vadd.f32 %v11846_v51, %v11738_v43  ;;  %v5268_v51 = vadd.f32 %v11854_v37, %v11744_v14  ;;  %v5282_v37 = vadd.f32 %v11862_v32, %v11750_v2  ;;  %v13118_v32 = vld [vmem:[#allocation21_spill] sm:$0xff] }
 0x417   : > { %6302 = vst.msk [vmem:[%s11930_s29 + $0x18] sm:$0xff] %vm6298_vm1, %v6127_v50  ;;  %v6121_v36 = vadd.f32 %v6120_v35, %v5848_v46  ;;  %v5866_v60 = vadd.f32 %v8369_v61, %v5509_v44  ;;  %v5219_v35 = vadd.f32 %v11834_v7, %v11729_v59  ;;  %v5541_v47 = vadd.f32 %v11816_v6, %v5226_v8 }
 0x418   : > { %v5859_v24 = vpop.f32.mrf.mxu0  ;;  %v6156_v23 = vpop.f32.mrf.mxu1  ;;  %v5233_v7 = vadd.f32 %v11842_v9, %v11735_v4  ;;  %v5557_v18 = vadd.f32 %v11824_v28, %v5240_v48  ;;  %v5573_v50 = vadd.f32 %v11832_v34, %v5254_v27 }
 0x419   : > { %6301 = vst.msk [vmem:[%s11930_s29 + $0x10] sm:$0xff] %vm6298_vm1, %v6121_v36  ;;  %v6139_v21 = vadd.f32 %v8449_v1, %v5866_v60  ;;  %v5860_v29 = vadd.f32 %v5859_v24, %v5501_v12  ;;  %v5533_v22 = vadd.f32 %v11820_v5, %v5219_v35  ;;  %v5589_v36 = vadd.f32 %v11840_v49, %v5268_v51  ;;  %v13131_v51 = vld [vmem:[#allocation19_spill] sm:$0xff] }
 0x41a   : > { %v8372_v54 = vpop.f32.mrf.mxu0  ;;  %v8458_v41 = vpop.f32.mrf.mxu1  ;;  %v5549_v26 = vadd.f32 %v11828_v10, %v5233_v7  ;;  %v13125_v7 = vld [vmem:[#allocation46_spill] sm:$0xff] }
 0x41b   : > { %6304 = vst.msk [vmem:[%s11930_s29 + $0x28] sm:$0xff] %vm6298_vm1, %v6139_v21  ;;  %v6133_v63 = vadd.f32 %v6132_v62, %v5860_v29  ;;  %v5878_v16 = vadd.f32 %v8372_v54, %v5525_v19  ;;  %v13119_v29 = vld [vmem:[#allocation39_spill] sm:$0xff] }
 0x41c   : > { %v5871_v3 = vpop.f32.mrf.mxu0  ;;  %v6168_v17 = vpop.f32.mrf.mxu1  ;;  %v5296_v19 = vadd.f32 %v13119_v29, %v13118_v32  ;;  %v13139_v29 = vld [vmem:[#allocation70_spill] sm:$0xff] }
 0x41d   : > { %6303 = vst.msk [vmem:[%s11930_s29 + $0x20] sm:$0xff] %vm6298_vm1, %v6133_v63  ;;  %v6151_v53 = vadd.f32 %v8452_v39, %v5878_v16  ;;  %v5872_v1 = vadd.f32 %v5871_v3, %v5517_v58  ;;  %v13121_v16 = vld [vmem:[#allocation2_spill] sm:$0xff]  ;;  %v13122_v58 = vld [vmem:[#allocation43_spill] sm:$0xff] }
 0x41e   : > { %v8375_v31 = vpop.f32.mrf.mxu0  ;;  %v8461_v59 = vpop.f32.mrf.mxu1  ;;  %v5289_v3 = vadd.f32 %v13122_v58, %v13121_v16  ;;  %v13142_v16 = vld [vmem:[#allocation11_spill] sm:$0xff]  ;;  %v13143_v58 = vld [vmem:[#allocation17_spill] sm:$0xff] }
 0x41f   : > { %6306 = vst.msk [vmem:[%s11930_s29 + $0x38] sm:$0xff] %vm6298_vm1, %v6151_v53  ;;  %v6145_v30 = vadd.f32 %v6144_v38, %v5872_v1  ;;  %v5890_v62 = vadd.f32 %v8375_v31, %v5541_v47  ;;  %v5247_v38 = vadd.f32 %v11850_v42, %v11741_v25  ;;  %v5261_v42 = vadd.f32 %v11858_v13, %v11747_v40  ;;  %v13116_v13 = vld [vmem:[#allocation79_spill] sm:$0xff]  ;;  %v13123_v53 = vld [vmem:[#allocation76_spill] sm:$0xff] }
 0x420   : > { %v5883_v55 = vpop.f32.mrf.mxu0  ;;  %v6180_v15 = vpop.f32.mrf.mxu1  ;;  %v5275_v12 = vadd.f32 %v13116_v13, %v11753_v20  ;;  %v13136_v13 = vld [vmem:[#allocation27_spill] sm:$0xff] }
 0x421   : > { %6305 = vst.msk [vmem:[%s11930_s29 + $0x30] sm:$0xff] %vm6298_vm1, %v6145_v30  ;;  %v6163_v6 = vadd.f32 %v8455_v11, %v5890_v62  ;;  %v5884_v39 = vadd.f32 %v5883_v55, %v5533_v22  ;;  %v5565_v61 = vadd.f32 %v11836_v33, %v5247_v38  ;;  %v13126_v55 = vld [vmem:[#allocation78_spill] sm:$0xff] }
 0x422   : > { %v8378_v45 = vpop.f32.mrf.mxu0  ;;  %v8464_v4 = vpop.f32.mrf.mxu1  ;;  %v5597_v1 = vadd.f32 %v13123_v53, %v5275_v12 }
 0x423   : > { %6308 = vst.msk [vmem:[%s11930_s29 + $0x48] sm:$0xff] %vm6298_vm1, %v6163_v6  ;;  %v6157_v5 = vadd.f32 %v6156_v23, %v5884_v39  ;;  %v5902_v9 = vadd.f32 %v8378_v45, %v5557_v18  ;;  %v13117_v23 = vld [vmem:[#allocation14_spill] sm:$0xff]  ;;  %v13127_v39 = vld [vmem:[#allocation24_spill] sm:$0xff]  ;;  %v13128_v18 = vld [vmem:[#allocation7_spill] sm:$0xff] }
 0x424   : > { %v5895_v57 = vpop.f32.mrf.mxu0  ;;  %v6192_v43 = vpop.f32.mrf.mxu1  ;;  %v5581_v8 = vadd.f32 %v13117_v23, %v5261_v42  ;;  %v5303_v45 = vadd.f32 %v13128_v18, %v13127_v39  ;;  %v13138_v23 = vld [vmem:[#allocation80_spill] sm:$0xff]  ;;  %v13149_v39 = vld [vmem:[#allocation25_spill] sm:$0xff] }
 0x425   : > { %6307 = vst.msk [vmem:[%s11930_s29 + $0x40] sm:$0xff] %vm6298_vm1, %v6157_v5  ;;  %v6175_v28 = vadd.f32 %v8458_v41, %v5902_v9  ;;  %v5896_v56 = vadd.f32 %v5895_v57, %v5549_v26  ;;  %v13120_v41 = vld [vmem:[#allocation75_spill] sm:$0xff] }
 0x426   : > { %v8381_v46 = vpop.f32.mrf.mxu0  ;;  %v8467_v25 = vpop.f32.mrf.mxu1  ;;  %v5605_v35 = vadd.f32 %v13120_v41, %v5282_v37  ;;  %v13129_v5 = vld [vmem:[#allocation35_spill] sm:$0xff]  ;;  %v13141_v41 = vld [vmem:[#allocation40_spill] sm:$0xff] }
 0x427   : > { %6310 = vst.msk [vmem:[%s11930_s29 + $0x58] sm:$0xff] %vm6298_vm1, %v6175_v28  ;;  %v6169_v10 = vadd.f32 %v6168_v17, %v5896_v56  ;;  %v5914_v44 = vadd.f32 %v8381_v46, %v5573_v50  ;;  %v5613_v9 = vadd.f32 %v13129_v5, %v5289_v3  ;;  %v13132_v46 = vld [vmem:[#allocation31_spill] sm:$0xff] }
 0x428   : > { %v5907_v11 = vpop.f32.mrf.mxu0  ;;  %v6204_v14 = vpop.f32.mrf.mxu1 }
 0x429   : > { %6309 = vst.msk [vmem:[%s11930_s29 + $0x50] sm:$0xff] %vm6298_vm1, %v6169_v10  ;;  %v6187_v34 = vadd.f32 %v8461_v59, %v5914_v44  ;;  %v5908_v0 = vadd.f32 %v5907_v11, %v5565_v61  ;;  %v13124_v59 = vld [vmem:[#allocation66_spill] sm:$0xff]  ;;  %v13133_v44 = vld [vmem:[#allocation8_spill] sm:$0xff]  ;;  %v13134_v61 = vld [vmem:[#allocation23_spill] sm:$0xff] }
 0x42a   : > { %v8384_v60 = vpop.f32.mrf.mxu0  ;;  %v8470_v40 = vpop.f32.mrf.mxu1  ;;  %v5310_v30 = vadd.f32 %v13125_v7, %v13124_v59  ;;  %v5317_v11 = vadd.f32 %v13134_v61, %v13133_v44  ;;  %v13145_v59 = vld [vmem:[#allocation72_spill] sm:$0xff]  ;;  %v13155_v61 = vld [vmem:[#allocation38_spill] sm:$0xff] }
 0x42b   : > { %6312 = vst.msk [vmem:[%s11930_s29 + $0x68] sm:$0xff] %vm6298_vm1, %v6187_v34  ;;  %v6181_v33 = vadd.f32 %v6180_v15, %v5908_v0  ;;  %v5926_v24 = vadd.f32 %v8384_v60, %v5589_v36  ;;  %v5621_v15 = vadd.f32 %v13126_v55, %v5296_v19  ;;  %v13135_v34 = vld [vmem:[#allocation36_spill] sm:$0xff] }
 0x42c   : > { %v5919_v21 = vpop.f32.mrf.mxu0  ;;  %v6216_v2 = vpop.f32.mrf.mxu1  ;;  %v5629_v0 = vadd.f32 %v13135_v34, %v5303_v45  ;;  %v13146_v7 = vld [vmem:[#allocation20_spill] sm:$0xff]  ;;  %v13156_v34 = vld [vmem:[#allocation34_spill] sm:$0xff] }
 0x42d   : > { %6311 = vst.msk [vmem:[%s11930_s29 + $0x60] sm:$0xff] %vm6298_vm1, %v6181_v33  ;;  %v6199_v49 = vadd.f32 %v8464_v4, %v5926_v24  ;;  %v5920_v54 = vadd.f32 %v5919_v21, %v5581_v8 }
 0x42e   : > { %v8387_v63 = vpop.f32.mrf.mxu0  ;;  %v8473_v20 = vpop.f32.mrf.mxu1 }
 0x42f   : > { %6314 = vst.msk [vmem:[%s11930_s29 + $0x78] sm:$0xff] %vm6298_vm1, %v6199_v49  ;;  %v6193_v17 = vadd.f32 %v6192_v43, %v5920_v54  ;;  %v5938_v48 = vadd.f32 %v8387_v63, %v5605_v35  ;;  %v13130_v43 = vld [vmem:[#allocation68_spill] sm:$0xff]  ;;  %v5645_v35 = vadd.f32 %v13141_v41, %v5317_v11 }
 0x430   : > { %v5931_v47 = vpop.f32.mrf.mxu0  ;;  %v6228_v31 = vpop.f32.mrf.mxu1  ;;  %v5324_v28 = vadd.f32 %v13131_v51, %v13130_v43  ;;  %v13152_v43 = vld [vmem:[#allocation28_spill] sm:$0xff] }
 0x431   : > { %6313 = vst.msk [vmem:[%s11930_s29 + $0x70] sm:$0xff] %vm6298_vm1, %v6193_v17  ;;  %v6211_v62 = vadd.f32 %v8467_v25, %v5938_v48  ;;  %v5932_v22 = vadd.f32 %v5931_v47, %v5597_v1  ;;  %v5637_v25 = vadd.f32 %v13132_v46, %v5310_v30  ;;  %v13144_v48 = vld [vmem:[#allocation48_spill] sm:$0xff] }
 0x432   : > { %v8390_v27 = vpop.f32.mrf.mxu0  ;;  %v8476_v6 = vpop.f32.mrf.mxu1  ;;  %v5653_v8 = vadd.f32 %v13138_v23, %v5324_v28  ;;  %v13159_v23 = vld [vmem:[#allocation18_spill] sm:$0xff] }
 0x433   : > { %6316 = vst.msk [vmem:[%s11930_s29 + $0x88] sm:$0xff] %vm6298_vm1, %v6211_v62  ;;  %v6205_v4 = vadd.f32 %v6204_v14, %v5932_v22  ;;  %v5950_v38 = vadd.f32 %v8390_v27, %v5621_v15  ;;  %v13147_v22 = vld [vmem:[#allocation10_spill] sm:$0xff] }
 0x434   : > { %v5943_v26 = vpop.f32.mrf.mxu0  ;;  %v6240_v57 = vpop.f32.mrf.mxu1  ;;  %v13148_v27 = vld [vmem:[#allocation30_spill] sm:$0xff] }
 0x435   : > { %6315 = vst.msk [vmem:[%s11930_s29 + $0x80] sm:$0xff] %vm6298_vm1, %v6205_v4  ;;  %v6223_v56 = vadd.f32 %v8470_v40, %v5950_v38  ;;  %v5944_v50 = vadd.f32 %v5943_v26, %v5613_v9  ;;  %v13137_v40 = vld [vmem:[#allocation37_spill] sm:$0xff]  ;;  %v13150_v4 = vld [vmem:[#allocation16_spill] sm:$0xff] }
 0x436   : > { %v8393_v42 = vpop.f32.mrf.mxu0  ;;  %v8479_v10 = vpop.f32.mrf.mxu1  ;;  %v5338_v12 = vadd.f32 %v13137_v40, %v13136_v13  ;;  %v13151_v26 = vld [vmem:[#allocation64_spill] sm:$0xff]  ;;  %v13158_v40 = vld [vmem:[#allocation9_spill] sm:$0xff] }
 0x437   : > { %6318 = vst.msk [vmem:[%s11930_s29 + $0x98] sm:$0xff] %vm6298_vm1, %v6223_v56  ;;  %v6217_v14 = vadd.f32 %v6216_v2, %v5944_v50  ;;  %v5962_v37 = vadd.f32 %v8393_v42, %v5637_v25  ;;  %v13140_v2 = vld [vmem:[#allocation44_spill] sm:$0xff]  ;;  %v13153_v56 = vld [vmem:[#allocation26_spill] sm:$0xff] }
 0x438   : > { %v5955_v36 = vpop.f32.mrf.mxu0  ;;  %v6252_v60 = vpop.f32.mrf.mxu1  ;;  %v5331_v19 = vadd.f32 %v13140_v2, %v13139_v29  ;;  %v5669_v53 = vadd.f32 %v13144_v48, %v5338_v12  ;;  %v13154_v25 = vld [vmem:[#allocation74_spill] sm:$0xff] }
 0x439   : > { %6317 = vst.msk [vmem:[%s11930_s29 + $0x90] sm:$0xff] %vm6298_vm1, %v6217_v14  ;;  %v6235_v33 = vadd.f32 %v8473_v20, %v5962_v37  ;;  %v5956_v24 = vadd.f32 %v5955_v36, %v5629_v0  ;;  %v5352_v20 = vadd.f32 %v13143_v58, %v13142_v16  ;;  %v5380_v42 = vadd.f32 %v11915_v52, %v13154_v25  ;;  %v13157_v0 = vld [vmem:[#allocation33_spill] sm:$0xff] }
 0x43a   : > { %v8396_v21 = vpop.f32.mrf.mxu0  ;;  %v8482_v32 = vpop.f32.mrf.mxu1  ;;  %v5661_v55 = vadd.f32 %v13147_v22, %v5331_v19  ;;  %v5373_v36 = vadd.f32 %v13157_v0, %v13156_v34  ;;  %v13160_v19 = vld [vmem:[#allocation22_spill] sm:$0xff] }
 0x43b   : > { %6320 = vst.msk [vmem:[%s11930_s29 + $0xa8] sm:$0xff] %vm6298_vm1, %v6235_v33  ;;  %v6229_v49 = vadd.f32 %v6228_v31, %v5956_v24  ;;  %v5974_v54 = vadd.f32 %v8396_v21, %v5653_v8  ;;  %v5345_v31 = vadd.f32 %v13146_v7, %v13145_v59  ;;  %v5685_v38 = vadd.f32 %v13150_v4, %v5352_v20 }
 0x43c   : > { %v5967_v63 = vpop.f32.mrf.mxu0  ;;  %v6264_v1 = vpop.f32.mrf.mxu1  ;;  %v5717_v8 = vadd.f32 %v13159_v23, %v5380_v42 }
 0x43d   : > { %6319 = vst.msk [vmem:[%s11930_s29 + $0xa0] sm:$0xff] %vm6298_vm1, %v6229_v49  ;;  %v6247_v3 = vadd.f32 %v8476_v6, %v5974_v54  ;;  %v5968_v17 = vadd.f32 %v5967_v63, %v5645_v35  ;;  %v5366_v6 = vadd.f32 %v13149_v39, %v13148_v27  ;;  %v5677_v50 = vadd.f32 %v13153_v56, %v5345_v31 }
 0x43e   : > { %v8399_v47 = vpop.f32.mrf.mxu0  ;;  %v8485_v5 = vpop.f32.mrf.mxu1  ;;  %v5709_v49 = vadd.f32 %v13160_v19, %v5373_v36 }
 0x43f   : > { %6322 = vst.msk [vmem:[%s11930_s29 + $0xb8] sm:$0xff] %vm6298_vm1, %v6247_v3  ;;  %v6241_v30 = vadd.f32 %v6240_v57, %v5968_v17  ;;  %v5986_v62 = vadd.f32 %v8399_v47, %v5669_v53  ;;  %v5359_v57 = vadd.f32 %v13152_v43, %v13151_v26  ;;  %v5701_v11 = vadd.f32 %v13155_v61, %v5366_v6 }
 0x440   : > { %v5979_v15 = vpop.f32.mrf.mxu0  ;;  %v6276_v14 = vpop.f32.mrf.mxu1 }
 0x441   : > { %6321 = vst.msk [vmem:[%s11930_s29 + $0xb0] sm:$0xff] %vm6298_vm1, %v6241_v30  ;;  %v6259_v18 = vadd.f32 %v8479_v10, %v5986_v62  ;;  %v5980_v45 = vadd.f32 %v5979_v15, %v5661_v55  ;;  %v5693_v12 = vadd.f32 %v13158_v40, %v5359_v57 }
 0x442   : > { %v8402_v9 = vpop.f32.mrf.mxu0  ;;  %v8488_v21 = vpop.f32.mrf.mxu1 }
 0x443   : > { %6324 = vst.msk [vmem:[%s11930_s29 + $0xc8] sm:$0xff] %vm6298_vm1, %v6259_v18  ;;  %v6253_v51 = vadd.f32 %v6252_v60, %v5980_v45  ;;  %v5998_v28 = vadd.f32 %v8402_v9, %v5685_v38 }
 0x444   : > { %v5991_v46 = vpop.f32.mrf.mxu0  ;;  %v6288_v63 = vpop.f32.mrf.mxu1 }
 0x445   : > { %6323 = vst.msk [vmem:[%s11930_s29 + $0xc0] sm:$0xff] %vm6298_vm1, %v6253_v51  ;;  %v6271_v10 = vadd.f32 %v8482_v32, %v5998_v28  ;;  %v5992_v44 = vadd.f32 %v5991_v46, %v5677_v50 }
 0x446   : > { %v8405_v37 = vpop.f32.mrf.mxu0 }
 0x447   : > { %6326 = vst.msk [vmem:[%s11930_s29 + $0xd8] sm:$0xff] %vm6298_vm1, %v6271_v10  ;;  %v6265_v60 = vadd.f32 %v6264_v1, %v5992_v44  ;;  %v6010_v13 = vadd.f32 %v8405_v37, %v5701_v11 }
 0x448   : > { %v6003_v52 = vpop.f32.mrf.mxu0 }
 0x449   : > { %6325 = vst.msk [vmem:[%s11930_s29 + $0xd0] sm:$0xff] %vm6298_vm1, %v6265_v60  ;;  %v6283_v33 = vadd.f32 %v8485_v5, %v6010_v13  ;;  %v6004_v24 = vadd.f32 %v6003_v52, %v5693_v12 }
 0x44a   : > { %v8408_v32 = vpop.f32.mrf.mxu0 }
 0x44b   : > { %6328 = vst.msk [vmem:[%s11930_s29 + $0xe8] sm:$0xff] %vm6298_vm1, %v6283_v33  ;;  %v6277_v29 = vadd.f32 %v6276_v14, %v6004_v24  ;;  %v6022_v2 = vadd.f32 %v8408_v32, %v5717_v8 }
 0x44c   : > { %v6015_v54 = vpop.f32.mrf.mxu0 }
 0x44d   : > { %6327 = vst.msk [vmem:[%s11930_s29 + $0xe0] sm:$0xff] %vm6298_vm1, %v6277_v29  ;;  %v6295_v41 = vadd.f32 %v8488_v21, %v6022_v2  ;;  %v6016_v35 = vadd.f32 %v6015_v54, %v5709_v49 }
 0x44f   : > { %6330 = vst.msk [vmem:[%s11930_s29 + $0xf8] sm:$0xff] %vm6298_vm1, %v6295_v41  ;;  %v6289_v16 = vadd.f32 %v6288_v63, %v6016_v35 }
 0x451   : > { %6329 = vst.msk [vmem:[%s11930_s29 + $0xf0] sm:$0xff] %vm6298_vm1, %v6289_v16 }
 0x452 PF: > { %s17_s24 = sadd.s32 1, %s8503_s24  }
 0x453   : > { %p14_p4 = scmp.ge.s32.totalorder %s17_s24, 4  }
 0x455   :  { %16 = sbr.rel (!%p14_p4) target bundleno = 1 (0x1), region = 78 }

</bundles_post_ra>
